<compile_context>
chip_gen: v6e
topology: v6e:2x2x1
jax: 0.10.0
libtpu: 0.0.40
codegen_flags: <defaults>
</compile_context>

<pallas_src>
import jax
import jax.numpy as jnp
from jax.experimental import pallas as pl
from jax.experimental.pallas import tpu as pltpu

NC = 3      # input channels
NDF = 8     # discriminator feature maps (small for testing; DCGAN uses 64)
BN_EPS = 1e-5
LRELU_SLOPE = 0.2

TMP_TARGET = 512                 # packed rows per M-tile
VMEM_LIMIT = 32 * 1024 * 1024    # safe on v5e/v6e/v7x, well above our tiles


def _round_up(a, b):
    return (a + b - 1) // b * b


# ----------------------------------------------------------------------------
# Pallas kernels
# ----------------------------------------------------------------------------
def _matmul_lrelu_kernel(x_ref, w_ref, o_ref):
    """One M-tile:  y = X @ W;  LeakyReLU(0.2).  Output stored bf16."""
    y = jnp.dot(x_ref[...], w_ref[...], preferred_element_type=jnp.float32)
    o_ref[...] = jnp.where(y > 0, y, LRELU_SLOPE * y).astype(o_ref.dtype)


def _matmul_stats_kernel(x_ref, w_ref, y_ref, s_ref, ss_ref):
    """One M-tile:  y = X @ W; store y (bf16); accumulate column sum / sumsq.

    Grid is (n_split, grid_m/n_split).  s_ref / ss_ref are (8, lanes) partial
    accumulators indexed by the leading ("parallel") axis, so each TensorCore
    owns its own partials; they are resident across the inner axis and reduced
    in JAX glue.  Stats are taken from the f32 matmul result in-register.
    """
    @pl.when(pl.program_id(1) == 0)
    def _():
        s_ref[...] = jnp.zeros_like(s_ref)
        ss_ref[...] = jnp.zeros_like(ss_ref)

    y = jnp.dot(x_ref[...], w_ref[...], preferred_element_type=jnp.float32)
    y_ref[...] = y.astype(y_ref.dtype)
    # (1, lanes) broadcasts over the 8 sublanes of the accumulator block.
    s_ref[...] += jnp.sum(y, axis=0, keepdims=True)
    ss_ref[...] += jnp.sum(y * y, axis=0, keepdims=True)


def _bn_lrelu_kernel(y_ref, scale_ref, shift_ref, o_ref):
    """One M-tile:  y * scale + shift;  LeakyReLU(0.2).  bf16 in / bf16 out."""
    y = y_ref[...].astype(jnp.float32) * scale_ref[...] + shift_ref[...]
    o_ref[...] = jnp.where(y > 0, y, LRELU_SLOPE * y).astype(o_ref.dtype)


def _matmul_sigmoid_kernel(x_ref, w_ref, o_ref):
    """Final head: y = X @ W; exact sigmoid.  Tiny (M = batch, Cout = 1)."""
    y = jnp.dot(x_ref[...], w_ref[...], preferred_element_type=jnp.float32)
    o_ref[...] = 1.0 / (1.0 + jnp.exp(-y))


# ----------------------------------------------------------------------------
# JAX glue: im2col patch extraction (NHWC, bf16), packing helpers
# ----------------------------------------------------------------------------
def _extract_patches(x, k, stride, pad):
    """x: (N, H, W, C) -> (N*Ho*Wo, k*k*C) with column order (kh, kw, c).

    No minor-dim transpose: the stack axis already yields (kh, kw, c) order.
    """
    N, H, W, C = x.shape
    if pad > 0:
        x = jnp.pad(x, ((0, 0), (pad, pad), (pad, pad), (0, 0)))
    Hp, Wp = H + 2 * pad, W + 2 * pad
    Ho = (Hp - k) // stride + 1
    Wo = (Wp - k) // stride + 1
    cols = []
    for kh in range(k):
        for kw in range(k):
            cols.append(
                x[:, kh:kh + Ho * stride:stride, kw:kw + Wo * stride:stride, :]
            )
    pat = jnp.stack(cols, axis=3)               # (N, Ho, Wo, k*k, C)
    return pat.reshape(N * Ho * Wo, k * k * C), Ho, Wo


def _weight_matrix(w):
    """(cout, cin, kh, kw) -> (kh*kw*cin, cout) matching (kh, kw, c) columns."""
    cout, cin, k, _ = w.shape
    return jnp.transpose(w, (2, 3, 1, 0)).reshape(k * k * cin, cout)


def _block_diag(w2d, r):
    """(K, C) -> (r*K, r*C) block-diagonal weight for row packing."""
    if r == 1:
        return w2d
    K, C = w2d.shape
    eye = jnp.eye(r, dtype=w2d.dtype)
    wb = jnp.einsum("jl,kc->jklc", eye, w2d)    # [j,k,l,c] = eye[j,l]*w[k,c]
    return wb.reshape(r * K, r * C)


def _pack_operands(x, w, stride, pad):
    """Build lane-dense, bf16 matmul operands for one conv layer."""
    N = x.shape[0]
    cout, cin, k, _ = w.shape
    patches, Ho, Wo = _extract_patches(x.astype(jnp.bfloat16), k, stride, pad)
    M, K = patches.shape

    # Row-packing factor so the output lane dim is a full 128 lanes.
    C = cout
    r = 128 // C if (C < 128 and 128 % C == 0) else 1

    # Pad K only enough that r*K_pad is 128-lane aligned (zero cols: exact).
    K_pad = _round_up(K, 128 // r)
    if K_pad != K:
        patches = jnp.pad(patches, ((0, 0), (0, K_pad - K)))
    w2d = _weight_matrix(w)                                  # (K, Cout) f32
    if K_pad != K:
        w2d = jnp.pad(w2d, ((0, K_pad - K), (0, 0)))

    # Pad rows so M is a multiple of r * tile; zero rows contribute nothing.
    Mp = -(-M // r)
    tmp = min(TMP_TARGET, _round_up(Mp, 16))
    Mp_pad = _round_up(Mp, tmp)
    M_pad = Mp_pad * r
    if M_pad != M:
        patches = jnp.pad(patches, ((0, M_pad - M), (0, 0)))

    x2 = patches.reshape(Mp_pad, r * K_pad)                  # bf16
    wb = _block_diag(w2d, r).astype(jnp.bfloat16)            # (r*K_pad, r*C)

    meta = dict(N=N, Ho=Ho, Wo=Wo, C=C, r=r, M=M, M_pad=M_pad,
                Mp_pad=Mp_pad, tmp=tmp, K_pad=K_pad)
    return x2, wb, meta


def _unpack_output(out_p, meta):
    N, Ho, Wo, C = meta["N"], meta["Ho"], meta["Wo"], meta["C"]
    y = out_p.reshape(meta["M_pad"], C)[: meta["M"]]
    return y.reshape(N, Ho, Wo, C)


# ----------------------------------------------------------------------------
# Conv blocks (wrappers around the Pallas kernels)
# ----------------------------------------------------------------------------
def _conv_lrelu(x, w, stride, pad):
    x2, wb, m = _pack_operands(x, w, stride, pad)
    tmp, rK, rC = m["tmp"], m["r"] * m["K_pad"], m["r"] * m["C"]
    grid_m = m["Mp_pad"] // tmp
    out_p = pl.pallas_call(
        _matmul_lrelu_kernel,
        out_shape=jax.ShapeDtypeStruct((m["Mp_pad"], rC), jnp.bfloat16),
        grid=(grid_m,),
        in_specs=[
            pl.BlockSpec((tmp, rK), lambda i: (i, 0)),
            pl.BlockSpec((rK, rC), lambda i: (0, 0)),
        ],
        out_specs=pl.BlockSpec((tmp, rC), lambda i: (i, 0)),
        compiler_params=pltpu.CompilerParams(
            dimension_semantics=("parallel",),
            vmem_limit_bytes=VMEM_LIMIT),
    )(x2, wb)
    return _unpack_output(out_p, m)


def _conv_bn_lrelu(x, w, gamma, beta, stride, pad):
    x2, wb, m = _pack_operands(x, w, stride, pad)
    tmp, rK = m["tmp"], m["r"] * m["K_pad"]
    r, C = m["r"], m["C"]
    rC = r * C
    grid_m = m["Mp_pad"] // tmp

    # Megacore-friendly stats split (per-core partial accumulators on v7x).
    n_split = 2 if (grid_m >= 2 and grid_m % 2 == 0) else 1
    gh = grid_m // n_split

    # Pass 1: tiled matmul (bf16 y writeback) + per-channel sum / sumsq.
    y_p, s_p, ss_p = pl.pallas_call(
        _matmul_stats_kernel,
        out_shape=(
            jax.ShapeDtypeStruct((m["Mp_pad"], rC), jnp.bfloat16),
            jax.ShapeDtypeStruct((8 * n_split, rC), jnp.float32),
            jax.ShapeDtypeStruct((8 * n_split, rC), jnp.float32),
        ),
        grid=(n_split, gh),
        in_specs=[
            pl.BlockSpec((tmp, rK), lambda c, i: (c * gh + i, 0)),
            pl.BlockSpec((rK, rC), lambda c, i: (0, 0)),
        ],
        out_specs=(
            pl.BlockSpec((tmp, rC), lambda c, i: (c * gh + i, 0)),
            pl.BlockSpec((8, rC), lambda c, i: (c, 0)),
            pl.BlockSpec((8, rC), lambda c, i: (c, 0)),
        ),
        compiler_params=pltpu.CompilerParams(
            dimension_semantics=("parallel", "arbitrary"),
            vmem_limit_bytes=VMEM_LIMIT),
    )(x2, wb)

    # Fold per-core / packed (r, C) partial sums -> batch stats over true M.
    M_true = m["M"]
    s = s_p.reshape(n_split, 8, rC)[:, 0, :].sum(axis=0)    # (rC,)
    ss = ss_p.reshape(n_split, 8, rC)[:, 0, :].sum(axis=0)
    s = s.reshape(r, C).sum(axis=0)
    ss = ss.reshape(r, C).sum(axis=0)
    mean = s / M_true
    var = jnp.maximum(ss / M_true - mean * mean, 0.0)   # biased, training mode
    scale = gamma.reshape(-1) * jax.lax.rsqrt(var + BN_EPS)
    shift = beta.reshape(-1) - mean * scale
    scale_p = jnp.tile(scale.reshape(1, C), (1, r))
    shift_p = jnp.tile(shift.reshape(1, C), (1, r))

    # Pass 2: tiled affine + LeakyReLU (lane-dense bf16 loads and stores).
    out_p = pl.pallas_call(
        _bn_lrelu_kernel,
        out_shape=jax.ShapeDtypeStruct((m["Mp_pad"], rC), jnp.bfloat16),
        grid=(grid_m,),
        in_specs=[
            pl.BlockSpec((tmp, rC), lambda i: (i, 0)),
            pl.BlockSpec((1, rC), lambda i: (0, 0)),
            pl.BlockSpec((1, rC), lambda i: (0, 0)),
        ],
        out_specs=pl.BlockSpec((tmp, rC), lambda i: (i, 0)),
        compiler_params=pltpu.CompilerParams(
            dimension_semantics=("parallel",),
            vmem_limit_bytes=VMEM_LIMIT),
    )(y_p, scale_p, shift_p)
    return _unpack_output(out_p, m)


def _conv_sigmoid_head(x, w):
    """Final 4x4 valid conv to a single logit per sample + exact sigmoid."""
    N = x.shape[0]
    cout = w.shape[0]
    k = w.shape[2]
    patches, _, _ = _extract_patches(x.astype(jnp.bfloat16), k, 1, 0)  # (N, K)
    K = patches.shape[1]
    w2d = _weight_matrix(w).astype(jnp.bfloat16)             # (K, 1)
    out = pl.pallas_call(
        _matmul_sigmoid_kernel,
        out_shape=jax.ShapeDtypeStruct((N, cout), jnp.float32),
        grid=(1,),
        in_specs=[
            pl.BlockSpec((N, K), lambda i: (0, 0)),
            pl.BlockSpec((K, cout), lambda i: (0, 0)),
        ],
        out_specs=pl.BlockSpec((N, cout), lambda i: (0, 0)),
        compiler_params=pltpu.CompilerParams(vmem_limit_bytes=VMEM_LIMIT),
    )(patches, w2d)
    return out                                               # (N, 1)


# ----------------------------------------------------------------------------
# Discriminator forward
# ----------------------------------------------------------------------------
@jax.jit
def discriminator_forward(x_nchw, params):
    x = jnp.transpose(x_nchw, (0, 2, 3, 1)).astype(jnp.bfloat16)  # NCHW->NHWC
    x = _conv_lrelu(x, params["w1"], 2, 1)
    x = _conv_bn_lrelu(x, params["w2"], params["g2"], params["b2"], 2, 1)
    x = _conv_bn_lrelu(x, params["w3"], params["g3"], params["b3"], 2, 1)
    x = _conv_bn_lrelu(x, params["w4"], params["g4"], params["b4"], 2, 1)
    out = _conv_sigmoid_head(x, params["w5"])                 # (N, 1)
    # output.view(-1, 1).squeeze(1)  ->  (N,)
    return out.reshape(-1)


def init_params(key):
    """DCGAN-style deterministic init: conv ~ N(0, 0.02), BN gamma=1, beta=0."""
    ks = jax.random.split(key, 5)

    def conv_w(k, cout, cin):
        return 0.02 * jax.random.normal(k, (cout, cin, 4, 4), jnp.float32)

    params = {
        "w1": conv_w(ks[0], NDF, NC),
        "w2": conv_w(ks[1], NDF * 2, NDF),
        "g2": jnp.ones((1, NDF * 2), jnp.float32),
        "b2": jnp.zeros((1, NDF * 2), jnp.float32),
        "w3": conv_w(ks[2], NDF * 4, NDF * 2),
        "g3": jnp.ones((1, NDF * 4), jnp.float32),
        "b3": jnp.zeros((1, NDF * 4), jnp.float32),
        "w4": conv_w(ks[3], NDF * 8, NDF * 4),
        "g4": jnp.ones((1, NDF * 8), jnp.float32),
        "b4": jnp.zeros((1, NDF * 8), jnp.float32),
        "w5": conv_w(ks[4], 1, NDF * 8),
    }
    return params


if __name__ == "__main__":
    key = jax.random.PRNGKey(0)
    k_in, k_par = jax.random.split(key)
    # DCGAN discriminator expects 64x64 spatial input (64->32->16->8->4->1).
    x = jax.random.normal(k_in, (2, NC, 64, 64), jnp.float32)
    params = init_params(k_par)

    out = discriminator_forward(x, params)
    out = jax.block_until_ready(out)
    assert out.shape == (2,), out.shape
    assert bool(jnp.all(jnp.isfinite(out)))
    assert bool(jnp.all((out >= 0.0) & (out <= 1.0)))
    print("KERNEL_OK")
</pallas_src>

<mosaic_0001>
module attributes {stable_mosaic.version = 11 : i64} {
  func.func @_matmul_lrelu_kernel(%arg0: i32, %arg1: memref<128x768xbf16, #tpu.memory_space<vmem>>, %arg2: memref<768x128xbf16, #tpu.memory_space<vmem>>, %arg3: memref<128x128xbf16, #tpu.memory_space<vmem>>) attributes {dimension_semantics = [#tpu.dimension_semantics<parallel>], iteration_bounds = array<i64: 1>, scalar_prefetch = 0 : i64, scratch_operands = 0 : i64, tpu.core_type = #tpu.core_type<tc>, window_params = [{transform_indices = @transform_0, window_bounds = array<i64: 128, 768>}, {pipeline_mode = #tpu.pipeline_mode<synchronous>, transform_indices = @transform_1, window_bounds = array<i64: 768, 128>}, {transform_indices = @transform_2, window_bounds = array<i64: 128, 128>}]} {
    %c0 = arith.constant 0 : index
    %c0_0 = arith.constant 0 : index
    %0 = vector.load %arg1[%c0, %c0_0] : memref<128x768xbf16, #tpu.memory_space<vmem>>, vector<128x768xbf16>
    %c0_1 = arith.constant 0 : index
    %c0_2 = arith.constant 0 : index
    %1 = vector.load %arg2[%c0_1, %c0_2] : memref<768x128xbf16, #tpu.memory_space<vmem>>, vector<768x128xbf16>
    %cst = arith.constant dense<0.000000e+00> : vector<128x128xf32>
    %2 = tpu.matmul %0, %1, %cst {dimension_numbers = #tpu.dot_dimension_numbers<[1], [0], [0], [1], [0, 0, 1, 1], [], []>} : vector<128x768xbf16>, vector<768x128xbf16>, vector<128x128xf32> -> vector<128x128xf32>
    %cst_3 = arith.constant 0.000000e+00 : f32
    %3 = vector.broadcast %cst_3 : f32 to vector<128x128xf32>
    %4 = arith.cmpf ogt, %2, %3 : vector<128x128xf32>
    %cst_4 = arith.constant 2.000000e-01 : f32
    %5 = vector.broadcast %cst_4 : f32 to vector<128x128xf32>
    %6 = arith.mulf %5, %2 : vector<128x128xf32>
    %7 = arith.select %4, %2, %6 : vector<128x128xi1>, vector<128x128xf32>
    %8 = arith.truncf %7 : vector<128x128xf32> to vector<128x128xbf16>
    %c0_5 = arith.constant 0 : index
    %c0_6 = arith.constant 0 : index
    %9 = vector.load %arg3[%c0_5, %c0_6] : memref<128x128xbf16, #tpu.memory_space<vmem>>, vector<128x128xbf16>
    tpu.vector_store %arg3[%c0_5, %c0_6], %8 {strides = array<i32>} : memref<128x128xbf16, #tpu.memory_space<vmem>>, vector<128x128xbf16>,
    return
  }
  func.func @transform_0(%arg0: i32) -> (i32, i32) {
    %c0_i32 = arith.constant 0 : i32
    %c0_i32_0 = arith.constant 0 : i32
    return %arg0, %c0_i32 : i32, i32
  }
  func.func @transform_1(%arg0: i32) -> (i32, i32) {
    %c0_i32 = arith.constant 0 : i32
    %c0_i32_0 = arith.constant 0 : i32
    %c0_i32_1 = arith.constant 0 : i32
    return %c0_i32, %c0_i32_0 : i32, i32
  }
  func.func @transform_2(%arg0: i32) -> (i32, i32) {
    %c0_i32 = arith.constant 0 : i32
    %c0_i32_0 = arith.constant 0 : i32
    return %arg0, %c0_i32 : i32, i32
  }
}

module attributes {stable_mosaic.version = 11 : i64} {
  func.func @_matmul_stats_kernel(%arg0: i32, %arg1: i32, %arg2: memref<64x1024xbf16, #tpu.memory_space<vmem>>, %arg3: memref<1024x128xbf16, #tpu.memory_space<vmem>>, %arg4: memref<64x128xbf16, #tpu.memory_space<vmem>>, %arg5: memref<8x128xf32, #tpu.memory_space<vmem>>, %arg6: memref<8x128xf32, #tpu.memory_space<vmem>>) attributes {dimension_semantics = [#tpu.dimension_semantics<parallel>, #tpu.dimension_semantics<arbitrary>], iteration_bounds = array<i64: 1, 1>, scalar_prefetch = 0 : i64, scratch_operands = 0 : i64, tpu.core_type = #tpu.core_type<tc>, window_params = [{transform_indices = @transform_0, window_bounds = array<i64: 64, 1024>}, {pipeline_mode = #tpu.pipeline_mode<synchronous>, transform_indices = @transform_1, window_bounds = array<i64: 1024, 128>}, {transform_indices = @transform_2, window_bounds = array<i64: 64, 128>}, {transform_indices = @transform_3, window_bounds = array<i64: 8, 128>}, {transform_indices = @transform_4, window_bounds = array<i64: 8, 128>}]} {
    %c0_i32 = arith.constant 0 : i32
    %0 = arith.cmpi eq, %arg1, %c0_i32 : i32
    %1 = arith.extui %0 : i1 to i32
    %c0_i32_0 = arith.constant 0 : i32
    %2 = arith.cmpi ne, %1, %c0_i32_0 : i32
    scf.if %2 {
      %cst_16 = arith.constant 0.000000e+00 : f32
      %21 = vector.broadcast %cst_16 : f32 to vector<8x128xf32>
      %c0_17 = arith.constant 0 : index
      %c0_18 = arith.constant 0 : index
      %22 = vector.load %arg5[%c0_17, %c0_18] : memref<8x128xf32, #tpu.memory_space<vmem>>, vector<8x128xf32>
      tpu.vector_store %arg5[%c0_17, %c0_18], %21 {strides = array<i32>} : memref<8x128xf32, #tpu.memory_space<vmem>>, vector<8x128xf32>,
      %cst_19 = arith.constant 0.000000e+00 : f32
      %23 = vector.broadcast %cst_19 : f32 to vector<8x128xf32>
      %c0_20 = arith.constant 0 : index
      %c0_21 = arith.constant 0 : index
      %24 = vector.load %arg6[%c0_20, %c0_21] : memref<8x128xf32, #tpu.memory_space<vmem>>, vector<8x128xf32>
      tpu.vector_store %arg6[%c0_20, %c0_21], %23 {strides = array<i32>} : memref<8x128xf32, #tpu.memory_space<vmem>>, vector<8x128xf32>,
    } else {
    }
    %c0 = arith.constant 0 : index
    %c0_1 = arith.constant 0 : index
    %3 = vector.load %arg2[%c0, %c0_1] : memref<64x1024xbf16, #tpu.memory_space<vmem>>, vector<64x1024xbf16>
    %c0_2 = arith.constant 0 : index
    %c0_3 = arith.constant 0 : index
    %4 = vector.load %arg3[%c0_2, %c0_3] : memref<1024x128xbf16, #tpu.memory_space<vmem>>, vector<1024x128xbf16>
    %cst = arith.constant dense<0.000000e+00> : vector<64x128xf32>
    %5 = tpu.matmul %3, %4, %cst {dimension_numbers = #tpu.dot_dimension_numbers<[1], [0], [0], [1], [0, 0, 1, 1], [], []>} : vector<64x1024xbf16>, vector<1024x128xbf16>, vector<64x128xf32> -> vector<64x128xf32>
    %6 = arith.truncf %5 : vector<64x128xf32> to vector<64x128xbf16>
    %c0_4 = arith.constant 0 : index
    %c0_5 = arith.constant 0 : index
    %7 = vector.load %arg4[%c0_4, %c0_5] : memref<64x128xbf16, #tpu.memory_space<vmem>>, vector<64x128xbf16>
    tpu.vector_store %arg4[%c0_4, %c0_5], %6 {strides = array<i32>} : memref<64x128xbf16, #tpu.memory_space<vmem>>, vector<64x128xbf16>,
    %c0_6 = arith.constant 0 : index
    %c0_7 = arith.constant 0 : index
    %8 = vector.load %arg5[%c0_6, %c0_7] : memref<8x128xf32, #tpu.memory_space<vmem>>, vector<8x128xf32>
    %cst_8 = arith.constant dense<0.000000e+00> : vector<128xf32>
    %9 = vector.multi_reduction <add>, %5, %cst_8 [0] : vector<64x128xf32> to vector<128xf32>
    %10 = vector.shape_cast %9 : vector<128xf32> to vector<1x128xf32>
    %11 = vector.broadcast %10 : vector<1x128xf32> to vector<8x128xf32>
    %12 = arith.addf %8, %11 : vector<8x128xf32>
    %c0_9 = arith.constant 0 : index
    %c0_10 = arith.constant 0 : index
    %13 = vector.load %arg5[%c0_9, %c0_10] : memref<8x128xf32, #tpu.memory_space<vmem>>, vector<8x128xf32>
    tpu.vector_store %arg5[%c0_9, %c0_10], %12 {strides = array<i32>} : memref<8x128xf32, #tpu.memory_space<vmem>>, vector<8x128xf32>,
    %c0_11 = arith.constant 0 : index
    %c0_12 = arith.constant 0 : index
    %14 = vector.load %arg6[%c0_11, %c0_12] : memref<8x128xf32, #tpu.memory_space<vmem>>, vector<8x128xf32>
    %15 = arith.mulf %5, %5 : vector<64x128xf32>
    %cst_13 = arith.constant dense<0.000000e+00> : vector<128xf32>
    %16 = vector.multi_reduction <add>, %15, %cst_13 [0] : vector<64x128xf32> to vector<128xf32>
    %17 = vector.shape_cast %16 : vector<128xf32> to vector<1x128xf32>
    %18 = vector.broadcast %17 : vector<1x128xf32> to vector<8x128xf32>
    %19 = arith.addf %14, %18 : vector<8x128xf32>
    %c0_14 = arith.constant 0 : index
    %c0_15 = arith.constant 0 : index
    %20 = vector.load %arg6[%c0_14, %c0_15] : memref<8x128xf32, #tpu.memory_space<vmem>>, vector<8x128xf32>
    tpu.vector_store %arg6[%c0_14, %c0_15], %19 {strides = array<i32>} : memref<8x128xf32, #tpu.memory_space<vmem>>, vector<8x128xf32>,
    return
  }
  func.func @transform_0(%arg0: i32, %arg1: i32) -> (i32, i32) {
    %c1_i32 = arith.constant 1 : i32
    %0 = arith.muli %arg0, %c1_i32 : i32
    %1 = arith.addi %0, %arg1 : i32
    %c0_i32 = arith.constant 0 : i32
    %c0_i32_0 = arith.constant 0 : i32
    return %1, %c0_i32 : i32, i32
  }
  func.func @transform_1(%arg0: i32, %arg1: i32) -> (i32, i32) {
    %c0_i32 = arith.constant 0 : i32
    %c0_i32_0 = arith.constant 0 : i32
    %c0_i32_1 = arith.constant 0 : i32
    return %c0_i32, %c0_i32_0 : i32, i32
  }
  func.func @transform_2(%arg0: i32, %arg1: i32) -> (i32, i32) {
    %c1_i32 = arith.constant 1 : i32
    %0 = arith.muli %arg0, %c1_i32 : i32
    %1 = arith.addi %0, %arg1 : i32
    %c0_i32 = arith.constant 0 : i32
    %c0_i32_0 = arith.constant 0 : i32
    return %1, %c0_i32 : i32, i32
  }
  func.func @transform_3(%arg0: i32, %arg1: i32) -> (i32, i32) {
    %c0_i32 = arith.constant 0 : i32
    %c0_i32_0 = arith.constant 0 : i32
    return %arg0, %c0_i32 : i32, i32
  }
  func.func @transform_4(%arg0: i32, %arg1: i32) -> (i32, i32) {
    %c0_i32 = arith.constant 0 : i32
    %c0_i32_0 = arith.constant 0 : i32
    return %arg0, %c0_i32 : i32, i32
  }
}

module attributes {stable_mosaic.version = 11 : i64} {
  func.func @_bn_lrelu_kernel(%arg0: i32, %arg1: memref<64x128xbf16, #tpu.memory_space<vmem>>, %arg2: memref<1x128xf32, #tpu.memory_space<vmem>>, %arg3: memref<1x128xf32, #tpu.memory_space<vmem>>, %arg4: memref<64x128xbf16, #tpu.memory_space<vmem>>) attributes {dimension_semantics = [#tpu.dimension_semantics<parallel>], iteration_bounds = array<i64: 1>, scalar_prefetch = 0 : i64, scratch_operands = 0 : i64, tpu.core_type = #tpu.core_type<tc>, window_params = [{transform_indices = @transform_0, window_bounds = array<i64: 64, 128>}, {pipeline_mode = #tpu.pipeline_mode<synchronous>, transform_indices = @transform_1, window_bounds = array<i64: 1, 128>}, {pipeline_mode = #tpu.pipeline_mode<synchronous>, transform_indices = @transform_2, window_bounds = array<i64: 1, 128>}, {transform_indices = @transform_3, window_bounds = array<i64: 64, 128>}]} {
    %c0 = arith.constant 0 : index
    %c0_0 = arith.constant 0 : index
    %0 = vector.load %arg1[%c0, %c0_0] : memref<64x128xbf16, #tpu.memory_space<vmem>>, vector<64x128xbf16>
    %1 = arith.extf %0 : vector<64x128xbf16> to vector<64x128xf32>
    %c0_1 = arith.constant 0 : index
    %c0_2 = arith.constant 0 : index
    %2 = vector.load %arg2[%c0_1, %c0_2] : memref<1x128xf32, #tpu.memory_space<vmem>>, vector<1x128xf32>
    %3 = vector.broadcast %2 : vector<1x128xf32> to vector<64x128xf32>
    %4 = arith.mulf %1, %3 : vector<64x128xf32>
    %c0_3 = arith.constant 0 : index
    %c0_4 = arith.constant 0 : index
    %5 = vector.load %arg3[%c0_3, %c0_4] : memref<1x128xf32, #tpu.memory_space<vmem>>, vector<1x128xf32>
    %6 = vector.broadcast %5 : vector<1x128xf32> to vector<64x128xf32>
    %7 = arith.addf %4, %6 : vector<64x128xf32>
    %cst = arith.constant 0.000000e+00 : f32
    %8 = vector.broadcast %cst : f32 to vector<64x128xf32>
    %9 = arith.cmpf ogt, %7, %8 : vector<64x128xf32>
    %cst_5 = arith.constant 2.000000e-01 : f32
    %10 = vector.broadcast %cst_5 : f32 to vector<64x128xf32>
    %11 = arith.mulf %10, %7 : vector<64x128xf32>
    %12 = arith.select %9, %7, %11 : vector<64x128xi1>, vector<64x128xf32>
    %13 = arith.truncf %12 : vector<64x128xf32> to vector<64x128xbf16>
    %c0_6 = arith.constant 0 : index
    %c0_7 = arith.constant 0 : index
    %14 = vector.load %arg4[%c0_6, %c0_7] : memref<64x128xbf16, #tpu.memory_space<vmem>>, vector<64x128xbf16>
    tpu.vector_store %arg4[%c0_6, %c0_7], %13 {strides = array<i32>} : memref<64x128xbf16, #tpu.memory_space<vmem>>, vector<64x128xbf16>,
    return
  }
  func.func @transform_0(%arg0: i32) -> (i32, i32) {
    %c0_i32 = arith.constant 0 : i32
    %c0_i32_0 = arith.constant 0 : i32
    return %arg0, %c0_i32 : i32, i32
  }
  func.func @transform_1(%arg0: i32) -> (i32, i32) {
    %c0_i32 = arith.constant 0 : i32
    %c0_i32_0 = arith.constant 0 : i32
    %c0_i32_1 = arith.constant 0 : i32
    return %c0_i32, %c0_i32_0 : i32, i32
  }
  func.func @transform_2(%arg0: i32) -> (i32, i32) {
    %c0_i32 = arith.constant 0 : i32
    %c0_i32_0 = arith.constant 0 : i32
    %c0_i32_1 = arith.constant 0 : i32
    return %c0_i32, %c0_i32_0 : i32, i32
  }
  func.func @transform_3(%arg0: i32) -> (i32, i32) {
    %c0_i32 = arith.constant 0 : i32
    %c0_i32_0 = arith.constant 0 : i32
    return %arg0, %c0_i32 : i32, i32
  }
}

module attributes {stable_mosaic.version = 11 : i64} {
  func.func @_matmul_stats_kernel(%arg0: i32, %arg1: i32, %arg2: memref<32x1024xbf16, #tpu.memory_space<vmem>>, %arg3: memref<1024x128xbf16, #tpu.memory_space<vmem>>, %arg4: memref<32x128xbf16, #tpu.memory_space<vmem>>, %arg5: memref<8x128xf32, #tpu.memory_space<vmem>>, %arg6: memref<8x128xf32, #tpu.memory_space<vmem>>) attributes {dimension_semantics = [#tpu.dimension_semantics<parallel>, #tpu.dimension_semantics<arbitrary>], iteration_bounds = array<i64: 1, 1>, scalar_prefetch = 0 : i64, scratch_operands = 0 : i64, tpu.core_type = #tpu.core_type<tc>, window_params = [{transform_indices = @transform_0, window_bounds = array<i64: 32, 1024>}, {pipeline_mode = #tpu.pipeline_mode<synchronous>, transform_indices = @transform_1, window_bounds = array<i64: 1024, 128>}, {transform_indices = @transform_2, window_bounds = array<i64: 32, 128>}, {transform_indices = @transform_3, window_bounds = array<i64: 8, 128>}, {transform_indices = @transform_4, window_bounds = array<i64: 8, 128>}]} {
    %c0_i32 = arith.constant 0 : i32
    %0 = arith.cmpi eq, %arg1, %c0_i32 : i32
    %1 = arith.extui %0 : i1 to i32
    %c0_i32_0 = arith.constant 0 : i32
    %2 = arith.cmpi ne, %1, %c0_i32_0 : i32
    scf.if %2 {
      %cst_16 = arith.constant 0.000000e+00 : f32
      %21 = vector.broadcast %cst_16 : f32 to vector<8x128xf32>
      %c0_17 = arith.constant 0 : index
      %c0_18 = arith.constant 0 : index
      %22 = vector.load %arg5[%c0_17, %c0_18] : memref<8x128xf32, #tpu.memory_space<vmem>>, vector<8x128xf32>
      tpu.vector_store %arg5[%c0_17, %c0_18], %21 {strides = array<i32>} : memref<8x128xf32, #tpu.memory_space<vmem>>, vector<8x128xf32>,
      %cst_19 = arith.constant 0.000000e+00 : f32
      %23 = vector.broadcast %cst_19 : f32 to vector<8x128xf32>
      %c0_20 = arith.constant 0 : index
      %c0_21 = arith.constant 0 : index
      %24 = vector.load %arg6[%c0_20, %c0_21] : memref<8x128xf32, #tpu.memory_space<vmem>>, vector<8x128xf32>
      tpu.vector_store %arg6[%c0_20, %c0_21], %23 {strides = array<i32>} : memref<8x128xf32, #tpu.memory_space<vmem>>, vector<8x128xf32>,
    } else {
    }
    %c0 = arith.constant 0 : index
    %c0_1 = arith.constant 0 : index
    %3 = vector.load %arg2[%c0, %c0_1] : memref<32x1024xbf16, #tpu.memory_space<vmem>>, vector<32x1024xbf16>
    %c0_2 = arith.constant 0 : index
    %c0_3 = arith.constant 0 : index
    %4 = vector.load %arg3[%c0_2, %c0_3] : memref<1024x128xbf16, #tpu.memory_space<vmem>>, vector<1024x128xbf16>
    %cst = arith.constant dense<0.000000e+00> : vector<32x128xf32>
    %5 = tpu.matmul %3, %4, %cst {dimension_numbers = #tpu.dot_dimension_numbers<[1], [0], [0], [1], [0, 0, 1, 1], [], []>} : vector<32x1024xbf16>, vector<1024x128xbf16>, vector<32x128xf32> -> vector<32x128xf32>
    %6 = arith.truncf %5 : vector<32x128xf32> to vector<32x128xbf16>
    %c0_4 = arith.constant 0 : index
    %c0_5 = arith.constant 0 : index
    %7 = vector.load %arg4[%c0_4, %c0_5] : memref<32x128xbf16, #tpu.memory_space<vmem>>, vector<32x128xbf16>
    tpu.vector_store %arg4[%c0_4, %c0_5], %6 {strides = array<i32>} : memref<32x128xbf16, #tpu.memory_space<vmem>>, vector<32x128xbf16>,
    %c0_6 = arith.constant 0 : index
    %c0_7 = arith.constant 0 : index
    %8 = vector.load %arg5[%c0_6, %c0_7] : memref<8x128xf32, #tpu.memory_space<vmem>>, vector<8x128xf32>
    %cst_8 = arith.constant dense<0.000000e+00> : vector<128xf32>
    %9 = vector.multi_reduction <add>, %5, %cst_8 [0] : vector<32x128xf32> to vector<128xf32>
    %10 = vector.shape_cast %9 : vector<128xf32> to vector<1x128xf32>
    %11 = vector.broadcast %10 : vector<1x128xf32> to vector<8x128xf32>
    %12 = arith.addf %8, %11 : vector<8x128xf32>
    %c0_9 = arith.constant 0 : index
    %c0_10 = arith.constant 0 : index
    %13 = vector.load %arg5[%c0_9, %c0_10] : memref<8x128xf32, #tpu.memory_space<vmem>>, vector<8x128xf32>
    tpu.vector_store %arg5[%c0_9, %c0_10], %12 {strides = array<i32>} : memref<8x128xf32, #tpu.memory_space<vmem>>, vector<8x128xf32>,
    %c0_11 = arith.constant 0 : index
    %c0_12 = arith.constant 0 : index
    %14 = vector.load %arg6[%c0_11, %c0_12] : memref<8x128xf32, #tpu.memory_space<vmem>>, vector<8x128xf32>
    %15 = arith.mulf %5, %5 : vector<32x128xf32>
    %cst_13 = arith.constant dense<0.000000e+00> : vector<128xf32>
    %16 = vector.multi_reduction <add>, %15, %cst_13 [0] : vector<32x128xf32> to vector<128xf32>
    %17 = vector.shape_cast %16 : vector<128xf32> to vector<1x128xf32>
    %18 = vector.broadcast %17 : vector<1x128xf32> to vector<8x128xf32>
    %19 = arith.addf %14, %18 : vector<8x128xf32>
    %c0_14 = arith.constant 0 : index
    %c0_15 = arith.constant 0 : index
    %20 = vector.load %arg6[%c0_14, %c0_15] : memref<8x128xf32, #tpu.memory_space<vmem>>, vector<8x128xf32>
    tpu.vector_store %arg6[%c0_14, %c0_15], %19 {strides = array<i32>} : memref<8x128xf32, #tpu.memory_space<vmem>>, vector<8x128xf32>,
    return
  }
  func.func @transform_0(%arg0: i32, %arg1: i32) -> (i32, i32) {
    %c1_i32 = arith.constant 1 : i32
    %0 = arith.muli %arg0, %c1_i32 : i32
    %1 = arith.addi %0, %arg1 : i32
    %c0_i32 = arith.constant 0 : i32
    %c0_i32_0 = arith.constant 0 : i32
    return %1, %c0_i32 : i32, i32
  }
  func.func @transform_1(%arg0: i32, %arg1: i32) -> (i32, i32) {
    %c0_i32 = arith.constant 0 : i32
    %c0_i32_0 = arith.constant 0 : i32
    %c0_i32_1 = arith.constant 0 : i32
    return %c0_i32, %c0_i32_0 : i32, i32
  }
  func.func @transform_2(%arg0: i32, %arg1: i32) -> (i32, i32) {
    %c1_i32 = arith.constant 1 : i32
    %0 = arith.muli %arg0, %c1_i32 : i32
    %1 = arith.addi %0, %arg1 : i32
    %c0_i32 = arith.constant 0 : i32
    %c0_i32_0 = arith.constant 0 : i32
    return %1, %c0_i32 : i32, i32
  }
  func.func @transform_3(%arg0: i32, %arg1: i32) -> (i32, i32) {
    %c0_i32 = arith.constant 0 : i32
    %c0_i32_0 = arith.constant 0 : i32
    return %arg0, %c0_i32 : i32, i32
  }
  func.func @transform_4(%arg0: i32, %arg1: i32) -> (i32, i32) {
    %c0_i32 = arith.constant 0 : i32
    %c0_i32_0 = arith.constant 0 : i32
    return %arg0, %c0_i32 : i32, i32
  }
}

module attributes {stable_mosaic.version = 11 : i64} {
  func.func @_bn_lrelu_kernel(%arg0: i32, %arg1: memref<32x128xbf16, #tpu.memory_space<vmem>>, %arg2: memref<1x128xf32, #tpu.memory_space<vmem>>, %arg3: memref<1x128xf32, #tpu.memory_space<vmem>>, %arg4: memref<32x128xbf16, #tpu.memory_space<vmem>>) attributes {dimension_semantics = [#tpu.dimension_semantics<parallel>], iteration_bounds = array<i64: 1>, scalar_prefetch = 0 : i64, scratch_operands = 0 : i64, tpu.core_type = #tpu.core_type<tc>, window_params = [{transform_indices = @transform_0, window_bounds = array<i64: 32, 128>}, {pipeline_mode = #tpu.pipeline_mode<synchronous>, transform_indices = @transform_1, window_bounds = array<i64: 1, 128>}, {pipeline_mode = #tpu.pipeline_mode<synchronous>, transform_indices = @transform_2, window_bounds = array<i64: 1, 128>}, {transform_indices = @transform_3, window_bounds = array<i64: 32, 128>}]} {
    %c0 = arith.constant 0 : index
    %c0_0 = arith.constant 0 : index
    %0 = vector.load %arg1[%c0, %c0_0] : memref<32x128xbf16, #tpu.memory_space<vmem>>, vector<32x128xbf16>
    %1 = arith.extf %0 : vector<32x128xbf16> to vector<32x128xf32>
    %c0_1 = arith.constant 0 : index
    %c0_2 = arith.constant 0 : index
    %2 = vector.load %arg2[%c0_1, %c0_2] : memref<1x128xf32, #tpu.memory_space<vmem>>, vector<1x128xf32>
    %3 = vector.broadcast %2 : vector<1x128xf32> to vector<32x128xf32>
    %4 = arith.mulf %1, %3 : vector<32x128xf32>
    %c0_3 = arith.constant 0 : index
    %c0_4 = arith.constant 0 : index
    %5 = vector.load %arg3[%c0_3, %c0_4] : memref<1x128xf32, #tpu.memory_space<vmem>>, vector<1x128xf32>
    %6 = vector.broadcast %5 : vector<1x128xf32> to vector<32x128xf32>
    %7 = arith.addf %4, %6 : vector<32x128xf32>
    %cst = arith.constant 0.000000e+00 : f32
    %8 = vector.broadcast %cst : f32 to vector<32x128xf32>
    %9 = arith.cmpf ogt, %7, %8 : vector<32x128xf32>
    %cst_5 = arith.constant 2.000000e-01 : f32
    %10 = vector.broadcast %cst_5 : f32 to vector<32x128xf32>
    %11 = arith.mulf %10, %7 : vector<32x128xf32>
    %12 = arith.select %9, %7, %11 : vector<32x128xi1>, vector<32x128xf32>
    %13 = arith.truncf %12 : vector<32x128xf32> to vector<32x128xbf16>
    %c0_6 = arith.constant 0 : index
    %c0_7 = arith.constant 0 : index
    %14 = vector.load %arg4[%c0_6, %c0_7] : memref<32x128xbf16, #tpu.memory_space<vmem>>, vector<32x128xbf16>
    tpu.vector_store %arg4[%c0_6, %c0_7], %13 {strides = array<i32>} : memref<32x128xbf16, #tpu.memory_space<vmem>>, vector<32x128xbf16>,
    return
  }
  func.func @transform_0(%arg0: i32) -> (i32, i32) {
    %c0_i32 = arith.constant 0 : i32
    %c0_i32_0 = arith.constant 0 : i32
    return %arg0, %c0_i32 : i32, i32
  }
  func.func @transform_1(%arg0: i32) -> (i32, i32) {
    %c0_i32 = arith.constant 0 : i32
    %c0_i32_0 = arith.constant 0 : i32
    %c0_i32_1 = arith.constant 0 : i32
    return %c0_i32, %c0_i32_0 : i32, i32
  }
  func.func @transform_2(%arg0: i32) -> (i32, i32) {
    %c0_i32 = arith.constant 0 : i32
    %c0_i32_0 = arith.constant 0 : i32
    %c0_i32_1 = arith.constant 0 : i32
    return %c0_i32, %c0_i32_0 : i32, i32
  }
  func.func @transform_3(%arg0: i32) -> (i32, i32) {
    %c0_i32 = arith.constant 0 : i32
    %c0_i32_0 = arith.constant 0 : i32
    return %arg0, %c0_i32 : i32, i32
  }
}

module attributes {stable_mosaic.version = 11 : i64} {
  func.func @_matmul_stats_kernel(%arg0: i32, %arg1: i32, %arg2: memref<16x1024xbf16, #tpu.memory_space<vmem>>, %arg3: memref<1024x128xbf16, #tpu.memory_space<vmem>>, %arg4: memref<16x128xbf16, #tpu.memory_space<vmem>>, %arg5: memref<8x128xf32, #tpu.memory_space<vmem>>, %arg6: memref<8x128xf32, #tpu.memory_space<vmem>>) attributes {dimension_semantics = [#tpu.dimension_semantics<parallel>, #tpu.dimension_semantics<arbitrary>], iteration_bounds = array<i64: 1, 1>, scalar_prefetch = 0 : i64, scratch_operands = 0 : i64, tpu.core_type = #tpu.core_type<tc>, window_params = [{transform_indices = @transform_0, window_bounds = array<i64: 16, 1024>}, {pipeline_mode = #tpu.pipeline_mode<synchronous>, transform_indices = @transform_1, window_bounds = array<i64: 1024, 128>}, {transform_indices = @transform_2, window_bounds = array<i64: 16, 128>}, {transform_indices = @transform_3, window_bounds = array<i64: 8, 128>}, {transform_indices = @transform_4, window_bounds = array<i64: 8, 128>}]} {
    %c0_i32 = arith.constant 0 : i32
    %0 = arith.cmpi eq, %arg1, %c0_i32 : i32
    %1 = arith.extui %0 : i1 to i32
    %c0_i32_0 = arith.constant 0 : i32
    %2 = arith.cmpi ne, %1, %c0_i32_0 : i32
    scf.if %2 {
      %cst_16 = arith.constant 0.000000e+00 : f32
      %21 = vector.broadcast %cst_16 : f32 to vector<8x128xf32>
      %c0_17 = arith.constant 0 : index
      %c0_18 = arith.constant 0 : index
      %22 = vector.load %arg5[%c0_17, %c0_18] : memref<8x128xf32, #tpu.memory_space<vmem>>, vector<8x128xf32>
      tpu.vector_store %arg5[%c0_17, %c0_18], %21 {strides = array<i32>} : memref<8x128xf32, #tpu.memory_space<vmem>>, vector<8x128xf32>,
      %cst_19 = arith.constant 0.000000e+00 : f32
      %23 = vector.broadcast %cst_19 : f32 to vector<8x128xf32>
      %c0_20 = arith.constant 0 : index
      %c0_21 = arith.constant 0 : index
      %24 = vector.load %arg6[%c0_20, %c0_21] : memref<8x128xf32, #tpu.memory_space<vmem>>, vector<8x128xf32>
      tpu.vector_store %arg6[%c0_20, %c0_21], %23 {strides = array<i32>} : memref<8x128xf32, #tpu.memory_space<vmem>>, vector<8x128xf32>,
    } else {
    }
    %c0 = arith.constant 0 : index
    %c0_1 = arith.constant 0 : index
    %3 = vector.load %arg2[%c0, %c0_1] : memref<16x1024xbf16, #tpu.memory_space<vmem>>, vector<16x1024xbf16>
    %c0_2 = arith.constant 0 : index
    %c0_3 = arith.constant 0 : index
    %4 = vector.load %arg3[%c0_2, %c0_3] : memref<1024x128xbf16, #tpu.memory_space<vmem>>, vector<1024x128xbf16>
    %cst = arith.constant dense<0.000000e+00> : vector<16x128xf32>
    %5 = tpu.matmul %3, %4, %cst {dimension_numbers = #tpu.dot_dimension_numbers<[1], [0], [0], [1], [0, 0, 1, 1], [], []>} : vector<16x1024xbf16>, vector<1024x128xbf16>, vector<16x128xf32> -> vector<16x128xf32>
    %6 = arith.truncf %5 : vector<16x128xf32> to vector<16x128xbf16>
    %c0_4 = arith.constant 0 : index
    %c0_5 = arith.constant 0 : index
    %7 = vector.load %arg4[%c0_4, %c0_5] : memref<16x128xbf16, #tpu.memory_space<vmem>>, vector<16x128xbf16>
    tpu.vector_store %arg4[%c0_4, %c0_5], %6 {strides = array<i32>} : memref<16x128xbf16, #tpu.memory_space<vmem>>, vector<16x128xbf16>,
    %c0_6 = arith.constant 0 : index
    %c0_7 = arith.constant 0 : index
    %8 = vector.load %arg5[%c0_6, %c0_7] : memref<8x128xf32, #tpu.memory_space<vmem>>, vector<8x128xf32>
    %cst_8 = arith.constant dense<0.000000e+00> : vector<128xf32>
    %9 = vector.multi_reduction <add>, %5, %cst_8 [0] : vector<16x128xf32> to vector<128xf32>
    %10 = vector.shape_cast %9 : vector<128xf32> to vector<1x128xf32>
    %11 = vector.broadcast %10 : vector<1x128xf32> to vector<8x128xf32>
    %12 = arith.addf %8, %11 : vector<8x128xf32>
    %c0_9 = arith.constant 0 : index
    %c0_10 = arith.constant 0 : index
    %13 = vector.load %arg5[%c0_9, %c0_10] : memref<8x128xf32, #tpu.memory_space<vmem>>, vector<8x128xf32>
    tpu.vector_store %arg5[%c0_9, %c0_10], %12 {strides = array<i32>} : memref<8x128xf32, #tpu.memory_space<vmem>>, vector<8x128xf32>,
    %c0_11 = arith.constant 0 : index
    %c0_12 = arith.constant 0 : index
    %14 = vector.load %arg6[%c0_11, %c0_12] : memref<8x128xf32, #tpu.memory_space<vmem>>, vector<8x128xf32>
    %15 = arith.mulf %5, %5 : vector<16x128xf32>
    %cst_13 = arith.constant dense<0.000000e+00> : vector<128xf32>
    %16 = vector.multi_reduction <add>, %15, %cst_13 [0] : vector<16x128xf32> to vector<128xf32>
    %17 = vector.shape_cast %16 : vector<128xf32> to vector<1x128xf32>
    %18 = vector.broadcast %17 : vector<1x128xf32> to vector<8x128xf32>
    %19 = arith.addf %14, %18 : vector<8x128xf32>
    %c0_14 = arith.constant 0 : index
    %c0_15 = arith.constant 0 : index
    %20 = vector.load %arg6[%c0_14, %c0_15] : memref<8x128xf32, #tpu.memory_space<vmem>>, vector<8x128xf32>
    tpu.vector_store %arg6[%c0_14, %c0_15], %19 {strides = array<i32>} : memref<8x128xf32, #tpu.memory_space<vmem>>, vector<8x128xf32>,
    return
  }
  func.func @transform_0(%arg0: i32, %arg1: i32) -> (i32, i32) {
    %c1_i32 = arith.constant 1 : i32
    %0 = arith.muli %arg0, %c1_i32 : i32
    %1 = arith.addi %0, %arg1 : i32
    %c0_i32 = arith.constant 0 : i32
    %c0_i32_0 = arith.constant 0 : i32
    return %1, %c0_i32 : i32, i32
  }
  func.func @transform_1(%arg0: i32, %arg1: i32) -> (i32, i32) {
    %c0_i32 = arith.constant 0 : i32
    %c0_i32_0 = arith.constant 0 : i32
    %c0_i32_1 = arith.constant 0 : i32
    return %c0_i32, %c0_i32_0 : i32, i32
  }
  func.func @transform_2(%arg0: i32, %arg1: i32) -> (i32, i32) {
    %c1_i32 = arith.constant 1 : i32
    %0 = arith.muli %arg0, %c1_i32 : i32
    %1 = arith.addi %0, %arg1 : i32
    %c0_i32 = arith.constant 0 : i32
    %c0_i32_0 = arith.constant 0 : i32
    return %1, %c0_i32 : i32, i32
  }
  func.func @transform_3(%arg0: i32, %arg1: i32) -> (i32, i32) {
    %c0_i32 = arith.constant 0 : i32
    %c0_i32_0 = arith.constant 0 : i32
    return %arg0, %c0_i32 : i32, i32
  }
  func.func @transform_4(%arg0: i32, %arg1: i32) -> (i32, i32) {
    %c0_i32 = arith.constant 0 : i32
    %c0_i32_0 = arith.constant 0 : i32
    return %arg0, %c0_i32 : i32, i32
  }
}

module attributes {stable_mosaic.version = 11 : i64} {
  func.func @_bn_lrelu_kernel(%arg0: i32, %arg1: memref<16x128xbf16, #tpu.memory_space<vmem>>, %arg2: memref<1x128xf32, #tpu.memory_space<vmem>>, %arg3: memref<1x128xf32, #tpu.memory_space<vmem>>, %arg4: memref<16x128xbf16, #tpu.memory_space<vmem>>) attributes {dimension_semantics = [#tpu.dimension_semantics<parallel>], iteration_bounds = array<i64: 1>, scalar_prefetch = 0 : i64, scratch_operands = 0 : i64, tpu.core_type = #tpu.core_type<tc>, window_params = [{transform_indices = @transform_0, window_bounds = array<i64: 16, 128>}, {pipeline_mode = #tpu.pipeline_mode<synchronous>, transform_indices = @transform_1, window_bounds = array<i64: 1, 128>}, {pipeline_mode = #tpu.pipeline_mode<synchronous>, transform_indices = @transform_2, window_bounds = array<i64: 1, 128>}, {transform_indices = @transform_3, window_bounds = array<i64: 16, 128>}]} {
    %c0 = arith.constant 0 : index
    %c0_0 = arith.constant 0 : index
    %0 = vector.load %arg1[%c0, %c0_0] : memref<16x128xbf16, #tpu.memory_space<vmem>>, vector<16x128xbf16>
    %1 = arith.extf %0 : vector<16x128xbf16> to vector<16x128xf32>
    %c0_1 = arith.constant 0 : index
    %c0_2 = arith.constant 0 : index
    %2 = vector.load %arg2[%c0_1, %c0_2] : memref<1x128xf32, #tpu.memory_space<vmem>>, vector<1x128xf32>
    %3 = vector.broadcast %2 : vector<1x128xf32> to vector<16x128xf32>
    %4 = arith.mulf %1, %3 : vector<16x128xf32>
    %c0_3 = arith.constant 0 : index
    %c0_4 = arith.constant 0 : index
    %5 = vector.load %arg3[%c0_3, %c0_4] : memref<1x128xf32, #tpu.memory_space<vmem>>, vector<1x128xf32>
    %6 = vector.broadcast %5 : vector<1x128xf32> to vector<16x128xf32>
    %7 = arith.addf %4, %6 : vector<16x128xf32>
    %cst = arith.constant 0.000000e+00 : f32
    %8 = vector.broadcast %cst : f32 to vector<16x128xf32>
    %9 = arith.cmpf ogt, %7, %8 : vector<16x128xf32>
    %cst_5 = arith.constant 2.000000e-01 : f32
    %10 = vector.broadcast %cst_5 : f32 to vector<16x128xf32>
    %11 = arith.mulf %10, %7 : vector<16x128xf32>
    %12 = arith.select %9, %7, %11 : vector<16x128xi1>, vector<16x128xf32>
    %13 = arith.truncf %12 : vector<16x128xf32> to vector<16x128xbf16>
    %c0_6 = arith.constant 0 : index
    %c0_7 = arith.constant 0 : index
    %14 = vector.load %arg4[%c0_6, %c0_7] : memref<16x128xbf16, #tpu.memory_space<vmem>>, vector<16x128xbf16>
    tpu.vector_store %arg4[%c0_6, %c0_7], %13 {strides = array<i32>} : memref<16x128xbf16, #tpu.memory_space<vmem>>, vector<16x128xbf16>,
    return
  }
  func.func @transform_0(%arg0: i32) -> (i32, i32) {
    %c0_i32 = arith.constant 0 : i32
    %c0_i32_0 = arith.constant 0 : i32
    return %arg0, %c0_i32 : i32, i32
  }
  func.func @transform_1(%arg0: i32) -> (i32, i32) {
    %c0_i32 = arith.constant 0 : i32
    %c0_i32_0 = arith.constant 0 : i32
    %c0_i32_1 = arith.constant 0 : i32
    return %c0_i32, %c0_i32_0 : i32, i32
  }
  func.func @transform_2(%arg0: i32) -> (i32, i32) {
    %c0_i32 = arith.constant 0 : i32
    %c0_i32_0 = arith.constant 0 : i32
    %c0_i32_1 = arith.constant 0 : i32
    return %c0_i32, %c0_i32_0 : i32, i32
  }
  func.func @transform_3(%arg0: i32) -> (i32, i32) {
    %c0_i32 = arith.constant 0 : i32
    %c0_i32_0 = arith.constant 0 : i32
    return %arg0, %c0_i32 : i32, i32
  }
}

module attributes {stable_mosaic.version = 11 : i64} {
  func.func @_matmul_sigmoid_kernel(%arg0: i32, %arg1: memref<2x1024xbf16, #tpu.memory_space<vmem>>, %arg2: memref<1024x1xbf16, #tpu.memory_space<vmem>>, %arg3: memref<2x1xf32, #tpu.memory_space<vmem>>) attributes {dimension_semantics = [#tpu.dimension_semantics<arbitrary>], iteration_bounds = array<i64: 1>, scalar_prefetch = 0 : i64, scratch_operands = 0 : i64, tpu.core_type = #tpu.core_type<tc>, window_params = [{pipeline_mode = #tpu.pipeline_mode<synchronous>, transform_indices = @transform_0, window_bounds = array<i64: 2, 1024>}, {pipeline_mode = #tpu.pipeline_mode<synchronous>, transform_indices = @transform_1, window_bounds = array<i64: 1024, 1>}, {pipeline_mode = #tpu.pipeline_mode<synchronous>, transform_indices = @transform_2, window_bounds = array<i64: 2, 1>}]} {
    %c0 = arith.constant 0 : index
    %c0_0 = arith.constant 0 : index
    %0 = vector.load %arg1[%c0, %c0_0] : memref<2x1024xbf16, #tpu.memory_space<vmem>>, vector<2x1024xbf16>
    %c0_1 = arith.constant 0 : index
    %c0_2 = arith.constant 0 : index
    %1 = vector.load %arg2[%c0_1, %c0_2] : memref<1024x1xbf16, #tpu.memory_space<vmem>>, vector<1024x1xbf16>
    %cst = arith.constant dense<0.000000e+00> : vector<2x1xf32>
    %2 = tpu.matmul %0, %1, %cst {dimension_numbers = #tpu.dot_dimension_numbers<[1], [0], [0], [1], [0, 0, 1, 1], [], []>} : vector<2x1024xbf16>, vector<1024x1xbf16>, vector<2x1xf32> -> vector<2x1xf32>
    %cst_3 = arith.constant 0.000000e+00 : f32
    %3 = vector.broadcast %cst_3 : f32 to vector<2x1xf32>
    %4 = arith.subf %3, %2 : vector<2x1xf32>
    %5 = math.exp %4 : vector<2x1xf32>
    %cst_4 = arith.constant 1.000000e+00 : f32
    %6 = vector.broadcast %cst_4 : f32 to vector<2x1xf32>
    %7 = arith.addf %6, %5 : vector<2x1xf32>
    %cst_5 = arith.constant 1.000000e+00 : f32
    %8 = vector.broadcast %cst_5 : f32 to vector<2x1xf32>
    %9 = arith.divf %8, %7 : vector<2x1xf32>
    %c0_6 = arith.constant 0 : index
    %c0_7 = arith.constant 0 : index
    %10 = vector.load %arg3[%c0_6, %c0_7] : memref<2x1xf32, #tpu.memory_space<vmem>>, vector<2x1xf32>
    tpu.vector_store %arg3[%c0_6, %c0_7], %9 {strides = array<i32>} : memref<2x1xf32, #tpu.memory_space<vmem>>, vector<2x1xf32>,
    return
  }
  func.func @transform_0(%arg0: i32) -> (i32, i32) {
    %c0_i32 = arith.constant 0 : i32
    %c0_i32_0 = arith.constant 0 : i32
    %c0_i32_1 = arith.constant 0 : i32
    return %c0_i32, %c0_i32_0 : i32, i32
  }
  func.func @transform_1(%arg0: i32) -> (i32, i32) {
    %c0_i32 = arith.constant 0 : i32
    %c0_i32_0 = arith.constant 0 : i32
    %c0_i32_1 = arith.constant 0 : i32
    return %c0_i32, %c0_i32_0 : i32, i32
  }
  func.func @transform_2(%arg0: i32) -> (i32, i32) {
    %c0_i32 = arith.constant 0 : i32
    %c0_i32_0 = arith.constant 0 : i32
    %c0_i32_1 = arith.constant 0 : i32
    return %c0_i32, %c0_i32_0 : i32, i32
  }
}

</mosaic_0001>

<bundles_post_ra>
// kernel: discriminator_forward.8
= control target key start
LH: loop header
LB: loop body
LE: loop exit
PB: predicated region body
PF: predicated region fallthrough
CT: control target
= control target key end

     0   :  { %s1985_s1 = inlined_call_operand.vmem [shape: bf16[768,128], index: 1, kind: input, shape index: {}]   ;;  %s1986_s0 = inlined_call_operand.vmem [shape: bf16[128,768], index: 0, kind: input, shape index: {}]   ;;  %s1987_s2 = inlined_call_operand.vmem [shape: bf16[128,128], index: 2, kind: output, shape index: {}]  }
   0x1   :  { %v1490_v0 = vld [vmem:[%s1985_s1 + $0x78] sm:$0xff]   ;;  %v1492_v2 = vld [vmem:[%s1985_s1 + $0x70] sm:$0xff]   ;;  %v1494_v4 = vld [vmem:[%s1985_s1 + $0x68] sm:$0xff]  }
   0x2   :  { %v1491_v1 = vld [vmem:[%s1985_s1 + $0x38] sm:$0xff]   ;;  %1282 = vmatprep.subr.bf16.mxu0 %v1490_v0  ;;  %1474 = vmatprep.subr.bf16.mxu1 %v1490_v0  ;;  %v1493_v3 = vld [vmem:[%s1985_s1 + $0x30] sm:$0xff]   ;;  %v1495_v5 = vld [vmem:[%s1985_s1 + $0x28] sm:$0xff]  }
   0x3   :  { %1283 = vmatpush3.bf16.msra.mxu0 %v1491_v1  ;;  %1482 = vmatpush3.bf16.msra.mxu1 %v1491_v1  ;;  %v1496_v6 = vld [vmem:[%s1985_s1 + $0x60] sm:$0xff]   ;;  %v1498_v8 = vld [vmem:[%s1985_s1 + $0x58] sm:$0xff]   ;;  %v1500_v10 = vld [vmem:[%s1985_s1 + $0x50] sm:$0xff]  }
   0x4   :  { %1284 = vmatprep.subr.bf16.mxu0 %v1492_v2  ;;  %1475 = vmatprep.subr.bf16.mxu1 %v1492_v2  ;;  %v1497_v7 = vld [vmem:[%s1985_s1 + $0x20] sm:$0xff]   ;;  %v1499_v9 = vld [vmem:[%s1985_s1 + $0x18] sm:$0xff]   ;;  %v1501_v13 = vld [vmem:[%s1985_s1 + $0x10] sm:$0xff]  }
   0x5   :  { %v1508_v11 = vld [vmem:[%s1986_s0 + $0x4] ss:$24 sps:$4 sm:$0xff]   ;;  %v1502_v14 = vld [vmem:[%s1985_s1 + $0x48] sm:$0xff]   ;;  %v1506_v18 = vld [vmem:[%s1986_s0] ss:$24 sps:$4 sm:$0xff]  }
   0x6   :  { %v1511_v12 = vld [vmem:[%s1986_s0 + $0xc4] ss:$24 sps:$4 sm:$0xff]   ;;  %716 = vmatprep.mubr.bf16.mxu0 %v1508_v11  ;;  %v1503_v15 = vld [vmem:[%s1985_s1 + $0x8] sm:$0xff]   ;;  %v1509_v19 = vld [vmem:[%s1986_s0 + $0xc0] ss:$24 sps:$4 sm:$0xff]  }
   0x7   :  { %1285 = vmatpush3.bf16.msra.mxu0 %v1493_v3  ;;  %1483 = vmatpush3.bf16.msra.mxu1 %v1493_v3  ;;  %v1504_v16 = vld [vmem:[%s1985_s1 + $0x40] sm:$0xff]   ;;  %v1512_v20 = vld [vmem:[%s1985_s1 + $0xf8] sm:$0xff]   ;;  %v1516_v24 = vld [vmem:[%s1985_s1 + $0xf0] sm:$0xff]  }
   0x8   :  { %1286 = vmatprep.subr.bf16.mxu0 %v1494_v4  ;;  %1476 = vmatprep.subr.bf16.mxu1 %v1494_v4  ;;  %v1505_v17 = vld [vmem:[%s1985_s1] sm:$0xff]   ;;  %v1513_v21 = vld [vmem:[%s1985_s1 + $0x178] sm:$0xff]   ;;  %v1517_v25 = vld [vmem:[%s1985_s1 + $0x170] sm:$0xff]  }
   0x9   :  { %748 = vmatprep.mubr.bf16.mxu1 %v1511_v12  ;;  %v1514_v22 = vld [vmem:[%s1985_s1 + $0xb8] sm:$0xff]   ;;  %v1520_v26 = vld [vmem:[%s1986_s0 + $0x34] ss:$24 sps:$4 sm:$0xff]   ;;  %v1524_v31 = vld [vmem:[%s1986_s0 + $0x30] ss:$24 sps:$4 sm:$0xff]  }
   0xa   :  { %v1515_v23 = vld [vmem:[%s1985_s1 + $0x138] sm:$0xff]   ;;  %v1518_v27 = vld [vmem:[%s1985_s1 + $0xb0] sm:$0xff]   ;;  %v1526_v30 = vld [vmem:[%s1985_s1 + $0xe8] sm:$0xff]  }
   0xb   :  { %1287 = vmatpush3.bf16.msra.mxu0 %v1495_v5  ;;  %1484 = vmatpush3.bf16.msra.mxu1 %v1495_v5  ;;  %v1522_v28 = vld [vmem:[%s1986_s0 + $0xf4] ss:$24 sps:$4 sm:$0xff]   ;;  %v1525_v33 = vld [vmem:[%s1986_s0 + $0xf0] ss:$24 sps:$4 sm:$0xff]   ;;  %v1530_v36 = vld [vmem:[%s1985_s1 + $0xe0] sm:$0xff]  }
   0xc   :  { %1288 = vmatprep.subr.bf16.mxu0 %v1496_v6  ;;  %1477 = vmatprep.subr.bf16.mxu1 %v1496_v6  ;;  %v1519_v29 = vld [vmem:[%s1985_s1 + $0x130] sm:$0xff]   ;;  %v1527_v32 = vld [vmem:[%s1985_s1 + $0x168] sm:$0xff]   ;;  %v1531_v37 = vld [vmem:[%s1985_s1 + $0x160] sm:$0xff]  }
   0xd   :  { %v1528_v34 = vld [vmem:[%s1985_s1 + $0xa8] sm:$0xff]   ;;  %v1534_v38 = vld [vmem:[%s1986_s0 + $0x64] ss:$24 sps:$4 sm:$0xff]   ;;  %v1538_v43 = vld [vmem:[%s1986_s0 + $0x60] ss:$24 sps:$4 sm:$0xff]  }
   0xe   :  { %v1529_v35 = vld [vmem:[%s1985_s1 + $0x128] sm:$0xff]   ;;  %v1532_v39 = vld [vmem:[%s1985_s1 + $0xa0] sm:$0xff]   ;;  %v1540_v42 = vld [vmem:[%s1985_s1 + $0xd8] sm:$0xff]  }
   0xf   :  { %1289 = vmatpush3.bf16.msra.mxu0 %v1497_v7  ;;  %1485 = vmatpush3.bf16.msra.mxu1 %v1497_v7  ;;  %v1536_v40 = vld [vmem:[%s1986_s0 + $0x124] ss:$24 sps:$4 sm:$0xff]   ;;  %v1539_v44 = vld [vmem:[%s1986_s0 + $0x120] ss:$24 sps:$4 sm:$0xff]   ;;  %v1544_v48 = vld [vmem:[%s1985_s1 + $0xd0] sm:$0xff]  }
  0x10   :  { %1290 = vmatprep.subr.bf16.mxu0 %v1498_v8  ;;  %1478 = vmatprep.subr.bf16.mxu1 %v1498_v8  ;;  %v1533_v41 = vld [vmem:[%s1985_s1 + $0x120] sm:$0xff]   ;;  %v1541_v45 = vld [vmem:[%s1985_s1 + $0x158] sm:$0xff]   ;;  %v1545_v49 = vld [vmem:[%s1985_s1 + $0x150] sm:$0xff]  }
  0x11   :  { %v1542_v46 = vld [vmem:[%s1985_s1 + $0x98] sm:$0xff]   ;;  %v1548_v50 = vld [vmem:[%s1986_s0 + $0x94] ss:$24 sps:$4 sm:$0xff]   ;;  %v1552_v55 = vld [vmem:[%s1986_s0 + $0x90] ss:$24 sps:$4 sm:$0xff]  }
  0x12   :  { %v1543_v47 = vld [vmem:[%s1985_s1 + $0x118] sm:$0xff]   ;;  %v1550_v51 = vld [vmem:[%s1986_s0 + $0x154] ss:$24 sps:$4 sm:$0xff]   ;;  %v1553_v56 = vld [vmem:[%s1986_s0 + $0x150] ss:$24 sps:$4 sm:$0xff]  }
  0x13   :  { %1291 = vmatpush3.bf16.msra.mxu0 %v1499_v9  ;;  %1486 = vmatpush3.bf16.msra.mxu1 %v1499_v9  ;;  %v1546_v52 = vld [vmem:[%s1985_s1 + $0x90] sm:$0xff]   ;;  %v1554_v54 = vld [vmem:[%s1985_s1 + $0xc8] sm:$0xff]   ;;  %v1558_v60 = vld [vmem:[%s1985_s1 + $0xc0] sm:$0xff]  }
  0x14   :  { %1292 = vmatprep.subr.bf16.mxu0 %v1500_v10  ;;  %1479 = vmatprep.subr.bf16.mxu1 %v1500_v10  ;;  %v1547_v53 = vld [vmem:[%s1985_s1 + $0x110] sm:$0xff]   ;;  %v1555_v57 = vld [vmem:[%s1985_s1 + $0x148] sm:$0xff]   ;;  %v1559_v61 = vld [vmem:[%s1985_s1 + $0x140] sm:$0xff]  }
  0x15   :  { %v1556_v58 = vld [vmem:[%s1985_s1 + $0x88] sm:$0xff]   ;;  %v1560_v62 = vld [vmem:[%s1985_s1 + $0x80] sm:$0xff]   ;;  %v1568_v4 = vld [vmem:[%s1986_s0 + $0x3c] ss:$24 sps:$4 sm:$0xff]  }
  0x16   :  { %v1557_v59 = vld [vmem:[%s1985_s1 + $0x108] sm:$0xff]   ;;  %v1561_v63 = vld [vmem:[%s1985_s1 + $0x100] sm:$0xff]   ;;  %v1572_v6 = vld [vmem:[%s1986_s0 + $0x38] ss:$24 sps:$4 sm:$0xff]  }
  0x17   :  { %1293 = vmatpush3.bf16.msra.mxu0 %v1501_v13  ;;  %1487 = vmatpush3.bf16.msra.mxu1 %v1501_v13  ;;  %v1564_v0 = vld [vmem:[%s1986_s0 + $0xc] ss:$24 sps:$4 sm:$0xff]   ;;  %v1562_v1 = vld [vmem:[%s1986_s0 + $0x8] ss:$24 sps:$4 sm:$0xff]   ;;  %v1580_v12 = vld [vmem:[%s1986_s0 + $0x9c] ss:$24 sps:$4 sm:$0xff]  }
  0x18   :  { %1294 = vmatprep.subr.bf16.mxu0 %v1502_v14  ;;  %1480 = vmatprep.subr.bf16.mxu1 %v1502_v14  ;;  %v1567_v2 = vld [vmem:[%s1986_s0 + $0x14] ss:$24 sps:$4 sm:$0xff]   ;;  %v1565_v3 = vld [vmem:[%s1986_s0 + $0x10] ss:$24 sps:$4 sm:$0xff]   ;;  %v1570_v5 = vld [vmem:[%s1986_s0 + $0x44] ss:$24 sps:$4 sm:$0xff]  }
  0x19   :  { %v1573_v7 = vld [vmem:[%s1986_s0 + $0x40] ss:$24 sps:$4 sm:$0xff]   ;;  %v1574_v8 = vld [vmem:[%s1986_s0 + $0x6c] ss:$24 sps:$4 sm:$0xff]   ;;  %v1579_v11 = vld [vmem:[%s1986_s0 + $0x70] ss:$24 sps:$4 sm:$0xff]  }
  0x1a   :  { %v1576_v9 = vld [vmem:[%s1986_s0 + $0x74] ss:$24 sps:$4 sm:$0xff]   ;;  %v1578_v10 = vld [vmem:[%s1986_s0 + $0x68] ss:$24 sps:$4 sm:$0xff]   ;;  %v1582_v13 = vld [vmem:[%s1986_s0 + $0xa4] ss:$24 sps:$4 sm:$0xff]  }
  0x1b   :  { %1295 = vmatpush3.bf16.msra.mxu0 %v1503_v15  ;;  %1488 = vmatpush3.bf16.msra.mxu1 %v1503_v15  ;;  %v1584_v14 = vld [vmem:[%s1986_s0 + $0x98] ss:$24 sps:$4 sm:$0xff]  }
  0x1c   :  { %1296 = vmatprep.subr.bf16.mxu0 %v1504_v16  ;;  %1481 = vmatprep.subr.bf16.mxu1 %v1504_v16  ;;  %v1585_v15 = vld [vmem:[%s1986_s0 + $0xa0] ss:$24 sps:$4 sm:$0xff]   ;;  %v1586_v16 = vld [vmem:[%s1986_s0 + $0xcc] ss:$24 sps:$4 sm:$0xff]  }
  0x1f   :  { %1297 = vmatpush3.bf16.msra.mxu0 %v1505_v17  ;;  %1489 = vmatpush3.bf16.msra.mxu1 %v1505_v17  ;;  %v1588_v17 = vld [vmem:[%s1986_s0 + $0xd4] ss:$24 sps:$4 sm:$0xff]  }
  0x20   :  { %1346 = vmatprep.subr.bf16.mxu1 %v1512_v20  ;;  %1410 = vmatprep.subr.bf16.mxu0 %v1513_v21  ;;  %v1592_v20 = vld [vmem:[%s1986_s0 + $0xfc] ss:$24 sps:$4 sm:$0xff]  }
  0x21   :  { %v1594_v21 = vld [vmem:[%s1986_s0 + $0x104] ss:$24 sps:$4 sm:$0xff]  }
  0x22   :  { %717 = vmatmul.mubr.bf16.vlgmr.msra.gmra.mxu0 %v1506_v18  ;;  %749 = vmatmul.mubr.bf16.vlgmr.msra.gmra.mxu1 %v1509_v19  ;;  %v1590_v18 = vld [vmem:[%s1986_s0 + $0xc8] ss:$24 sps:$4 sm:$0xff]  }
  0x23   :  { %1347 = vmatpush3.bf16.msra.mxu1 %v1514_v22  ;;  %1411 = vmatpush3.bf16.msra.mxu0 %v1515_v23  ;;  %v1591_v19 = vld [vmem:[%s1986_s0 + $0xd0] ss:$24 sps:$4 sm:$0xff]   ;;  %v1597_v23 = vld [vmem:[%s1986_s0 + $0x100] ss:$24 sps:$4 sm:$0xff]  }
  0x24   :  { %1348 = vmatprep.subr.bf16.mxu1 %v1516_v24  ;;  %1412 = vmatprep.subr.bf16.mxu0 %v1517_v25  ;;  %v1596_v22 = vld [vmem:[%s1986_s0 + $0xf8] ss:$24 sps:$4 sm:$0xff]   ;;  %v1598_v24 = vld [vmem:[%s1986_s0 + $0x12c] ss:$24 sps:$4 sm:$0xff]  }
  0x25   :  { %724 = vmatprep.mubr.bf16.mxu0 %v1520_v26  ;;  %756 = vmatprep.mubr.bf16.mxu1 %v1522_v28  ;;  %v1600_v25 = vld [vmem:[%s1986_s0 + $0x134] ss:$24 sps:$4 sm:$0xff]   ;;  %v1602_v26 = vld [vmem:[%s1986_s0 + $0x128] ss:$24 sps:$4 sm:$0xff]  }
  0x26   :  { %v1604_v28 = vld [vmem:[%s1986_s0 + $0x15c] ss:$24 sps:$4 sm:$0xff]  }
  0x27   :  { %1349 = vmatpush3.bf16.msra.mxu1 %v1518_v27  ;;  %1413 = vmatpush3.bf16.msra.mxu0 %v1519_v29  ;;  %v1603_v27 = vld [vmem:[%s1986_s0 + $0x130] ss:$24 sps:$4 sm:$0xff]   ;;  %v1606_v29 = vld [vmem:[%s1986_s0 + $0x164] ss:$24 sps:$4 sm:$0xff]  }
  0x28   :  { %1350 = vmatprep.subr.bf16.mxu1 %v1526_v30  ;;  %1414 = vmatprep.subr.bf16.mxu0 %v1527_v32  ;;  %v1608_v30 = vld [vmem:[%s1986_s0 + $0x158] ss:$24 sps:$4 sm:$0xff]  }
  0x2a   :  { %725 = vmatmul.mubr.bf16.gmra.mxu0 %v1524_v31  ;;  %757 = vmatmul.mubr.bf16.gmra.mxu1 %v1525_v33  ;;  %v1609_v31 = vld [vmem:[%s1986_s0 + $0x160] ss:$24 sps:$4 sm:$0xff]  }
  0x2b   :  { %1351 = vmatpush3.bf16.msra.mxu1 %v1528_v34  ;;  %1415 = vmatpush3.bf16.msra.mxu0 %v1529_v35 }
  0x2c   :  { %1352 = vmatprep.subr.bf16.mxu1 %v1530_v36  ;;  %1416 = vmatprep.subr.bf16.mxu0 %v1531_v37 }
  0x2d   :  { %732 = vmatprep.mubr.bf16.mxu0 %v1534_v38  ;;  %764 = vmatprep.mubr.bf16.mxu1 %v1536_v40 }
  0x2f   :  { %1353 = vmatpush3.bf16.msra.mxu1 %v1532_v39  ;;  %1417 = vmatpush3.bf16.msra.mxu0 %v1533_v41 }
  0x30   :  { %1354 = vmatprep.subr.bf16.mxu1 %v1540_v42  ;;  %1418 = vmatprep.subr.bf16.mxu0 %v1541_v45 }
  0x32   :  { %733 = vmatmul.mubr.bf16.gmra.mxu0 %v1538_v43  ;;  %765 = vmatmul.mubr.bf16.gmra.mxu1 %v1539_v44 }
  0x33   :  { %1355 = vmatpush3.bf16.msra.mxu1 %v1542_v46  ;;  %1419 = vmatpush3.bf16.msra.mxu0 %v1543_v47 }
  0x34   :  { %1356 = vmatprep.subr.bf16.mxu1 %v1544_v48  ;;  %1420 = vmatprep.subr.bf16.mxu0 %v1545_v49 }
  0x35   :  { %740 = vmatprep.mubr.bf16.mxu0 %v1548_v50  ;;  %772 = vmatprep.mubr.bf16.mxu1 %v1550_v51 }
  0x37   :  { %1357 = vmatpush3.bf16.msra.mxu1 %v1546_v52  ;;  %1421 = vmatpush3.bf16.msra.mxu0 %v1547_v53 }
  0x38   :  { %1358 = vmatprep.subr.bf16.mxu1 %v1554_v54  ;;  %1422 = vmatprep.subr.bf16.mxu0 %v1555_v57 }
  0x3a   :  { %741 = vmatmul.mubr.bf16.gmra.mxu0 %v1552_v55  ;;  %773 = vmatmul.mubr.bf16.gmra.mxu1 %v1553_v56 }
  0x3b   :  { %1359 = vmatpush3.bf16.msra.mxu1 %v1556_v58  ;;  %1423 = vmatpush3.bf16.msra.mxu0 %v1557_v59 }
  0x3c   :  { %1360 = vmatprep.subr.bf16.mxu1 %v1558_v60  ;;  %1424 = vmatprep.subr.bf16.mxu0 %v1559_v61 }
  0x3d   :  { %813 = vmatprep.mubr.bf16.mxu1 %v1564_v0  ;;  %910 = vmatprep.mubr.bf16.mxu0 %v1567_v2 }
  0x3f   :  { %1361 = vmatpush3.bf16.msra.mxu1 %v1560_v62  ;;  %1425 = vmatpush3.bf16.msra.mxu0 %v1561_v63 }
  0x42   :  { %814 = vmatmul.mubr.bf16.vlgmr.msra.gmra.mxu1 %v1562_v1  ;;  %911 = vmatmul.mubr.bf16.vlgmr.msra.gmra.mxu0 %v1565_v3 }
  0x43   :  { %821 = vmatprep.mubr.bf16.mxu1 %v1568_v4  ;;  %918 = vmatprep.mubr.bf16.mxu0 %v1570_v5 }
  0x4a   :  { %822 = vmatmul.mubr.bf16.gmra.mxu1 %v1572_v6  ;;  %919 = vmatmul.mubr.bf16.gmra.mxu0 %v1573_v7 }
  0x4b   :  { %829 = vmatprep.mubr.bf16.mxu1 %v1574_v8  ;;  %926 = vmatprep.mubr.bf16.mxu0 %v1576_v9 }
  0x52   :  { %830 = vmatmul.mubr.bf16.gmra.mxu1 %v1578_v10  ;;  %927 = vmatmul.mubr.bf16.gmra.mxu0 %v1579_v11 }
  0x53   :  { %837 = vmatprep.mubr.bf16.mxu1 %v1580_v12  ;;  %934 = vmatprep.mubr.bf16.mxu0 %v1582_v13 }
  0x5a   :  { %838 = vmatmul.mubr.bf16.gmra.mxu1 %v1584_v14  ;;  %935 = vmatmul.mubr.bf16.gmra.mxu0 %v1585_v15 }
  0x5b   :  { %845 = vmatprep.mubr.bf16.mxu1 %v1586_v16  ;;  %942 = vmatprep.mubr.bf16.mxu0 %v1588_v17 }
  0x62   :  { %846 = vmatmul.mubr.bf16.gmra.mxu1 %v1590_v18  ;;  %943 = vmatmul.mubr.bf16.gmra.mxu0 %v1591_v19 }
  0x63   :  { %853 = vmatprep.mubr.bf16.mxu1 %v1592_v20  ;;  %950 = vmatprep.mubr.bf16.mxu0 %v1594_v21 }
  0x6a   :  { %854 = vmatmul.mubr.bf16.gmra.mxu1 %v1596_v22  ;;  %951 = vmatmul.mubr.bf16.gmra.mxu0 %v1597_v23 }
  0x6b   :  { %861 = vmatprep.mubr.bf16.mxu1 %v1598_v24  ;;  %958 = vmatprep.mubr.bf16.mxu0 %v1600_v25 }
  0x72   :  { %862 = vmatmul.mubr.bf16.gmra.mxu1 %v1602_v26  ;;  %959 = vmatmul.mubr.bf16.gmra.mxu0 %v1603_v27 }
  0x73   :  { %869 = vmatprep.mubr.bf16.mxu1 %v1604_v28  ;;  %966 = vmatprep.mubr.bf16.mxu0 %v1606_v29 }
  0x7a   :  { %870 = vmatmul.mubr.bf16.gmra.mxu1 %v1608_v30  ;;  %967 = vmatmul.mubr.bf16.gmra.mxu0 %v1609_v31 }
  0xe2   :  { %v1298_v32 = vpop.f32.mrf.mxu0  ;;  %v1322_v33 = vpop.f32.mrf.mxu1 }
  0xe4   :  { %v1299_v34 = vpop.f32.mrf.mxu0  ;;  %v1323_v35 = vpop.f32.mrf.mxu1 }
  0xe5   :  { %v1913_v36 = vadd.f32 %v1323_v35, %v1322_v33  ;;  %v1300_v12 = vadd.f32 %v1299_v34, %v1298_v32 }
  0xe6   :  { %v1301_v37 = vpop.f32.mrf.mxu0  ;;  %v1325_v38 = vpop.f32.mrf.mxu1 }
  0xe8   :  { %v1302_v39 = vpop.f32.mrf.mxu0  ;;  %v1326_v40 = vpop.f32.mrf.mxu1 }
  0xe9   :  { %v1915_v41 = vadd.f32 %v1326_v40, %v1325_v38  ;;  %v1303_v20 = vadd.f32 %v1302_v39, %v1301_v37 }
  0xea   :  { %v1304_v42 = vpop.f32.mrf.mxu0  ;;  %v1328_v43 = vpop.f32.mrf.mxu1 }
  0xec   :  { %v1305_v44 = vpop.f32.mrf.mxu0  ;;  %v1329_v45 = vpop.f32.mrf.mxu1 }
  0xed   :  { %v1917_v46 = vadd.f32 %v1329_v45, %v1328_v43  ;;  %v1306_v29 = vadd.f32 %v1305_v44, %v1304_v42 }
  0xee   :  { %v1307_v47 = vpop.f32.mrf.mxu0  ;;  %v1331_v48 = vpop.f32.mrf.mxu1 }
  0xf0   :  { %v1308_v49 = vpop.f32.mrf.mxu0  ;;  %v1332_v50 = vpop.f32.mrf.mxu1 }
  0xf1   :  { %v1919_v51 = vadd.f32 %v1332_v50, %v1331_v48  ;;  %v1309_v37 = vadd.f32 %v1308_v49, %v1307_v47 }
  0xf2   :  { %v1921_v52 = vpop.f32.mrf.mxu0  ;;  %v1334_v53 = vpop.f32.mrf.mxu1 }
  0xf4   :  { %v1923_v54 = vpop.f32.mrf.mxu0  ;;  %v1335_v55 = vpop.f32.mrf.mxu1 }
  0xf5   :  { %v1925_v56 = vadd.f32 %v1335_v55, %v1334_v53  ;;  %v1312_v47 = vadd.f32 %v1923_v54, %v1921_v52 }
  0xf6   :  { %v1927_v57 = vpop.f32.mrf.mxu0  ;;  %v1337_v58 = vpop.f32.mrf.mxu1 }
  0xf8   :  { %v1929_v59 = vpop.f32.mrf.mxu0  ;;  %v1338_v60 = vpop.f32.mrf.mxu1 }
  0xf9   :  { %v1931_v61 = vadd.f32 %v1338_v60, %v1337_v58 }
  0xfa   :  { %v1933_v62 = vpop.f32.mrf.mxu0  ;;  %v1340_v63 = vpop.f32.mrf.mxu1 }
  0xfc   :  { %v1935_v0 = vpop.f32.mrf.mxu0  ;;  %v1341_v1 = vpop.f32.mrf.mxu1 }
  0xfd   :  { %v1937_v2 = vadd.f32 %v1341_v1, %v1340_v63 }
  0xfe   :  { %v1939_v3 = vpop.f32.mrf.mxu0  ;;  %v1343_v4 = vpop.f32.mrf.mxu1 }
 0x100   :  { %v1941_v5 = vpop.f32.mrf.mxu0  ;;  %v1344_v6 = vpop.f32.mrf.mxu1 }
 0x101   :  { %v1943_v7 = vadd.f32 %v1344_v6, %v1343_v4 }
 0x102   :  { %v1362_v8 = vpop.f32.mrf.mxu1  ;;  %v1426_v9 = vpop.f32.mrf.mxu0 }
 0x104   :  { %v1363_v10 = vpop.f32.mrf.mxu1  ;;  %v1427_v11 = vpop.f32.mrf.mxu0 }
 0x105   :  { %v1364_v13 = vadd.f32 %v1363_v10, %v1362_v8  ;;  %v1428_v17 = vadd.f32 %v1427_v11, %v1426_v9 }
 0x106   :  { %v1365_v14 = vpop.f32.mrf.mxu1  ;;  %v1429_v15 = vpop.f32.mrf.mxu0 }
 0x107   :  { %v816_v16 = vadd.f32 %v1364_v13, %v1300_v12  ;;  %v1315_v13 = vadd.f32 %v1929_v59, %v1927_v57  ;;  %v1318_v57 = vadd.f32 %v1935_v0, %v1933_v62 }
 0x108   :  { %v1366_v18 = vpop.f32.mrf.mxu1  ;;  %v1430_v19 = vpop.f32.mrf.mxu0 }
 0x109   :  { %v913_v21 = vadd.f32 %v1428_v17, %v816_v16  ;;  %v1367_v22 = vadd.f32 %v1366_v18, %v1365_v14  ;;  %v1431_v26 = vadd.f32 %v1430_v19, %v1429_v15 }
 0x10a   :  { %v1368_v23 = vpop.f32.mrf.mxu1  ;;  %v1432_v24 = vpop.f32.mrf.mxu0 }
 0x10b   :  { %v819_v25 = vadd.f32 %v1367_v22, %v1303_v20  ;;  %v991_v30 = vmul.f32 0.2, %v913_v21  ;;  %vm975_vm0 = vcmp.gt.f32.partialorder %v913_v21, 0.0 }
 0x10c   :  { %v1369_v27 = vpop.f32.mrf.mxu1  ;;  %v1433_v28 = vpop.f32.mrf.mxu0 }
 0x10d   :  { %v916_v31 = vadd.f32 %v1431_v26, %v819_v25  ;;  %v1370_v32 = vadd.f32 %v1369_v27, %v1368_v23  ;;  %v1434_v40 = vadd.f32 %v1433_v28, %v1432_v24  ;;  %v1007_v45 = vsel %vm975_vm0, %v913_v21, %v991_v30 }
 0x10e   :  { %v1371_v33 = vpop.f32.mrf.mxu1  ;;  %v1435_v34 = vpop.f32.mrf.mxu0 }
 0x10f   :  { %vm976_vm1 = vcmp.gt.f32.partialorder %v916_v31, 0.0  ;;  %v992_v35 = vmul.f32 0.2, %v916_v31  ;;  %v824_v38 = vadd.f32 %v1370_v32, %v1306_v29  ;;  %v1321_v32 = vadd.f32 %v1941_v5, %v1939_v3 }
 0x110   :  { %v1372_v39 = vpop.f32.mrf.mxu1  ;;  %v1436_v43 = vpop.f32.mrf.mxu0 }
 0x111   :  { %v1008_v48 = vsel %vm976_vm1, %v916_v31, %v992_v35  ;;  %v921_v50 = vadd.f32 %v1434_v40, %v824_v38  ;;  %v1373_v53 = vadd.f32 %v1372_v39, %v1371_v33  ;;  %v1437_v60 = vadd.f32 %v1436_v43, %v1435_v34 }
 0x112   :  { %v1238_v55 = vpack.c.bf16 %v1008_v48, %v1007_v45  ;;  %v1374_v58 = vpop.f32.mrf.mxu1  ;;  %v1438_v42 = vpop.f32.mrf.mxu0 }
 0x113   :  { %v827_v44 = vadd.f32 %v1373_v53, %v1309_v37  ;;  %v993_v49 = vmul.f32 0.2, %v921_v50  ;;  %vm977_vm2 = vcmp.gt.f32.partialorder %v921_v50, 0.0 }
 0x114   :  { %1239 = vst [vmem:[%s1987_s2] sm:$0xff] %v1238_v55   ;;  %v1375_v63 = vpop.f32.mrf.mxu1  ;;  %v1439_v1 = vpop.f32.mrf.mxu0 }
 0x115   :  { %v924_v4 = vadd.f32 %v1437_v60, %v827_v44  ;;  %v1376_v6 = vadd.f32 %v1375_v63, %v1374_v58  ;;  %v1440_v12 = vadd.f32 %v1439_v1, %v1438_v42  ;;  %v1009_v16 = vsel %vm977_vm2, %v921_v50, %v993_v49 }
 0x116   :  { %v1377_v8 = vpop.f32.mrf.mxu1  ;;  %v1441_v9 = vpop.f32.mrf.mxu0 }
 0x117   :  { %vm978_vm3 = vcmp.gt.f32.partialorder %v924_v4, 0.0  ;;  %v994_v10 = vmul.f32 0.2, %v924_v4  ;;  %v832_v11 = vadd.f32 %v1376_v6, %v1312_v47 }
 0x118   :  { %v1378_v14 = vpop.f32.mrf.mxu1  ;;  %v1442_v15 = vpop.f32.mrf.mxu0 }
 0x119   :  { %v1010_v17 = vsel %vm978_vm3, %v924_v4, %v994_v10  ;;  %v929_v18 = vadd.f32 %v1440_v12, %v832_v11  ;;  %v1379_v19 = vadd.f32 %v1378_v14, %v1377_v8  ;;  %v1443_v22 = vadd.f32 %v1442_v15, %v1441_v9 }
 0x11a   :  { %v1243_v52 = vpack.c.bf16 %v1010_v17, %v1009_v16  ;;  %v1380_v54 = vpop.f32.mrf.mxu1  ;;  %v1444_v20 = vpop.f32.mrf.mxu0 }
 0x11b   :  { %v835_v21 = vadd.f32 %v1379_v19, %v1315_v13  ;;  %v995_v59 = vmul.f32 0.2, %v929_v18  ;;  %vm979_vm4 = vcmp.gt.f32.partialorder %v929_v18, 0.0 }
 0x11c   :  { %1275 = vst [vmem:[%s1987_s2 + $0x8] sm:$0xff] %v1243_v52   ;;  %v1381_v23 = vpop.f32.mrf.mxu1  ;;  %v1445_v24 = vpop.f32.mrf.mxu0 }
 0x11d   :  { %v932_v25 = vadd.f32 %v1443_v22, %v835_v21  ;;  %v1382_v26 = vadd.f32 %v1381_v23, %v1380_v54  ;;  %v1446_v31 = vadd.f32 %v1445_v24, %v1444_v20  ;;  %v1011_v35 = vsel %vm979_vm4, %v929_v18, %v995_v59 }
 0x11e   :  { %v1383_v27 = vpop.f32.mrf.mxu1  ;;  %v1447_v28 = vpop.f32.mrf.mxu0 }
 0x11f   :  { %vm980_vm5 = vcmp.gt.f32.partialorder %v932_v25, 0.0  ;;  %v996_v29 = vmul.f32 0.2, %v932_v25  ;;  %v840_v30 = vadd.f32 %v1382_v26, %v1318_v57 }
 0x120   :  { %v1384_v33 = vpop.f32.mrf.mxu1  ;;  %v1448_v34 = vpop.f32.mrf.mxu0 }
 0x121   :  { %v1012_v38 = vsel %vm980_vm5, %v932_v25, %v996_v29  ;;  %v937_v40 = vadd.f32 %v1446_v31, %v840_v30  ;;  %v1385_v37 = vadd.f32 %v1384_v33, %v1383_v27  ;;  %v1449_v45 = vadd.f32 %v1448_v34, %v1447_v28 }
 0x122   :  { %v1248_v62 = vpack.c.bf16 %v1012_v38, %v1011_v35  ;;  %v1386_v0 = vpop.f32.mrf.mxu1  ;;  %v1450_v39 = vpop.f32.mrf.mxu0 }
 0x123   :  { %v843_v43 = vadd.f32 %v1385_v37, %v1321_v32  ;;  %v997_v53 = vmul.f32 0.2, %v937_v40  ;;  %vm981_vm6 = vcmp.gt.f32.partialorder %v937_v40, 0.0 }
 0x124   :  { %1276 = vst [vmem:[%s1987_s2 + $0x10] sm:$0xff] %v1248_v62   ;;  %v1387_v48 = vpop.f32.mrf.mxu1  ;;  %v1451_v50 = vpop.f32.mrf.mxu0 }
 0x125   :  { %v940_v55 = vadd.f32 %v1449_v45, %v843_v43  ;;  %v1388_v3 = vadd.f32 %v1387_v48, %v1386_v0  ;;  %v1452_v60 = vadd.f32 %v1451_v50, %v1450_v39  ;;  %v1013_v47 = vsel %vm981_vm6, %v937_v40, %v997_v53 }
 0x126   :  { %v1389_v5 = vpop.f32.mrf.mxu1  ;;  %v1453_v58 = vpop.f32.mrf.mxu0 }
 0x127   :  { %vm982_vm7 = vcmp.gt.f32.partialorder %v940_v55, 0.0  ;;  %v998_v42 = vmul.f32 0.2, %v940_v55  ;;  %v848_v44 = vadd.f32 %v1388_v3, %v1913_v36 }
 0x128   :  { %v1390_v63 = vpop.f32.mrf.mxu1  ;;  %v1454_v1 = vpop.f32.mrf.mxu0 }
 0x129   :  { %v1014_v49 = vsel %vm982_vm7, %v940_v55, %v998_v42  ;;  %v945_v4 = vadd.f32 %v1452_v60, %v848_v44  ;;  %v1391_v6 = vadd.f32 %v1390_v63, %v1389_v5  ;;  %v1455_v12 = vadd.f32 %v1454_v1, %v1453_v58 }
 0x12a   :  { %v1253_v8 = vpack.c.bf16 %v1014_v49, %v1013_v47  ;;  %v1392_v9 = vpop.f32.mrf.mxu1  ;;  %v1456_v10 = vpop.f32.mrf.mxu0 }
 0x12b   :  { %v851_v11 = vadd.f32 %v1391_v6, %v1915_v41  ;;  %v999_v36 = vmul.f32 0.2, %v945_v4  ;;  %vm983_vm8 = vcmp.gt.f32.partialorder %v945_v4, 0.0 }
 0x12c   :  { %1277 = vst [vmem:[%s1987_s2 + $0x18] sm:$0xff] %v1253_v8   ;;  %v1393_v13 = vpop.f32.mrf.mxu1  ;;  %v1457_v14 = vpop.f32.mrf.mxu0 }
 0x12d   :  { %v948_v15 = vadd.f32 %v1455_v12, %v851_v11  ;;  %v1394_v16 = vadd.f32 %v1393_v13, %v1392_v9  ;;  %v1458_v54 = vadd.f32 %v1457_v14, %v1456_v10  ;;  %v1015_v21 = vsel %vm983_vm8, %v945_v4, %v999_v36 }
 0x12e   :  { %v1395_v17 = vpop.f32.mrf.mxu1  ;;  %v1459_v18 = vpop.f32.mrf.mxu0 }
 0x12f   :  { %vm984_vm9 = vcmp.gt.f32.partialorder %v948_v15, 0.0  ;;  %v1000_v19 = vmul.f32 0.2, %v948_v15  ;;  %v856_v52 = vadd.f32 %v1394_v16, %v1917_v46 }
 0x130   :  { %v1396_v20 = vpop.f32.mrf.mxu1  ;;  %v1460_v41 = vpop.f32.mrf.mxu0 }
 0x131   :  { %v1016_v22 = vsel %vm984_vm9, %v948_v15, %v1000_v19  ;;  %v953_v23 = vadd.f32 %v1458_v54, %v856_v52  ;;  %v1397_v24 = vadd.f32 %v1396_v20, %v1395_v17  ;;  %v1461_v27 = vadd.f32 %v1460_v41, %v1459_v18 }
 0x132   :  { %v1258_v57 = vpack.c.bf16 %v1016_v22, %v1015_v21  ;;  %v1398_v59 = vpop.f32.mrf.mxu1  ;;  %v1462_v25 = vpop.f32.mrf.mxu0 }
 0x133   :  { %v859_v26 = vadd.f32 %v1397_v24, %v1919_v51  ;;  %v1001_v46 = vmul.f32 0.2, %v953_v23  ;;  %vm985_vm10 = vcmp.gt.f32.partialorder %v953_v23, 0.0 }
 0x134   :  { %1278 = vst [vmem:[%s1987_s2 + $0x20] sm:$0xff] %v1258_v57   ;;  %v1399_v28 = vpop.f32.mrf.mxu1  ;;  %v1463_v29 = vpop.f32.mrf.mxu0 }
 0x135   :  { %v956_v30 = vadd.f32 %v1461_v27, %v859_v26  ;;  %v1400_v31 = vadd.f32 %v1399_v28, %v1398_v59  ;;  %v1464_v38 = vadd.f32 %v1463_v29, %v1462_v25  ;;  %v1017_v37 = vsel %vm985_vm10, %v953_v23, %v1001_v46 }
 0x136   :  { %v1401_v32 = vpop.f32.mrf.mxu1  ;;  %v1465_v33 = vpop.f32.mrf.mxu0 }
 0x137   :  { %vm986_vm11 = vcmp.gt.f32.partialorder %v956_v30, 0.0  ;;  %v1002_v34 = vmul.f32 0.2, %v956_v30  ;;  %v864_v35 = vadd.f32 %v1400_v31, %v1925_v56 }
 0x138   :  { %v1402_v40 = vpop.f32.mrf.mxu1  ;;  %v1466_v51 = vpop.f32.mrf.mxu0 }
 0x139   :  { %v1018_v62 = vsel %vm986_vm11, %v956_v30, %v1002_v34  ;;  %v961_v0 = vadd.f32 %v1464_v38, %v864_v35  ;;  %v1403_v39 = vadd.f32 %v1402_v40, %v1401_v32  ;;  %v1467_v53 = vadd.f32 %v1466_v51, %v1465_v33 }
 0x13a   :  { %v1263_v43 = vpack.c.bf16 %v1018_v62, %v1017_v37  ;;  %v1404_v45 = vpop.f32.mrf.mxu1  ;;  %v1468_v48 = vpop.f32.mrf.mxu0 }
 0x13b   :  { %v867_v50 = vadd.f32 %v1403_v39, %v1931_v61  ;;  %v1003_v56 = vmul.f32 0.2, %v961_v0  ;;  %vm987_vm12 = vcmp.gt.f32.partialorder %v961_v0, 0.0 }
 0x13c   :  { %1279 = vst [vmem:[%s1987_s2 + $0x28] sm:$0xff] %v1263_v43   ;;  %v1405_v55 = vpop.f32.mrf.mxu1  ;;  %v1469_v3 = vpop.f32.mrf.mxu0 }
 0x13d   :  { %v964_v5 = vadd.f32 %v1467_v53, %v867_v50  ;;  %v1406_v58 = vadd.f32 %v1405_v55, %v1404_v45  ;;  %v1470_v1 = vadd.f32 %v1469_v3, %v1468_v48  ;;  %v1019_v49 = vsel %vm987_vm12, %v961_v0, %v1003_v56 }
 0x13e   :  { %v1407_v42 = vpop.f32.mrf.mxu1  ;;  %v1471_v44 = vpop.f32.mrf.mxu0 }
 0x13f   :  { %vm988_vm13 = vcmp.gt.f32.partialorder %v964_v5, 0.0  ;;  %v1004_v60 = vmul.f32 0.2, %v964_v5  ;;  %v872_v63 = vadd.f32 %v1406_v58, %v1937_v2 }
 0x140   :  { %v1408_v47 = vpop.f32.mrf.mxu1  ;;  %v1472_v61 = vpop.f32.mrf.mxu0 }
 0x141   :  { %v1020_v4 = vsel %vm988_vm13, %v964_v5, %v1004_v60  ;;  %v969_v6 = vadd.f32 %v1470_v1, %v872_v63  ;;  %v1409_v8 = vadd.f32 %v1408_v47, %v1407_v42  ;;  %v1473_v11 = vadd.f32 %v1472_v61, %v1471_v44 }
 0x142   :  { %v1268_v9 = vpack.c.bf16 %v1020_v4, %v1019_v49 }
 0x143   :  { %v875_v10 = vadd.f32 %v1409_v8, %v1943_v7  ;;  %v1005_v12 = vmul.f32 0.2, %v969_v6  ;;  %vm989_vm14 = vcmp.gt.f32.partialorder %v969_v6, 0.0 }
 0x144   :  { %1280 = vst [vmem:[%s1987_s2 + $0x30] sm:$0xff] %v1268_v9  }
 0x145   :  { %v972_v13 = vadd.f32 %v1473_v11, %v875_v10  ;;  %v1021_v14 = vsel %vm989_vm14, %v969_v6, %v1005_v12 }
 0x147   :  { %vm990_vm15 = vcmp.gt.f32.partialorder %v972_v13, 0.0  ;;  %v1006_v2 = vmul.f32 0.2, %v972_v13 }
 0x149   :  { %v1022_v36 = vsel %vm990_vm15, %v972_v13, %v1006_v2 }
 0x14a   :  { %v1273_v15 = vpack.c.bf16 %v1022_v36, %v1021_v14 }
 0x14c   :  { %1281 = vst [vmem:[%s1987_s2 + $0x38] sm:$0xff] %v1273_v15  }

// kernel: discriminator_forward.9
= control target key start
LH: loop header
LB: loop body
LE: loop exit
PB: predicated region body
PF: predicated region fallthrough
CT: control target
= control target key end

     0   :  { %s1862_s1 = inlined_call_operand.vmem [shape: bf16[1024,128], index: 1, kind: input, shape index: {}]   ;;  %s1863_s0 = inlined_call_operand.vmem [shape: bf16[64,1024], index: 0, kind: input, shape index: {}]   ;;  %s1864_s2 = inlined_call_operand.vmem [shape: bf16[64,128], index: 2, kind: output, shape index: {0}]   ;;  %s1865_s3 = inlined_call_operand.vmem [shape: f32[8,128], index: 3, kind: output, shape index: {1}]   ;;  %s1866_s4 = inlined_call_operand.vmem [shape: f32[8,128], index: 4, kind: output, shape index: {2}]  }
   0x1   :  { %v1440_v0 = vld [vmem:[%s1862_s1 + $0x78] sm:$0xff]   ;;  %v1444_v4 = vld [vmem:[%s1862_s1 + $0x70] sm:$0xff]   ;;  %v1448_v8 = vld [vmem:[%s1862_s1 + $0x68] sm:$0xff]  }
   0x2   :  { %v1441_v1 = vld [vmem:[%s1862_s1 + $0xf8] sm:$0xff]   ;;  %1279 = vmatprep.subr.bf16.mxu0 %v1440_v0  ;;  %v1445_v5 = vld [vmem:[%s1862_s1 + $0xf0] sm:$0xff]   ;;  %v1449_v9 = vld [vmem:[%s1862_s1 + $0xe8] sm:$0xff]  }
   0x3   :  { %v1442_v2 = vld [vmem:[%s1862_s1 + $0x38] sm:$0xff]   ;;  %1319 = vmatprep.subr.bf16.mxu1 %v1441_v1  ;;  %v1446_v6 = vld [vmem:[%s1862_s1 + $0x30] sm:$0xff]   ;;  %v1450_v10 = vld [vmem:[%s1862_s1 + $0x28] sm:$0xff]  }
   0x4   :  { %v1443_v3 = vld [vmem:[%s1862_s1 + $0xb8] sm:$0xff]   ;;  %1280 = vmatpush3.bf16.msra.mxu0 %v1442_v2  ;;  %v1447_v7 = vld [vmem:[%s1862_s1 + $0xb0] sm:$0xff]   ;;  %v1451_v11 = vld [vmem:[%s1862_s1 + $0xa8] sm:$0xff]  }
   0x5   :  { %1320 = vmatpush3.bf16.msra.mxu1 %v1443_v3  ;;  %1281 = vmatprep.subr.bf16.mxu0 %v1444_v4  ;;  %v1452_v12 = vld [vmem:[%s1862_s1 + $0x60] sm:$0xff]   ;;  %v1456_v16 = vld [vmem:[%s1862_s1 + $0x58] sm:$0xff]   ;;  %v1460_v20 = vld [vmem:[%s1862_s1 + $0x50] sm:$0xff]  }
   0x6   :  { %1321 = vmatprep.subr.bf16.mxu1 %v1445_v5  ;;  %v1453_v13 = vld [vmem:[%s1862_s1 + $0xe0] sm:$0xff]   ;;  %v1457_v17 = vld [vmem:[%s1862_s1 + $0xd8] sm:$0xff]   ;;  %v1461_v21 = vld [vmem:[%s1862_s1 + $0xd0] sm:$0xff]  }
   0x7   :  { %v1454_v14 = vld [vmem:[%s1862_s1 + $0x20] sm:$0xff]   ;;  %v1458_v18 = vld [vmem:[%s1862_s1 + $0x18] sm:$0xff]   ;;  %v1462_v22 = vld [vmem:[%s1862_s1 + $0x10] sm:$0xff]  }
   0x8   :  { %1282 = vmatpush3.bf16.msra.mxu0 %v1446_v6  ;;  %v1455_v15 = vld [vmem:[%s1862_s1 + $0xa0] sm:$0xff]   ;;  %v1459_v19 = vld [vmem:[%s1862_s1 + $0x98] sm:$0xff]   ;;  %v1463_v23 = vld [vmem:[%s1862_s1 + $0x90] sm:$0xff]  }
   0x9   :  { %1322 = vmatpush3.bf16.msra.mxu1 %v1447_v7  ;;  %1283 = vmatprep.subr.bf16.mxu0 %v1448_v8  ;;  %v1464_v24 = vld [vmem:[%s1862_s1 + $0x48] sm:$0xff]   ;;  %v1468_v28 = vld [vmem:[%s1862_s1 + $0x40] sm:$0xff]   ;;  %v1472_v40 = vld [vmem:[%s1862_s1 + $0x178] sm:$0xff]  }
   0xa   :  { %1323 = vmatprep.subr.bf16.mxu1 %v1449_v9  ;;  %v1465_v25 = vld [vmem:[%s1862_s1 + $0xc8] sm:$0xff]   ;;  %v1469_v29 = vld [vmem:[%s1862_s1 + $0xc0] sm:$0xff]   ;;  %v1473_v41 = vld [vmem:[%s1862_s1 + $0x1f8] sm:$0xff]  }
   0xb   :  { %v1466_v26 = vld [vmem:[%s1862_s1 + $0x8] sm:$0xff]   ;;  %v1470_v30 = vld [vmem:[%s1862_s1] sm:$0xff]   ;;  %v1474_v42 = vld [vmem:[%s1862_s1 + $0x138] sm:$0xff]  }
   0xc   :  { %1284 = vmatpush3.bf16.msra.mxu0 %v1450_v10  ;;  %v1467_v27 = vld [vmem:[%s1862_s1 + $0x88] sm:$0xff]   ;;  %v1471_v31 = vld [vmem:[%s1862_s1 + $0x80] sm:$0xff]   ;;  %v1475_v43 = vld [vmem:[%s1862_s1 + $0x1b8] sm:$0xff]  }
   0xd   :  { %1324 = vmatpush3.bf16.msra.mxu1 %v1451_v11  ;;  %1285 = vmatprep.subr.bf16.mxu0 %v1452_v12  ;;  %v60_v32 = vld [vmem:[%s1863_s0] sm:$0xff]  ;;  %v61_v34 = vld [vmem:[%s1863_s0 + $0x8] sm:$0xff]  ;;  %v1476_v44 = vld [vmem:[%s1862_s1 + $0x170] sm:$0xff]  }
   0xe   :  { %1325 = vmatprep.subr.bf16.mxu1 %v1453_v13  ;;  %v64_v33 = vld [vmem:[%s1863_s0 + $0x20] sm:$0xff]  ;;  %v65_v37 = vld [vmem:[%s1863_s0 + $0x28] sm:$0xff]  ;;  %v1477_v45 = vld [vmem:[%s1862_s1 + $0x1f0] sm:$0xff]  }
   0xf   :  { %v1144_v35 = vcombine.low %v60_v32, %v64_v33  ;;  %v1145_v36 = vcombine.high %v60_v32, %v64_v33  ;;  %v1146_v38 = vcombine.low %v61_v34, %v65_v37  ;;  %v1147_v39 = vcombine.high %v61_v34, %v65_v37  ;;  %v1478_v46 = vld [vmem:[%s1862_s1 + $0x130] sm:$0xff]   ;;  %v68_v48 = vld [vmem:[%s1863_s0 + $0x40] sm:$0xff]  ;;  %v69_v51 = vld [vmem:[%s1863_s0 + $0x48] sm:$0xff] }
  0x10   :  { %1286 = vmatpush3.bf16.msra.mxu0 %v1454_v14  ;;  %v1479_v47 = vld [vmem:[%s1862_s1 + $0x1b0] sm:$0xff]   ;;  %v72_v49 = vld [vmem:[%s1863_s0 + $0x60] sm:$0xff]  ;;  %v73_v52 = vld [vmem:[%s1863_s0 + $0x68] sm:$0xff] }
  0x11   :  { %1326 = vmatpush3.bf16.msra.mxu1 %v1455_v15  ;;  %1287 = vmatprep.subr.bf16.mxu0 %v1456_v16  ;;  %v1153_v50 = vcombine.high %v68_v48, %v72_v49  ;;  %v1152_v53 = vcombine.low %v68_v48, %v72_v49  ;;  %v1155_v54 = vcombine.high %v69_v51, %v73_v52  ;;  %v1480_v56 = vld [vmem:[%s1862_s1 + $0x168] sm:$0xff]   ;;  %v1484_v60 = vld [vmem:[%s1862_s1 + $0x160] sm:$0xff]   ;;  %v1488_v8 = vld [vmem:[%s1862_s1 + $0x158] sm:$0xff]  }
  0x12   :  { %1327 = vmatprep.subr.bf16.mxu1 %v1457_v17  ;;  %796 = vmatprep.mubr.bf16.mxu0 %v1145_v36  ;;  %v1154_v55 = vcombine.low %v69_v51, %v73_v52  ;;  %v1481_v57 = vld [vmem:[%s1862_s1 + $0x1e8] sm:$0xff]   ;;  %v1485_v61 = vld [vmem:[%s1862_s1 + $0x1e0] sm:$0xff]   ;;  %v1489_v9 = vld [vmem:[%s1862_s1 + $0x1d8] sm:$0xff]  }
  0x13   :  { %861 = vmatprep.mubr.bf16.mxu1 %v1147_v39  ;;  %v1482_v58 = vld [vmem:[%s1862_s1 + $0x128] sm:$0xff]   ;;  %v1486_v62 = vld [vmem:[%s1862_s1 + $0x120] sm:$0xff]   ;;  %v1490_v10 = vld [vmem:[%s1862_s1 + $0x118] sm:$0xff]  }
  0x14   :  { %1288 = vmatpush3.bf16.msra.mxu0 %v1458_v18  ;;  %v1483_v59 = vld [vmem:[%s1862_s1 + $0x1a8] sm:$0xff]   ;;  %v1487_v63 = vld [vmem:[%s1862_s1 + $0x1a0] sm:$0xff]   ;;  %v1491_v11 = vld [vmem:[%s1862_s1 + $0x198] sm:$0xff]  }
  0x15   :  { %1328 = vmatpush3.bf16.msra.mxu1 %v1459_v19  ;;  %1289 = vmatprep.subr.bf16.mxu0 %v1460_v20  ;;  %v76_v0 = vld [vmem:[%s1863_s0 + $0x80] sm:$0xff]  ;;  %v77_v2 = vld [vmem:[%s1863_s0 + $0x88] sm:$0xff]  ;;  %v1492_v12 = vld [vmem:[%s1862_s1 + $0x150] sm:$0xff]  }
  0x16   :  { %1329 = vmatprep.subr.bf16.mxu1 %v1461_v21  ;;  %v80_v1 = vld [vmem:[%s1863_s0 + $0xa0] sm:$0xff]  ;;  %v81_v3 = vld [vmem:[%s1863_s0 + $0xa8] sm:$0xff]  ;;  %v1493_v13 = vld [vmem:[%s1862_s1 + $0x1d0] sm:$0xff]  }
  0x17   :  { %v1161_v4 = vcombine.high %v76_v0, %v80_v1  ;;  %v1163_v5 = vcombine.high %v77_v2, %v81_v3  ;;  %v1160_v6 = vcombine.low %v76_v0, %v80_v1  ;;  %v1162_v7 = vcombine.low %v77_v2, %v81_v3  ;;  %v1494_v14 = vld [vmem:[%s1862_s1 + $0x110] sm:$0xff]   ;;  %v84_v16 = vld [vmem:[%s1863_s0 + $0xc0] sm:$0xff]  ;;  %v85_v18 = vld [vmem:[%s1863_s0 + $0xc8] sm:$0xff] }
  0x18   :  { %1290 = vmatpush3.bf16.msra.mxu0 %v1462_v22  ;;  %v1495_v15 = vld [vmem:[%s1862_s1 + $0x190] sm:$0xff]   ;;  %v88_v17 = vld [vmem:[%s1863_s0 + $0xe0] sm:$0xff]  ;;  %v89_v20 = vld [vmem:[%s1863_s0 + $0xe8] sm:$0xff] }
  0x19   :  { %1330 = vmatpush3.bf16.msra.mxu1 %v1463_v23  ;;  %1291 = vmatprep.subr.bf16.mxu0 %v1464_v24  ;;  %v1169_v19 = vcombine.high %v84_v16, %v88_v17  ;;  %v1168_v21 = vcombine.low %v84_v16, %v88_v17  ;;  %v1171_v22 = vcombine.high %v85_v18, %v89_v20  ;;  %v1496_v24 = vld [vmem:[%s1862_s1 + $0x148] sm:$0xff]   ;;  %v62_v32 = vld [vmem:[%s1863_s0 + $0x10] sm:$0xff]  ;;  %v63_v36 = vld [vmem:[%s1863_s0 + $0x18] sm:$0xff] }
  0x1a   :  { %1331 = vmatprep.subr.bf16.mxu1 %v1465_v25  ;;  %v1170_v23 = vcombine.low %v85_v18, %v89_v20  ;;  %v1497_v25 = vld [vmem:[%s1862_s1 + $0x1c8] sm:$0xff]   ;;  %v66_v33 = vld [vmem:[%s1863_s0 + $0x30] sm:$0xff]  ;;  %v67_v37 = vld [vmem:[%s1863_s0 + $0x38] sm:$0xff] }
  0x1b   :  { %v1148_v34 = vcombine.low %v62_v32, %v66_v33  ;;  %v1150_v39 = vcombine.low %v63_v36, %v67_v37  ;;  %v79_v48 = vld [vmem:[%s1863_s0 + $0x98] sm:$0xff] }
  0x1c   :  { %1292 = vmatpush3.bf16.msra.mxu0 %v1466_v26  ;;  %v1498_v26 = vld [vmem:[%s1862_s1 + $0x108] sm:$0xff]   ;;  %v83_v49 = vld [vmem:[%s1863_s0 + $0xb8] sm:$0xff] }
  0x1d   :  { %1332 = vmatpush3.bf16.msra.mxu1 %v1467_v27  ;;  %1293 = vmatprep.subr.bf16.mxu0 %v1468_v28  ;;  %v1499_v27 = vld [vmem:[%s1862_s1 + $0x188] sm:$0xff]   ;;  %v1500_v28 = vld [vmem:[%s1862_s1 + $0x140] sm:$0xff]  }
  0x1e   :  { %1333 = vmatprep.subr.bf16.mxu1 %v1469_v29  ;;  %v1501_v29 = vld [vmem:[%s1862_s1 + $0x1c0] sm:$0xff]  }
  0x20   :  { %1294 = vmatpush3.bf16.msra.mxu0 %v1470_v30  ;;  %v1502_v30 = vld [vmem:[%s1862_s1 + $0x100] sm:$0xff]  }
  0x21   :  { %1334 = vmatpush3.bf16.msra.mxu1 %v1471_v31  ;;  %1359 = vmatprep.subr.bf16.mxu0 %v1472_v40  ;;  %v1503_v31 = vld [vmem:[%s1862_s1 + $0x180] sm:$0xff]   ;;  %v1151_v40 = vcombine.high %v63_v36, %v67_v37 }
  0x22   :  { %1399 = vmatprep.subr.bf16.mxu1 %v1473_v41  ;;  %v74_v41 = vld [vmem:[%s1863_s0 + $0x70] sm:$0xff] }
  0x23   :  { %797 = vmatmul.mubr.bf16.vlgmr.msra.gmra.mxu0 %v1144_v35  ;;  %v1149_v35 = vcombine.high %v62_v32, %v66_v33 }
  0x24   :  { %862 = vmatmul.mubr.bf16.vlgmr.msra.gmra.mxu1 %v1146_v38  ;;  %1360 = vmatpush3.bf16.msra.mxu0 %v1474_v42  ;;  %v70_v38 = vld [vmem:[%s1863_s0 + $0x50] sm:$0xff]  ;;  %v71_v42 = vld [vmem:[%s1863_s0 + $0x58] sm:$0xff] }
  0x25   :  { %1400 = vmatpush3.bf16.msra.mxu1 %v1475_v43  ;;  %1361 = vmatprep.subr.bf16.mxu0 %v1476_v44  ;;  %v75_v43 = vld [vmem:[%s1863_s0 + $0x78] sm:$0xff]  ;;  %v1157_v44 = vcombine.high %v70_v38, %v74_v41 }
  0x26   :  { %1401 = vmatprep.subr.bf16.mxu1 %v1477_v45  ;;  %804 = vmatprep.mubr.bf16.mxu0 %v1153_v50  ;;  %v1159_v45 = vcombine.high %v71_v42, %v75_v43  ;;  %v1156_v50 = vcombine.low %v70_v38, %v74_v41  ;;  %v1158_v51 = vcombine.low %v71_v42, %v75_v43 }
  0x27   :  { %869 = vmatprep.mubr.bf16.mxu1 %v1155_v54  ;;  %v86_v54 = vld [vmem:[%s1863_s0 + $0xd0] sm:$0xff] }
  0x28   :  { %1362 = vmatpush3.bf16.msra.mxu0 %v1478_v46  ;;  %v78_v46 = vld [vmem:[%s1863_s0 + $0x90] sm:$0xff] }
  0x29   :  { %1402 = vmatpush3.bf16.msra.mxu1 %v1479_v47  ;;  %1363 = vmatprep.subr.bf16.mxu0 %v1480_v56  ;;  %v82_v47 = vld [vmem:[%s1863_s0 + $0xb0] sm:$0xff]  ;;  %v87_v56 = vld [vmem:[%s1863_s0 + $0xd8] sm:$0xff] }
  0x2a   :  { %1403 = vmatprep.subr.bf16.mxu1 %v1481_v57  ;;  %v1165_v52 = vcombine.high %v78_v46, %v82_v47  ;;  %v91_v57 = vld [vmem:[%s1863_s0 + $0xf8] sm:$0xff] }
  0x2b   :  { %805 = vmatmul.mubr.bf16.gmra.mxu0 %v1152_v53  ;;  %v1167_v53 = vcombine.high %v79_v48, %v83_v49 }
  0x2c   :  { %870 = vmatmul.mubr.bf16.gmra.mxu1 %v1154_v55  ;;  %1364 = vmatpush3.bf16.msra.mxu0 %v1482_v58  ;;  %v90_v55 = vld [vmem:[%s1863_s0 + $0xf0] sm:$0xff]  ;;  %v1164_v58 = vcombine.low %v78_v46, %v82_v47 }
  0x2d   :  { %1404 = vmatpush3.bf16.msra.mxu1 %v1483_v59  ;;  %1365 = vmatprep.subr.bf16.mxu0 %v1484_v60  ;;  %v1166_v59 = vcombine.low %v79_v48, %v83_v49  ;;  %v1173_v60 = vcombine.high %v86_v54, %v90_v55 }
  0x2e   :  { %1405 = vmatprep.subr.bf16.mxu1 %v1485_v61  ;;  %812 = vmatprep.mubr.bf16.mxu0 %v1161_v4  ;;  %v1175_v61 = vcombine.high %v87_v56, %v91_v57 }
  0x2f   :  { %877 = vmatprep.mubr.bf16.mxu1 %v1163_v5 }
  0x30   :  { %1366 = vmatpush3.bf16.msra.mxu0 %v1486_v62  ;;  %v1172_v62 = vcombine.low %v86_v54, %v90_v55 }
  0x31   :  { %1406 = vmatpush3.bf16.msra.mxu1 %v1487_v63  ;;  %1367 = vmatprep.subr.bf16.mxu0 %v1488_v8  ;;  %v1174_v63 = vcombine.low %v87_v56, %v91_v57 }
  0x32   :  { %1407 = vmatprep.subr.bf16.mxu1 %v1489_v9 }
  0x33   :  { %813 = vmatmul.mubr.bf16.gmra.mxu0 %v1160_v6 }
  0x34   :  { %878 = vmatmul.mubr.bf16.gmra.mxu1 %v1162_v7  ;;  %1368 = vmatpush3.bf16.msra.mxu0 %v1490_v10 }
  0x35   :  { %1408 = vmatpush3.bf16.msra.mxu1 %v1491_v11  ;;  %1369 = vmatprep.subr.bf16.mxu0 %v1492_v12 }
  0x36   :  { %1409 = vmatprep.subr.bf16.mxu1 %v1493_v13  ;;  %820 = vmatprep.mubr.bf16.mxu0 %v1169_v19 }
  0x37   :  { %885 = vmatprep.mubr.bf16.mxu1 %v1171_v22 }
  0x38   :  { %1370 = vmatpush3.bf16.msra.mxu0 %v1494_v14 }
  0x39   :  { %1410 = vmatpush3.bf16.msra.mxu1 %v1495_v15  ;;  %1371 = vmatprep.subr.bf16.mxu0 %v1496_v24 }
  0x3a   :  { %1411 = vmatprep.subr.bf16.mxu1 %v1497_v25 }
  0x3b   :  { %821 = vmatmul.mubr.bf16.gmra.mxu0 %v1168_v21 }
  0x3c   :  { %886 = vmatmul.mubr.bf16.gmra.mxu1 %v1170_v23  ;;  %1372 = vmatpush3.bf16.msra.mxu0 %v1498_v26 }
  0x3d   :  { %1412 = vmatpush3.bf16.msra.mxu1 %v1499_v27  ;;  %1373 = vmatprep.subr.bf16.mxu0 %v1500_v28 }
  0x3e   :  { %1413 = vmatprep.subr.bf16.mxu1 %v1501_v29  ;;  %926 = vmatprep.mubr.bf16.mxu0 %v1149_v35 }
  0x3f   :  { %991 = vmatprep.mubr.bf16.mxu1 %v1151_v40 }
  0x40   :  { %1374 = vmatpush3.bf16.msra.mxu0 %v1502_v30 }
  0x41   :  { %1414 = vmatpush3.bf16.msra.mxu1 %v1503_v31 }
  0x43   :  { %927 = vmatmul.mubr.bf16.vlgmr.msra.gmra.mxu0 %v1148_v34 }
  0x44   :  { %992 = vmatmul.mubr.bf16.vlgmr.msra.gmra.mxu1 %v1150_v39  ;;  %934 = vmatprep.mubr.bf16.mxu0 %v1157_v44 }
  0x45   :  { %999 = vmatprep.mubr.bf16.mxu1 %v1159_v45 }
  0x4b   :  { %935 = vmatmul.mubr.bf16.gmra.mxu0 %v1156_v50 }
  0x4c   :  { %1000 = vmatmul.mubr.bf16.gmra.mxu1 %v1158_v51  ;;  %942 = vmatprep.mubr.bf16.mxu0 %v1165_v52 }
  0x4d   :  { %1007 = vmatprep.mubr.bf16.mxu1 %v1167_v53 }
  0x53   :  { %943 = vmatmul.mubr.bf16.gmra.mxu0 %v1164_v58 }
  0x54   :  { %1008 = vmatmul.mubr.bf16.gmra.mxu1 %v1166_v59  ;;  %950 = vmatprep.mubr.bf16.mxu0 %v1173_v60 }
  0x55   :  { %1015 = vmatprep.mubr.bf16.mxu1 %v1175_v61 }
  0x5b   :  { %951 = vmatmul.mubr.bf16.gmra.mxu0 %v1172_v62 }
  0x5c   :  { %1016 = vmatmul.mubr.bf16.gmra.mxu1 %v1174_v63 }
  0xe3   :  { %v1295_v0 = vpop.f32.mrf.mxu0 }
  0xe4   :  { %v1335_v1 = vpop.f32.mrf.mxu1 }
  0xe5   :  { %v1296_v2 = vpop.f32.mrf.mxu0 }
  0xe6   :  { %v1336_v3 = vpop.f32.mrf.mxu1  ;;  %v1297_v33 = vadd.f32 %v1296_v2, %v1295_v0 }
  0xe7   :  { %v1298_v4 = vpop.f32.mrf.mxu0  ;;  %v1337_v34 = vadd.f32 %v1336_v3, %v1335_v1 }
  0xe8   :  { %v1338_v5 = vpop.f32.mrf.mxu1 }
  0xe9   :  { %v1299_v6 = vpop.f32.mrf.mxu0  ;;  %v864_v42 = vadd.f32 %v1337_v34, %v1297_v33 }
  0xea   :  { %v1339_v7 = vpop.f32.mrf.mxu1  ;;  %v1300_v37 = vadd.f32 %v1299_v6, %v1298_v4 }
  0xeb   :  { %v1301_v8 = vpop.f32.mrf.mxu0  ;;  %v1340_v38 = vadd.f32 %v1339_v7, %v1338_v5 }
  0xec   :  { %v1341_v9 = vpop.f32.mrf.mxu1 }
  0xed   :  { %v1302_v10 = vpop.f32.mrf.mxu0  ;;  %v867_v45 = vadd.f32 %v1340_v38, %v1300_v37 }
  0xee   :  { %v1342_v11 = vpop.f32.mrf.mxu1  ;;  %v1303_v49 = vadd.f32 %v1302_v10, %v1301_v8 }
  0xef   :  { %v1304_v12 = vpop.f32.mrf.mxu0  ;;  %v1343_v51 = vadd.f32 %v1342_v11, %v1341_v9 }
  0xf0   :  { %v1344_v13 = vpop.f32.mrf.mxu1 }
  0xf1   :  { %v1305_v14 = vpop.f32.mrf.mxu0  ;;  %v872_v0 = vadd.f32 %v1343_v51, %v1303_v49 }
  0xf2   :  { %v1345_v15 = vpop.f32.mrf.mxu1  ;;  %v1306_v56 = vadd.f32 %v1305_v14, %v1304_v12 }
  0xf3   :  { %v1307_v16 = vpop.f32.mrf.mxu0  ;;  %v1346_v58 = vadd.f32 %v1345_v15, %v1344_v13 }
  0xf4   :  { %v1347_v17 = vpop.f32.mrf.mxu1 }
  0xf5   :  { %v1308_v18 = vpop.f32.mrf.mxu0  ;;  %v875_v6 = vadd.f32 %v1346_v58, %v1306_v56 }
  0xf6   :  { %v1348_v19 = vpop.f32.mrf.mxu1  ;;  %v1309_v3 = vadd.f32 %v1308_v18, %v1307_v16 }
  0xf7   :  { %v1310_v20 = vpop.f32.mrf.mxu0  ;;  %v1349_v4 = vadd.f32 %v1348_v19, %v1347_v17 }
  0xf8   :  { %v1817_v21 = vpop.f32.mrf.mxu1 }
  0xf9   :  { %v1311_v22 = vpop.f32.mrf.mxu0  ;;  %v880_v15 = vadd.f32 %v1349_v4, %v1309_v3 }
  0xfa   :  { %v1351_v23 = vpop.f32.mrf.mxu1 }
  0xfb   :  { %v1819_v24 = vpop.f32.mrf.mxu0  ;;  %v1352_v16 = vadd.f32 %v1351_v23, %v1817_v21 }
  0xfc   :  { %v1821_v25 = vpop.f32.mrf.mxu1 }
  0xfd   :  { %v1823_v26 = vpop.f32.mrf.mxu0 }
  0xfe   :  { %v1825_v27 = vpop.f32.mrf.mxu1 }
  0xff   :  { %v1827_v28 = vpop.f32.mrf.mxu0 }
 0x100   :  { %v1829_v29 = vpop.f32.mrf.mxu1 }
 0x101   :  { %v1831_v30 = vpop.f32.mrf.mxu0 }
 0x102   :  { %v1833_v31 = vpop.f32.mrf.mxu1 }
 0x103   :  { %v1375_v32 = vpop.f32.mrf.mxu0 }
 0x104   :  { %v1415_v35 = vpop.f32.mrf.mxu1 }
 0x105   :  { %v1376_v36 = vpop.f32.mrf.mxu0 }
 0x106   :  { %v1377_v39 = vadd.f32 %v1376_v36, %v1375_v32  ;;  %v1416_v40 = vpop.f32.mrf.mxu1  ;;  %v1312_v32 = vadd.f32 %v1311_v22, %v1310_v20  ;;  %v1355_v20 = vadd.f32 %v1825_v27, %v1821_v25  ;;  %v1358_v25 = vadd.f32 %v1833_v31, %v1829_v29 }
 0x107   :  { %v1378_v41 = vpop.f32.mrf.mxu0  ;;  %v1417_v52 = vadd.f32 %v1416_v40, %v1415_v35 }
 0x108   :  { %v1418_v43 = vpop.f32.mrf.mxu1  ;;  %v929_v46 = vadd.f32 %v1377_v39, %v864_v42  ;;  %v883_v42 = vadd.f32 %v1352_v16, %v1312_v32 }
 0x109   :  { %v1379_v44 = vpop.f32.mrf.mxu0 }
 0x10a   :  { %v1380_v47 = vadd.f32 %v1379_v44, %v1378_v41  ;;  %v1419_v48 = vpop.f32.mrf.mxu1  ;;  %v994_v59 = vadd.f32 %v1417_v52, %v929_v46 }
 0x10b   :  { %v1381_v50 = vpop.f32.mrf.mxu0  ;;  %v1420_v54 = vadd.f32 %v1419_v48, %v1418_v43  ;;  %v1315_v43 = vadd.f32 %v1823_v26, %v1819_v24  ;;  %v1318_v24 = vadd.f32 %v1831_v30, %v1827_v28 }
 0x10c   :  { %v932_v53 = vadd.f32 %v1380_v47, %v867_v45  ;;  %v1421_v55 = vpop.f32.mrf.mxu1  ;;  %v1081_v23 = vmul.f32 %v994_v59, %v994_v59 }
 0x10d   :  { %v1382_v57 = vpop.f32.mrf.mxu0  ;;  %v888_v52 = vadd.f32 %v1355_v20, %v1315_v43  ;;  %v891_v28 = vadd.f32 %v1358_v25, %v1318_v24 }
 0x10e   :  { %v997_v60 = vadd.f32 %v1420_v54, %v932_v53  ;;  %v1383_v61 = vadd.f32 %v1382_v57, %v1381_v50  ;;  %v1422_v62 = vpop.f32.mrf.mxu1 }
 0x10f   :  { %v1384_v63 = vpop.f32.mrf.mxu0  ;;  %v1423_v11 = vadd.f32 %v1422_v62, %v1421_v55 }
 0x110   :  { %v1259_v1 = vpack.c.bf16 %v997_v60, %v994_v59  ;;  %v1424_v2 = vpop.f32.mrf.mxu1  ;;  %v937_v7 = vadd.f32 %v1383_v61, %v872_v0  ;;  %v1082_v39 = vmul.f32 %v997_v60, %v997_v60  ;;  %v1065_v47 = vadd.f32 %v997_v60, %v994_v59 }
 0x111   :  { %v1385_v5 = vpop.f32.mrf.mxu0 }
 0x112   :  { %1260 = vst [vmem:[%s1864_s2] sm:$0xff] %v1259_v1   ;;  %v1386_v8 = vadd.f32 %v1385_v5, %v1384_v63  ;;  %v1425_v9 = vpop.f32.mrf.mxu1  ;;  %v1002_v17 = vadd.f32 %v1423_v11, %v937_v7  ;;  %v1089_v26 = vadd.f32 %v1082_v39, %v1081_v23 }
 0x113   :  { %v1387_v10 = vpop.f32.mrf.mxu0  ;;  %v1426_v13 = vadd.f32 %v1425_v9, %v1424_v2 }
 0x114   :  { %v940_v12 = vadd.f32 %v1386_v8, %v875_v6  ;;  %v1427_v14 = vpop.f32.mrf.mxu1  ;;  %v1083_v44 = vmul.f32 %v1002_v17, %v1002_v17  ;;  %v1066_v53 = vadd.f32 %v1065_v47, %v1002_v17 }
 0x115   :  { %v1388_v33 = vpop.f32.mrf.mxu0 }
 0x116   :  { %v1005_v18 = vadd.f32 %v1426_v13, %v940_v12  ;;  %v1389_v19 = vadd.f32 %v1388_v33, %v1387_v10  ;;  %v1428_v34 = vpop.f32.mrf.mxu1  ;;  %v1090_v57 = vadd.f32 %v1089_v26, %v1083_v44 }
 0x117   :  { %v1390_v35 = vpop.f32.mrf.mxu0  ;;  %v1429_v40 = vadd.f32 %v1428_v34, %v1427_v14 }
 0x118   :  { %v1264_v36 = vpack.c.bf16 %v1005_v18, %v1002_v17  ;;  %v945_v37 = vadd.f32 %v1389_v19, %v880_v15  ;;  %v1430_v38 = vpop.f32.mrf.mxu1  ;;  %v1084_v27 = vmul.f32 %v1005_v18, %v1005_v18  ;;  %v1067_v60 = vadd.f32 %v1066_v53, %v1005_v18 }
 0x119   :  { %v1391_v41 = vpop.f32.mrf.mxu0 }
 0x11a   :  { %1276 = vst [vmem:[%s1864_s2 + $0x8] sm:$0xff] %v1264_v36   ;;  %v1392_v21 = vadd.f32 %v1391_v41, %v1390_v35  ;;  %v1431_v22 = vpop.f32.mrf.mxu1  ;;  %v1010_v45 = vadd.f32 %v1429_v40, %v945_v37  ;;  %v1091_v30 = vadd.f32 %v1090_v57, %v1084_v27 }
 0x11b   :  { %v1393_v46 = vpop.f32.mrf.mxu0  ;;  %v1432_v49 = vadd.f32 %v1431_v22, %v1430_v38 }
 0x11c   :  { %v948_v48 = vadd.f32 %v1392_v21, %v883_v42  ;;  %v1433_v50 = vpop.f32.mrf.mxu1  ;;  %v1085_v58 = vmul.f32 %v1010_v45, %v1010_v45  ;;  %v1068_v29 = vadd.f32 %v1067_v60, %v1010_v45 }
 0x11d   :  { %v1394_v51 = vpop.f32.mrf.mxu0 }
 0x11e   :  { %v1013_v54 = vadd.f32 %v1432_v49, %v948_v48  ;;  %v1395_v55 = vadd.f32 %v1394_v51, %v1393_v46  ;;  %v1434_v56 = vpop.f32.mrf.mxu1  ;;  %v1092_v5 = vadd.f32 %v1091_v30, %v1085_v58 }
 0x11f   :  { %v1396_v59 = vpop.f32.mrf.mxu0  ;;  %v1435_v63 = vadd.f32 %v1434_v56, %v1433_v50 }
 0x120   :  { %v1269_v61 = vpack.c.bf16 %v1013_v54, %v1010_v45  ;;  %v953_v62 = vadd.f32 %v1395_v55, %v888_v52  ;;  %v1436_v0 = vpop.f32.mrf.mxu1  ;;  %v1086_v31 = vmul.f32 %v1013_v54, %v1013_v54  ;;  %v1069_v6 = vadd.f32 %v1068_v29, %v1013_v54 }
 0x121   :  { %v1397_v1 = vpop.f32.mrf.mxu0 }
 0x122   :  { %1277 = vst [vmem:[%s1864_s2 + $0x10] sm:$0xff] %v1269_v61   ;;  %v1018_v2 = vadd.f32 %v1435_v63, %v953_v62  ;;  %v1398_v3 = vadd.f32 %v1397_v1, %v1396_v59  ;;  %v1437_v4 = vpop.f32.mrf.mxu1  ;;  %v1093_v10 = vadd.f32 %v1092_v5, %v1086_v31 }
 0x123   :  { %v1438_v9 = vadd.f32 %v1437_v4, %v1436_v0 }
 0x124   :  { %v1087_v7 = vmul.f32 %v1018_v2, %v1018_v2  ;;  %v956_v8 = vadd.f32 %v1398_v3, %v891_v28  ;;  %v1070_v11 = vadd.f32 %v1069_v6, %v1018_v2 }
 0x126   :  { %v1021_v12 = vadd.f32 %v1438_v9, %v956_v8  ;;  %v1094_v13 = vadd.f32 %v1093_v10, %v1087_v7 }
 0x128   :  { %v1274_v14 = vpack.c.bf16 %v1021_v12, %v1018_v2  ;;  %v1071_v15 = vadd.f32 %v1070_v11, %v1021_v12  ;;  %v1088_v32 = vmul.f32 %v1021_v12, %v1021_v12 }
 0x12a   :  { %1278 = vst [vmem:[%s1864_s2 + $0x18] sm:$0xff] %v1274_v14   ;;  %v1072_v33 = vrot.slane %v1071_v15, 4  ;;  %v1095_v16 = vadd.f32 %v1094_v13, %v1088_v32 }
 0x12c   :  { %v1073_v17 = vadd.f32 %v1072_v33, %v1071_v15  ;;  %v1096_v18 = vrot.slane %v1095_v16, 4 }
 0x12e   :  { %v1074_v19 = vrot.slane %v1073_v17, 2  ;;  %v1097_v34 = vadd.f32 %v1096_v18, %v1095_v16 }
 0x130   :  { %v1075_v35 = vadd.f32 %v1074_v19, %v1073_v17  ;;  %v1098_v36 = vrot.slane %v1097_v34, 2 }
 0x132   :  { %v1076_v37 = vrot.slane %v1075_v35, 1  ;;  %v1099_v38 = vadd.f32 %v1098_v36, %v1097_v34 }
 0x134   :  { %v1077_v39 = vadd.f32 %v1076_v37, %v1075_v35  ;;  %v1100_v40 = vrot.slane %v1099_v38, 1 }
 0x136   :  { %v1101_v41 = vadd.f32 %v1100_v40, %v1099_v38  ;;  %1079 = vst [vmem:[%s1865_s3] sm:$0xff] %v1077_v39 }
 0x138   :  { %1103 = vst [vmem:[%s1866_s4] sm:$0xff] %v1101_v41 }

// kernel: discriminator_forward.10
= control target key start
LH: loop header
LB: loop body
LE: loop exit
PB: predicated region body
PF: predicated region fallthrough
CT: control target
= control target key end

     0   :  { %s238_s0 = inlined_call_operand.vmem [shape: bf16[64,128], index: 0, kind: input, shape index: {}]   ;;  %s239_s1 = inlined_call_operand.vmem [shape: f32[1,128], index: 1, kind: input, shape index: {}]   ;;  %s240_s2 = inlined_call_operand.vmem [shape: f32[1,128], index: 2, kind: input, shape index: {}]   ;;  %s241_s3 = inlined_call_operand.vmem [shape: bf16[64,128], index: 3, kind: output, shape index: {}]  }
   0x1   :  { %v147_v0 = vld [vmem:[%s238_s0] sm:$0xff]   ;;  %v182_v4 = vld [vmem:[%s238_s0 + $0x8] sm:$0xff]   ;;  %v183_v5 = vld [vmem:[%s238_s0 + $0x10] sm:$0xff]  }
   0x2   :  { %v128_v1 = vld [vmem:[%s239_s1] ss:$0 sm:$0xff]  ;;  %v148_v2 = vunpack.c.l.bf16 %v147_v0  ;;  %v149_v3 = vunpack.c.h.bf16 %v147_v0  ;;  %v184_v6 = vld [vmem:[%s238_s0 + $0x18] sm:$0xff]   ;;  %v152_v8 = vunpack.c.l.bf16 %v182_v4  ;;  %v153_v9 = vunpack.c.h.bf16 %v182_v4 }
   0x3   :  { %v129_v7 = vld [vmem:[%s240_s2] ss:$0 sm:$0xff]  ;;  %v156_v10 = vunpack.c.l.bf16 %v183_v5  ;;  %v157_v11 = vunpack.c.h.bf16 %v183_v5  ;;  %v160_v14 = vunpack.c.l.bf16 %v184_v6  ;;  %v161_v15 = vunpack.c.h.bf16 %v184_v6 }
   0x4   :  { %v37_v12 = vmul.f32 %v148_v2, %v128_v1  ;;  %v38_v13 = vmul.f32 %v149_v3, %v128_v1  ;;  %v39_v16 = vmul.f32 %v152_v8, %v128_v1  ;;  %v40_v17 = vmul.f32 %v153_v9, %v128_v1 }
   0x5   :  { %v41_v18 = vmul.f32 %v156_v10, %v128_v1  ;;  %v42_v19 = vmul.f32 %v157_v11, %v128_v1  ;;  %v43_v22 = vmul.f32 %v160_v14, %v128_v1  ;;  %v44_v23 = vmul.f32 %v161_v15, %v128_v1 }
   0x6   :  { %v52_v20 = vadd.f32 %v129_v7, %v37_v12  ;;  %v53_v21 = vadd.f32 %v129_v7, %v38_v13  ;;  %v54_v24 = vadd.f32 %v129_v7, %v39_v16  ;;  %v55_v25 = vadd.f32 %v129_v7, %v40_v17 }
   0x7   :  { %v56_v26 = vadd.f32 %v129_v7, %v41_v18  ;;  %v57_v27 = vadd.f32 %v129_v7, %v42_v19  ;;  %v58_v40 = vadd.f32 %v129_v7, %v43_v22  ;;  %v59_v41 = vadd.f32 %v129_v7, %v44_v23 }
   0x8   :  { %vm60_vm0 = vcmp.gt.f32.partialorder %v52_v20, 0.0  ;;  %vm61_vm1 = vcmp.gt.f32.partialorder %v53_v21, 0.0  ;;  %v68_v28 = vmul.f32 0.2, %v52_v20  ;;  %v69_v29 = vmul.f32 0.2, %v53_v21 }
   0x9   :  { %vm62_vm2 = vcmp.gt.f32.partialorder %v54_v24, 0.0  ;;  %vm63_vm3 = vcmp.gt.f32.partialorder %v55_v25, 0.0  ;;  %v70_v30 = vmul.f32 0.2, %v54_v24  ;;  %v71_v31 = vmul.f32 0.2, %v55_v25 }
   0xa   :  { %v76_v32 = vsel %vm60_vm0, %v52_v20, %v68_v28  ;;  %v77_v33 = vsel %vm61_vm1, %v53_v21, %v69_v29  ;;  %vm64_vm4 = vcmp.gt.f32.partialorder %v56_v26, 0.0  ;;  %vm65_vm5 = vcmp.gt.f32.partialorder %v57_v27, 0.0 }
   0xb   :  { %v165_v34 = vpack.c.bf16 %v77_v33, %v76_v32  ;;  %v78_v35 = vsel %vm62_vm2, %v54_v24, %v70_v30  ;;  %v79_v36 = vsel %vm63_vm3, %v55_v25, %v71_v31  ;;  %v72_v37 = vmul.f32 0.2, %v56_v26 }
   0xc   :  { %v170_v38 = vpack.c.bf16 %v79_v36, %v78_v35  ;;  %v73_v39 = vmul.f32 0.2, %v57_v27  ;;  %vm66_vm6 = vcmp.gt.f32.partialorder %v58_v40, 0.0  ;;  %vm67_vm7 = vcmp.gt.f32.partialorder %v59_v41, 0.0 }
   0xd   :  { %166 = vst [vmem:[%s241_s3] sm:$0xff] %v165_v34   ;;  %v80_v42 = vsel %vm64_vm4, %v56_v26, %v72_v37  ;;  %v74_v44 = vmul.f32 0.2, %v58_v40  ;;  %v75_v46 = vmul.f32 0.2, %v59_v41 }
   0xe   :  { %185 = vst [vmem:[%s241_s3 + $0x8] sm:$0xff] %v170_v38   ;;  %v81_v43 = vsel %vm65_vm5, %v57_v27, %v73_v39 }
   0xf   :  { %v175_v45 = vpack.c.bf16 %v81_v43, %v80_v42  ;;  %v82_v47 = vsel %vm66_vm6, %v58_v40, %v74_v44  ;;  %v83_v48 = vsel %vm67_vm7, %v59_v41, %v75_v46 }
  0x10   :  { %v180_v49 = vpack.c.bf16 %v83_v48, %v82_v47 }
  0x11   :  { %186 = vst [vmem:[%s241_s3 + $0x10] sm:$0xff] %v175_v45  }
  0x12   :  { %187 = vst [vmem:[%s241_s3 + $0x18] sm:$0xff] %v180_v49  }

// kernel: discriminator_forward.11
= control target key start
LH: loop header
LB: loop body
LE: loop exit
PB: predicated region body
PF: predicated region fallthrough
CT: control target
= control target key end

     0   :  { %s1505_s1 = inlined_call_operand.vmem [shape: bf16[1024,128], index: 1, kind: input, shape index: {}]   ;;  %s1506_s0 = inlined_call_operand.vmem [shape: bf16[32,1024], index: 0, kind: input, shape index: {}]   ;;  %s1507_s2 = inlined_call_operand.vmem [shape: bf16[32,128], index: 2, kind: output, shape index: {0}]   ;;  %s1508_s3 = inlined_call_operand.vmem [shape: f32[8,128], index: 3, kind: output, shape index: {1}]   ;;  %s1509_s4 = inlined_call_operand.vmem [shape: f32[8,128], index: 4, kind: output, shape index: {2}]  }
   0x1   :  { %v1164_v0 = vld [vmem:[%s1505_s1 + $0x78] sm:$0xff]   ;;  %v1168_v4 = vld [vmem:[%s1505_s1 + $0x70] sm:$0xff]   ;;  %v1172_v8 = vld [vmem:[%s1505_s1 + $0x68] sm:$0xff]  }
   0x2   :  { %v1165_v1 = vld [vmem:[%s1505_s1 + $0xf8] sm:$0xff]   ;;  %1051 = vmatprep.subr.bf16.mxu0 %v1164_v0  ;;  %v1169_v5 = vld [vmem:[%s1505_s1 + $0xf0] sm:$0xff]   ;;  %v1173_v9 = vld [vmem:[%s1505_s1 + $0xe8] sm:$0xff]  }
   0x3   :  { %v1166_v2 = vld [vmem:[%s1505_s1 + $0x38] sm:$0xff]   ;;  %1079 = vmatprep.subr.bf16.mxu1 %v1165_v1  ;;  %v1170_v6 = vld [vmem:[%s1505_s1 + $0x30] sm:$0xff]   ;;  %v1174_v10 = vld [vmem:[%s1505_s1 + $0x28] sm:$0xff]  }
   0x4   :  { %v1167_v3 = vld [vmem:[%s1505_s1 + $0xb8] sm:$0xff]   ;;  %1052 = vmatpush3.bf16.msra.mxu0 %v1166_v2  ;;  %v1171_v7 = vld [vmem:[%s1505_s1 + $0xb0] sm:$0xff]   ;;  %v1175_v11 = vld [vmem:[%s1505_s1 + $0xa8] sm:$0xff]  }
   0x5   :  { %1080 = vmatpush3.bf16.msra.mxu1 %v1167_v3  ;;  %1053 = vmatprep.subr.bf16.mxu0 %v1168_v4  ;;  %v1176_v12 = vld [vmem:[%s1505_s1 + $0x60] sm:$0xff]   ;;  %v1180_v16 = vld [vmem:[%s1505_s1 + $0x58] sm:$0xff]   ;;  %v1184_v20 = vld [vmem:[%s1505_s1 + $0x50] sm:$0xff]  }
   0x6   :  { %1081 = vmatprep.subr.bf16.mxu1 %v1169_v5  ;;  %v1177_v13 = vld [vmem:[%s1505_s1 + $0xe0] sm:$0xff]   ;;  %v1181_v17 = vld [vmem:[%s1505_s1 + $0xd8] sm:$0xff]   ;;  %v1185_v21 = vld [vmem:[%s1505_s1 + $0xd0] sm:$0xff]  }
   0x7   :  { %v1178_v14 = vld [vmem:[%s1505_s1 + $0x20] sm:$0xff]   ;;  %v1182_v18 = vld [vmem:[%s1505_s1 + $0x18] sm:$0xff]   ;;  %v1186_v22 = vld [vmem:[%s1505_s1 + $0x10] sm:$0xff]  }
   0x8   :  { %1054 = vmatpush3.bf16.msra.mxu0 %v1170_v6  ;;  %v1179_v15 = vld [vmem:[%s1505_s1 + $0xa0] sm:$0xff]   ;;  %v1183_v19 = vld [vmem:[%s1505_s1 + $0x98] sm:$0xff]   ;;  %v1187_v23 = vld [vmem:[%s1505_s1 + $0x90] sm:$0xff]  }
   0x9   :  { %1082 = vmatpush3.bf16.msra.mxu1 %v1171_v7  ;;  %1055 = vmatprep.subr.bf16.mxu0 %v1172_v8  ;;  %v1188_v24 = vld [vmem:[%s1505_s1 + $0x48] sm:$0xff]   ;;  %v1192_v28 = vld [vmem:[%s1505_s1 + $0x40] sm:$0xff]   ;;  %v1196_v40 = vld [vmem:[%s1505_s1 + $0x178] sm:$0xff]  }
   0xa   :  { %1083 = vmatprep.subr.bf16.mxu1 %v1173_v9  ;;  %v1189_v25 = vld [vmem:[%s1505_s1 + $0xc8] sm:$0xff]   ;;  %v1193_v29 = vld [vmem:[%s1505_s1 + $0xc0] sm:$0xff]   ;;  %v1197_v41 = vld [vmem:[%s1505_s1 + $0x1f8] sm:$0xff]  }
   0xb   :  { %v1190_v26 = vld [vmem:[%s1505_s1 + $0x8] sm:$0xff]   ;;  %v1194_v30 = vld [vmem:[%s1505_s1] sm:$0xff]   ;;  %v1198_v42 = vld [vmem:[%s1505_s1 + $0x138] sm:$0xff]  }
   0xc   :  { %1056 = vmatpush3.bf16.msra.mxu0 %v1174_v10  ;;  %v1191_v27 = vld [vmem:[%s1505_s1 + $0x88] sm:$0xff]   ;;  %v1195_v31 = vld [vmem:[%s1505_s1 + $0x80] sm:$0xff]   ;;  %v1199_v43 = vld [vmem:[%s1505_s1 + $0x1b8] sm:$0xff]  }
   0xd   :  { %1084 = vmatpush3.bf16.msra.mxu1 %v1175_v11  ;;  %1057 = vmatprep.subr.bf16.mxu0 %v1176_v12  ;;  %v60_v32 = vld [vmem:[%s1506_s0] sm:$0xff]  ;;  %v61_v34 = vld [vmem:[%s1506_s0 + $0x8] sm:$0xff]  ;;  %v1200_v44 = vld [vmem:[%s1505_s1 + $0x170] sm:$0xff]  }
   0xe   :  { %1085 = vmatprep.subr.bf16.mxu1 %v1177_v13  ;;  %v64_v33 = vld [vmem:[%s1506_s0 + $0x20] sm:$0xff]  ;;  %v65_v37 = vld [vmem:[%s1506_s0 + $0x28] sm:$0xff]  ;;  %v1201_v45 = vld [vmem:[%s1505_s1 + $0x1f0] sm:$0xff]  }
   0xf   :  { %v952_v35 = vcombine.low %v60_v32, %v64_v33  ;;  %v953_v36 = vcombine.high %v60_v32, %v64_v33  ;;  %v954_v38 = vcombine.low %v61_v34, %v65_v37  ;;  %v955_v39 = vcombine.high %v61_v34, %v65_v37  ;;  %v1202_v46 = vld [vmem:[%s1505_s1 + $0x130] sm:$0xff]   ;;  %v1204_v48 = vld [vmem:[%s1505_s1 + $0x168] sm:$0xff]   ;;  %v1208_v52 = vld [vmem:[%s1505_s1 + $0x160] sm:$0xff]  }
  0x10   :  { %1058 = vmatpush3.bf16.msra.mxu0 %v1178_v14  ;;  %v1203_v47 = vld [vmem:[%s1505_s1 + $0x1b0] sm:$0xff]   ;;  %v1205_v49 = vld [vmem:[%s1505_s1 + $0x1e8] sm:$0xff]   ;;  %v1209_v53 = vld [vmem:[%s1505_s1 + $0x1e0] sm:$0xff]  }
  0x11   :  { %1086 = vmatpush3.bf16.msra.mxu1 %v1179_v15  ;;  %1059 = vmatprep.subr.bf16.mxu0 %v1180_v16  ;;  %v1206_v50 = vld [vmem:[%s1505_s1 + $0x128] sm:$0xff]   ;;  %v1210_v54 = vld [vmem:[%s1505_s1 + $0x120] sm:$0xff]   ;;  %v1212_v56 = vld [vmem:[%s1505_s1 + $0x158] sm:$0xff]  }
  0x12   :  { %1087 = vmatprep.subr.bf16.mxu1 %v1181_v17  ;;  %700 = vmatprep.mubr.bf16.mxu0 %v953_v36  ;;  %v1207_v51 = vld [vmem:[%s1505_s1 + $0x1a8] sm:$0xff]   ;;  %v1211_v55 = vld [vmem:[%s1505_s1 + $0x1a0] sm:$0xff]   ;;  %v1213_v57 = vld [vmem:[%s1505_s1 + $0x1d8] sm:$0xff]  }
  0x13   :  { %749 = vmatprep.mubr.bf16.mxu1 %v955_v39  ;;  %v68_v58 = vld [vmem:[%s1506_s0 + $0x40] sm:$0xff]  ;;  %v69_v61 = vld [vmem:[%s1506_s0 + $0x48] sm:$0xff]  ;;  %v1214_v1 = vld [vmem:[%s1505_s1 + $0x118] sm:$0xff]  }
  0x14   :  { %1060 = vmatpush3.bf16.msra.mxu0 %v1182_v18  ;;  %v72_v59 = vld [vmem:[%s1506_s0 + $0x60] sm:$0xff]  ;;  %v73_v62 = vld [vmem:[%s1506_s0 + $0x68] sm:$0xff]  ;;  %v1215_v3 = vld [vmem:[%s1505_s1 + $0x198] sm:$0xff]  }
  0x15   :  { %1088 = vmatpush3.bf16.msra.mxu1 %v1183_v19  ;;  %1061 = vmatprep.subr.bf16.mxu0 %v1184_v20  ;;  %v961_v60 = vcombine.high %v68_v58, %v72_v59  ;;  %v960_v63 = vcombine.low %v68_v58, %v72_v59  ;;  %v963_v0 = vcombine.high %v69_v61, %v73_v62  ;;  %v1216_v4 = vld [vmem:[%s1505_s1 + $0x150] sm:$0xff]   ;;  %v1220_v8 = vld [vmem:[%s1505_s1 + $0x148] sm:$0xff]   ;;  %v1224_v12 = vld [vmem:[%s1505_s1 + $0x140] sm:$0xff]  }
  0x16   :  { %1089 = vmatprep.subr.bf16.mxu1 %v1185_v21  ;;  %v962_v2 = vcombine.low %v69_v61, %v73_v62  ;;  %v1217_v5 = vld [vmem:[%s1505_s1 + $0x1d0] sm:$0xff]   ;;  %v1221_v9 = vld [vmem:[%s1505_s1 + $0x1c8] sm:$0xff]   ;;  %v1225_v13 = vld [vmem:[%s1505_s1 + $0x1c0] sm:$0xff]  }
  0x17   :  { %v1218_v6 = vld [vmem:[%s1505_s1 + $0x110] sm:$0xff]   ;;  %v1222_v10 = vld [vmem:[%s1505_s1 + $0x108] sm:$0xff]   ;;  %v1226_v14 = vld [vmem:[%s1505_s1 + $0x100] sm:$0xff]  }
  0x18   :  { %1062 = vmatpush3.bf16.msra.mxu0 %v1186_v22  ;;  %v1219_v7 = vld [vmem:[%s1505_s1 + $0x190] sm:$0xff]   ;;  %v1223_v11 = vld [vmem:[%s1505_s1 + $0x188] sm:$0xff]   ;;  %v1227_v15 = vld [vmem:[%s1505_s1 + $0x180] sm:$0xff]  }
  0x19   :  { %1090 = vmatpush3.bf16.msra.mxu1 %v1187_v23  ;;  %1063 = vmatprep.subr.bf16.mxu0 %v1188_v24  ;;  %v62_v16 = vld [vmem:[%s1506_s0 + $0x10] sm:$0xff]  ;;  %v63_v18 = vld [vmem:[%s1506_s0 + $0x18] sm:$0xff] }
  0x1a   :  { %1091 = vmatprep.subr.bf16.mxu1 %v1189_v25  ;;  %v66_v17 = vld [vmem:[%s1506_s0 + $0x30] sm:$0xff]  ;;  %v67_v19 = vld [vmem:[%s1506_s0 + $0x38] sm:$0xff] }
  0x1b   :  { %v956_v20 = vcombine.low %v62_v16, %v66_v17  ;;  %v957_v21 = vcombine.high %v62_v16, %v66_v17  ;;  %v958_v22 = vcombine.low %v63_v18, %v67_v19  ;;  %v959_v23 = vcombine.high %v63_v18, %v67_v19  ;;  %v70_v24 = vld [vmem:[%s1506_s0 + $0x50] sm:$0xff] }
  0x1c   :  { %1064 = vmatpush3.bf16.msra.mxu0 %v1190_v26  ;;  %v74_v25 = vld [vmem:[%s1506_s0 + $0x70] sm:$0xff]  ;;  %v71_v26 = vld [vmem:[%s1506_s0 + $0x58] sm:$0xff] }
  0x1d   :  { %1092 = vmatpush3.bf16.msra.mxu1 %v1191_v27  ;;  %1065 = vmatprep.subr.bf16.mxu0 %v1192_v28  ;;  %v965_v27 = vcombine.high %v70_v24, %v74_v25  ;;  %v75_v28 = vld [vmem:[%s1506_s0 + $0x78] sm:$0xff] }
  0x1e   :  { %1093 = vmatprep.subr.bf16.mxu1 %v1193_v29  ;;  %v967_v29 = vcombine.high %v71_v26, %v75_v28 }
  0x20   :  { %1066 = vmatpush3.bf16.msra.mxu0 %v1194_v30  ;;  %v964_v30 = vcombine.low %v70_v24, %v74_v25 }
  0x21   :  { %1094 = vmatpush3.bf16.msra.mxu1 %v1195_v31  ;;  %1107 = vmatprep.subr.bf16.mxu0 %v1196_v40  ;;  %v966_v31 = vcombine.low %v71_v26, %v75_v28 }
  0x22   :  { %1135 = vmatprep.subr.bf16.mxu1 %v1197_v41 }
  0x23   :  { %701 = vmatmul.mubr.bf16.vlgmr.msra.gmra.mxu0 %v952_v35 }
  0x24   :  { %750 = vmatmul.mubr.bf16.vlgmr.msra.gmra.mxu1 %v954_v38  ;;  %1108 = vmatpush3.bf16.msra.mxu0 %v1198_v42 }
  0x25   :  { %1136 = vmatpush3.bf16.msra.mxu1 %v1199_v43  ;;  %1109 = vmatprep.subr.bf16.mxu0 %v1200_v44 }
  0x26   :  { %1137 = vmatprep.subr.bf16.mxu1 %v1201_v45  ;;  %708 = vmatprep.mubr.bf16.mxu0 %v961_v60 }
  0x27   :  { %757 = vmatprep.mubr.bf16.mxu1 %v963_v0 }
  0x28   :  { %1110 = vmatpush3.bf16.msra.mxu0 %v1202_v46 }
  0x29   :  { %1138 = vmatpush3.bf16.msra.mxu1 %v1203_v47  ;;  %1111 = vmatprep.subr.bf16.mxu0 %v1204_v48 }
  0x2a   :  { %1139 = vmatprep.subr.bf16.mxu1 %v1205_v49 }
  0x2b   :  { %709 = vmatmul.mubr.bf16.gmra.mxu0 %v960_v63 }
  0x2c   :  { %1112 = vmatpush3.bf16.msra.mxu0 %v1206_v50  ;;  %758 = vmatmul.mubr.bf16.gmra.mxu1 %v962_v2 }
  0x2d   :  { %1140 = vmatpush3.bf16.msra.mxu1 %v1207_v51  ;;  %1113 = vmatprep.subr.bf16.mxu0 %v1208_v52 }
  0x2e   :  { %1141 = vmatprep.subr.bf16.mxu1 %v1209_v53  ;;  %798 = vmatprep.mubr.bf16.mxu0 %v957_v21 }
  0x2f   :  { %847 = vmatprep.mubr.bf16.mxu1 %v959_v23 }
  0x30   :  { %1114 = vmatpush3.bf16.msra.mxu0 %v1210_v54 }
  0x31   :  { %1142 = vmatpush3.bf16.msra.mxu1 %v1211_v55  ;;  %1115 = vmatprep.subr.bf16.mxu0 %v1212_v56 }
  0x32   :  { %1143 = vmatprep.subr.bf16.mxu1 %v1213_v57 }
  0x34   :  { %1116 = vmatpush3.bf16.msra.mxu0 %v1214_v1 }
  0x35   :  { %1144 = vmatpush3.bf16.msra.mxu1 %v1215_v3  ;;  %1117 = vmatprep.subr.bf16.mxu0 %v1216_v4 }
  0x36   :  { %1145 = vmatprep.subr.bf16.mxu1 %v1217_v5 }
  0x38   :  { %1118 = vmatpush3.bf16.msra.mxu0 %v1218_v6 }
  0x39   :  { %1146 = vmatpush3.bf16.msra.mxu1 %v1219_v7  ;;  %1119 = vmatprep.subr.bf16.mxu0 %v1220_v8 }
  0x3a   :  { %1147 = vmatprep.subr.bf16.mxu1 %v1221_v9 }
  0x3c   :  { %1120 = vmatpush3.bf16.msra.mxu0 %v1222_v10 }
  0x3d   :  { %1148 = vmatpush3.bf16.msra.mxu1 %v1223_v11  ;;  %1121 = vmatprep.subr.bf16.mxu0 %v1224_v12 }
  0x3e   :  { %1149 = vmatprep.subr.bf16.mxu1 %v1225_v13 }
  0x40   :  { %1122 = vmatpush3.bf16.msra.mxu0 %v1226_v14 }
  0x41   :  { %1150 = vmatpush3.bf16.msra.mxu1 %v1227_v15 }
  0x43   :  { %799 = vmatmul.mubr.bf16.vlgmr.msra.gmra.mxu0 %v956_v20 }
  0x44   :  { %848 = vmatmul.mubr.bf16.vlgmr.msra.gmra.mxu1 %v958_v22  ;;  %806 = vmatprep.mubr.bf16.mxu0 %v965_v27 }
  0x45   :  { %855 = vmatprep.mubr.bf16.mxu1 %v967_v29 }
  0x4b   :  { %807 = vmatmul.mubr.bf16.gmra.mxu0 %v964_v30 }
  0x4c   :  { %856 = vmatmul.mubr.bf16.gmra.mxu1 %v966_v31 }
  0xe3   :  { %v1067_v32 = vpop.f32.mrf.mxu0 }
  0xe4   :  { %v1095_v33 = vpop.f32.mrf.mxu1 }
  0xe5   :  { %v1068_v34 = vpop.f32.mrf.mxu0 }
  0xe6   :  { %v1096_v35 = vpop.f32.mrf.mxu1  ;;  %v1069_v50 = vadd.f32 %v1068_v34, %v1067_v32 }
  0xe7   :  { %v1070_v36 = vpop.f32.mrf.mxu0  ;;  %v1097_v51 = vadd.f32 %v1096_v35, %v1095_v33 }
  0xe8   :  { %v1098_v37 = vpop.f32.mrf.mxu1 }
  0xe9   :  { %v1071_v38 = vpop.f32.mrf.mxu0  ;;  %v752_v59 = vadd.f32 %v1097_v51, %v1069_v50 }
  0xea   :  { %v1099_v39 = vpop.f32.mrf.mxu1  ;;  %v1072_v54 = vadd.f32 %v1071_v38, %v1070_v36 }
  0xeb   :  { %v1073_v40 = vpop.f32.mrf.mxu0  ;;  %v1100_v55 = vadd.f32 %v1099_v39, %v1098_v37 }
  0xec   :  { %v1101_v41 = vpop.f32.mrf.mxu1 }
  0xed   :  { %v1074_v42 = vpop.f32.mrf.mxu0  ;;  %v755_v0 = vadd.f32 %v1100_v55, %v1072_v54 }
  0xee   :  { %v1102_v43 = vpop.f32.mrf.mxu1  ;;  %v1075_v60 = vadd.f32 %v1074_v42, %v1073_v40 }
  0xef   :  { %v1076_v44 = vpop.f32.mrf.mxu0  ;;  %v1103_v61 = vadd.f32 %v1102_v43, %v1101_v41 }
  0xf0   :  { %v1104_v45 = vpop.f32.mrf.mxu1 }
  0xf1   :  { %v1077_v46 = vpop.f32.mrf.mxu0  ;;  %v760_v8 = vadd.f32 %v1103_v61, %v1075_v60 }
  0xf2   :  { %v1105_v47 = vpop.f32.mrf.mxu1  ;;  %v1078_v9 = vadd.f32 %v1077_v46, %v1076_v44 }
  0xf3   :  { %v1106_v12 = vadd.f32 %v1105_v47, %v1104_v45 }
  0xf5   :  { %v763_v23 = vadd.f32 %v1106_v12, %v1078_v9 }
 0x103   :  { %v1123_v48 = vpop.f32.mrf.mxu0 }
 0x104   :  { %v1151_v49 = vpop.f32.mrf.mxu1 }
 0x105   :  { %v1124_v52 = vpop.f32.mrf.mxu0 }
 0x106   :  { %v1152_v53 = vpop.f32.mrf.mxu1  ;;  %v1125_v56 = vadd.f32 %v1124_v52, %v1123_v48 }
 0x107   :  { %v1126_v57 = vpop.f32.mrf.mxu0  ;;  %v1153_v5 = vadd.f32 %v1152_v53, %v1151_v49 }
 0x108   :  { %v1154_v58 = vpop.f32.mrf.mxu1  ;;  %v801_v1 = vadd.f32 %v1125_v56, %v752_v59 }
 0x109   :  { %v1127_v62 = vpop.f32.mrf.mxu0 }
 0x10a   :  { %v1155_v63 = vpop.f32.mrf.mxu1  ;;  %v1128_v2 = vadd.f32 %v1127_v62, %v1126_v57  ;;  %v850_v13 = vadd.f32 %v1153_v5, %v801_v1 }
 0x10b   :  { %v1129_v3 = vpop.f32.mrf.mxu0  ;;  %v1156_v7 = vadd.f32 %v1155_v63, %v1154_v58 }
 0x10c   :  { %v1157_v4 = vpop.f32.mrf.mxu1  ;;  %v804_v6 = vadd.f32 %v1128_v2, %v755_v0  ;;  %v897_v27 = vmul.f32 %v850_v13, %v850_v13 }
 0x10d   :  { %v1130_v10 = vpop.f32.mrf.mxu0 }
 0x10e   :  { %v1158_v11 = vpop.f32.mrf.mxu1  ;;  %v853_v14 = vadd.f32 %v1156_v7, %v804_v6  ;;  %v1131_v15 = vadd.f32 %v1130_v10, %v1129_v3 }
 0x10f   :  { %v1132_v16 = vpop.f32.mrf.mxu0  ;;  %v1159_v20 = vadd.f32 %v1158_v11, %v1157_v4 }
 0x110   :  { %v1160_v17 = vpop.f32.mrf.mxu1  ;;  %v1043_v18 = vpack.c.bf16 %v853_v14, %v850_v13  ;;  %v809_v19 = vadd.f32 %v1131_v15, %v760_v8  ;;  %v898_v24 = vmul.f32 %v853_v14, %v853_v14  ;;  %v885_v28 = vadd.f32 %v853_v14, %v850_v13 }
 0x111   :  { %v1133_v21 = vpop.f32.mrf.mxu0 }
 0x112   :  { %v1161_v22 = vpop.f32.mrf.mxu1  ;;  %1044 = vst [vmem:[%s1507_s2] sm:$0xff] %v1043_v18   ;;  %v858_v25 = vadd.f32 %v1159_v20, %v809_v19  ;;  %v1134_v26 = vadd.f32 %v1133_v21, %v1132_v16  ;;  %v901_v32 = vadd.f32 %v898_v24, %v897_v27 }
 0x113   :  { %v1162_v31 = vadd.f32 %v1161_v22, %v1160_v17 }
 0x114   :  { %v899_v29 = vmul.f32 %v858_v25, %v858_v25  ;;  %v812_v30 = vadd.f32 %v1134_v26, %v763_v23  ;;  %v886_v33 = vadd.f32 %v885_v28, %v858_v25 }
 0x116   :  { %v861_v34 = vadd.f32 %v1162_v31, %v812_v30  ;;  %v902_v35 = vadd.f32 %v901_v32, %v899_v29 }
 0x118   :  { %v1048_v36 = vpack.c.bf16 %v861_v34, %v858_v25  ;;  %v887_v37 = vadd.f32 %v886_v33, %v861_v34  ;;  %v900_v38 = vmul.f32 %v861_v34, %v861_v34 }
 0x11a   :  { %1050 = vst [vmem:[%s1507_s2 + $0x8] sm:$0xff] %v1048_v36   ;;  %v888_v39 = vrot.slane %v887_v37, 4  ;;  %v903_v40 = vadd.f32 %v902_v35, %v900_v38 }
 0x11c   :  { %v889_v41 = vadd.f32 %v888_v39, %v887_v37  ;;  %v904_v42 = vrot.slane %v903_v40, 4 }
 0x11e   :  { %v890_v43 = vrot.slane %v889_v41, 2  ;;  %v905_v44 = vadd.f32 %v904_v42, %v903_v40 }
 0x120   :  { %v891_v45 = vadd.f32 %v890_v43, %v889_v41  ;;  %v906_v46 = vrot.slane %v905_v44, 2 }
 0x122   :  { %v892_v47 = vrot.slane %v891_v45, 1  ;;  %v907_v48 = vadd.f32 %v906_v46, %v905_v44 }
 0x124   :  { %v893_v49 = vadd.f32 %v892_v47, %v891_v45  ;;  %v908_v50 = vrot.slane %v907_v48, 1 }
 0x126   :  { %v909_v51 = vadd.f32 %v908_v50, %v907_v48  ;;  %895 = vst [vmem:[%s1508_s3] sm:$0xff] %v893_v49 }
 0x128   :  { %911 = vst [vmem:[%s1509_s4] sm:$0xff] %v909_v51 }

// kernel: discriminator_forward.12
= control target key start
LH: loop header
LB: loop body
LE: loop exit
PB: predicated region body
PF: predicated region fallthrough
CT: control target
= control target key end

     0   :  { %s148_s0 = inlined_call_operand.vmem [shape: bf16[32,128], index: 0, kind: input, shape index: {}]   ;;  %s149_s1 = inlined_call_operand.vmem [shape: f32[1,128], index: 1, kind: input, shape index: {}]   ;;  %s150_s2 = inlined_call_operand.vmem [shape: f32[1,128], index: 2, kind: input, shape index: {}]   ;;  %s151_s3 = inlined_call_operand.vmem [shape: bf16[32,128], index: 3, kind: output, shape index: {}]  }
   0x1   :  { %v91_v0 = vld [vmem:[%s148_s0] sm:$0xff]   ;;  %v108_v4 = vld [vmem:[%s148_s0 + $0x8] sm:$0xff]  }
   0x2   :  { %v80_v1 = vld [vmem:[%s149_s1] ss:$0 sm:$0xff]  ;;  %v92_v2 = vunpack.c.l.bf16 %v91_v0  ;;  %v93_v3 = vunpack.c.h.bf16 %v91_v0  ;;  %v96_v6 = vunpack.c.l.bf16 %v108_v4  ;;  %v97_v7 = vunpack.c.h.bf16 %v108_v4 }
   0x3   :  { %v81_v5 = vld [vmem:[%s150_s2] ss:$0 sm:$0xff] }
   0x4   :  { %v29_v8 = vmul.f32 %v92_v2, %v80_v1  ;;  %v30_v9 = vmul.f32 %v93_v3, %v80_v1  ;;  %v31_v10 = vmul.f32 %v96_v6, %v80_v1  ;;  %v32_v11 = vmul.f32 %v97_v7, %v80_v1 }
   0x6   :  { %v40_v12 = vadd.f32 %v81_v5, %v29_v8  ;;  %v41_v13 = vadd.f32 %v81_v5, %v30_v9  ;;  %v42_v14 = vadd.f32 %v81_v5, %v31_v10  ;;  %v43_v15 = vadd.f32 %v81_v5, %v32_v11 }
   0x8   :  { %vm44_vm0 = vcmp.gt.f32.partialorder %v40_v12, 0.0  ;;  %vm45_vm1 = vcmp.gt.f32.partialorder %v41_v13, 0.0  ;;  %v48_v16 = vmul.f32 0.2, %v40_v12  ;;  %v49_v17 = vmul.f32 0.2, %v41_v13 }
   0x9   :  { %vm46_vm2 = vcmp.gt.f32.partialorder %v42_v14, 0.0  ;;  %vm47_vm3 = vcmp.gt.f32.partialorder %v43_v15, 0.0  ;;  %v50_v18 = vmul.f32 0.2, %v42_v14  ;;  %v51_v19 = vmul.f32 0.2, %v43_v15 }
   0xa   :  { %v52_v20 = vsel %vm44_vm0, %v40_v12, %v48_v16  ;;  %v53_v21 = vsel %vm45_vm1, %v41_v13, %v49_v17 }
   0xb   :  { %v101_v22 = vpack.c.bf16 %v53_v21, %v52_v20  ;;  %v54_v23 = vsel %vm46_vm2, %v42_v14, %v50_v18  ;;  %v55_v24 = vsel %vm47_vm3, %v43_v15, %v51_v19 }
   0xc   :  { %v106_v25 = vpack.c.bf16 %v55_v24, %v54_v23 }
   0xd   :  { %102 = vst [vmem:[%s151_s3] sm:$0xff] %v101_v22  }
   0xe   :  { %109 = vst [vmem:[%s151_s3 + $0x8] sm:$0xff] %v106_v25  }

// kernel: discriminator_forward.14
= control target key start
LH: loop header
LB: loop body
LE: loop exit
PB: predicated region body
PF: predicated region fallthrough
CT: control target
= control target key end

     0   :  { %s103_s0 = inlined_call_operand.vmem [shape: bf16[16,128], index: 0, kind: input, shape index: {}]   ;;  %s104_s1 = inlined_call_operand.vmem [shape: f32[1,128], index: 1, kind: input, shape index: {}]   ;;  %s105_s2 = inlined_call_operand.vmem [shape: f32[1,128], index: 2, kind: input, shape index: {}]   ;;  %s106_s3 = inlined_call_operand.vmem [shape: bf16[16,128], index: 3, kind: output, shape index: {}]  }
   0x1   :  { %v63_v0 = vld [vmem:[%s103_s0] sm:$0xff]  }
   0x2   :  { %v56_v1 = vld [vmem:[%s104_s1] ss:$0 sm:$0xff]  ;;  %v64_v2 = vunpack.c.l.bf16 %v63_v0  ;;  %v65_v3 = vunpack.c.h.bf16 %v63_v0 }
   0x3   :  { %v57_v4 = vld [vmem:[%s105_s2] ss:$0 sm:$0xff] }
   0x4   :  { %v25_v5 = vmul.f32 %v64_v2, %v56_v1  ;;  %v26_v6 = vmul.f32 %v65_v3, %v56_v1 }
   0x6   :  { %v34_v7 = vadd.f32 %v57_v4, %v25_v5  ;;  %v35_v8 = vadd.f32 %v57_v4, %v26_v6 }
   0x8   :  { %vm36_vm0 = vcmp.gt.f32.partialorder %v34_v7, 0.0  ;;  %vm37_vm1 = vcmp.gt.f32.partialorder %v35_v8, 0.0  ;;  %v38_v9 = vmul.f32 0.2, %v34_v7  ;;  %v39_v10 = vmul.f32 0.2, %v35_v8 }
   0xa   :  { %v40_v11 = vsel %vm36_vm0, %v34_v7, %v38_v9  ;;  %v41_v12 = vsel %vm37_vm1, %v35_v8, %v39_v10 }
   0xb   :  { %v69_v13 = vpack.c.bf16 %v41_v12, %v40_v11 }
   0xd   :  { %70 = vst [vmem:[%s106_s3] sm:$0xff] %v69_v13  }

// kernel: discriminator_forward.13
= control target key start
LH: loop header
LB: loop body
LE: loop exit
PB: predicated region body
PF: predicated region fallthrough
CT: control target
= control target key end

     0   :  { %s1340_s1 = inlined_call_operand.vmem [shape: bf16[1024,128], index: 1, kind: input, shape index: {}]   ;;  %s1341_s0 = inlined_call_operand.vmem [shape: bf16[16,1024], index: 0, kind: input, shape index: {}]   ;;  %s1342_s2 = inlined_call_operand.vmem [shape: bf16[16,128], index: 2, kind: output, shape index: {0}]   ;;  %s1343_s3 = inlined_call_operand.vmem [shape: f32[8,128], index: 3, kind: output, shape index: {1}]   ;;  %s1344_s4 = inlined_call_operand.vmem [shape: f32[8,128], index: 4, kind: output, shape index: {2}]  }
   0x1   :  { %v1026_v0 = vld [vmem:[%s1340_s1 + $0x78] sm:$0xff]   ;;  %v1030_v4 = vld [vmem:[%s1340_s1 + $0x70] sm:$0xff]   ;;  %v1034_v8 = vld [vmem:[%s1340_s1 + $0x68] sm:$0xff]  }
   0x2   :  { %v1027_v1 = vld [vmem:[%s1340_s1 + $0xf8] sm:$0xff]   ;;  %937 = vmatprep.subr.bf16.mxu0 %v1026_v0  ;;  %v1031_v5 = vld [vmem:[%s1340_s1 + $0xf0] sm:$0xff]   ;;  %v1035_v9 = vld [vmem:[%s1340_s1 + $0xe8] sm:$0xff]  }
   0x3   :  { %v1028_v2 = vld [vmem:[%s1340_s1 + $0x38] sm:$0xff]   ;;  %959 = vmatprep.subr.bf16.mxu1 %v1027_v1  ;;  %v1032_v6 = vld [vmem:[%s1340_s1 + $0x30] sm:$0xff]   ;;  %v1036_v10 = vld [vmem:[%s1340_s1 + $0x28] sm:$0xff]  }
   0x4   :  { %v1029_v3 = vld [vmem:[%s1340_s1 + $0xb8] sm:$0xff]   ;;  %938 = vmatpush3.bf16.msra.mxu0 %v1028_v2  ;;  %v1033_v7 = vld [vmem:[%s1340_s1 + $0xb0] sm:$0xff]   ;;  %v1037_v11 = vld [vmem:[%s1340_s1 + $0xa8] sm:$0xff]  }
   0x5   :  { %960 = vmatpush3.bf16.msra.mxu1 %v1029_v3  ;;  %939 = vmatprep.subr.bf16.mxu0 %v1030_v4  ;;  %v1038_v12 = vld [vmem:[%s1340_s1 + $0x60] sm:$0xff]   ;;  %v1042_v16 = vld [vmem:[%s1340_s1 + $0x58] sm:$0xff]   ;;  %v1046_v20 = vld [vmem:[%s1340_s1 + $0x50] sm:$0xff]  }
   0x6   :  { %961 = vmatprep.subr.bf16.mxu1 %v1031_v5  ;;  %v1039_v13 = vld [vmem:[%s1340_s1 + $0xe0] sm:$0xff]   ;;  %v1043_v17 = vld [vmem:[%s1340_s1 + $0xd8] sm:$0xff]   ;;  %v1047_v21 = vld [vmem:[%s1340_s1 + $0xd0] sm:$0xff]  }
   0x7   :  { %v1040_v14 = vld [vmem:[%s1340_s1 + $0x20] sm:$0xff]   ;;  %v1044_v18 = vld [vmem:[%s1340_s1 + $0x18] sm:$0xff]   ;;  %v1048_v22 = vld [vmem:[%s1340_s1 + $0x10] sm:$0xff]  }
   0x8   :  { %940 = vmatpush3.bf16.msra.mxu0 %v1032_v6  ;;  %v1041_v15 = vld [vmem:[%s1340_s1 + $0xa0] sm:$0xff]   ;;  %v1045_v19 = vld [vmem:[%s1340_s1 + $0x98] sm:$0xff]   ;;  %v1049_v23 = vld [vmem:[%s1340_s1 + $0x90] sm:$0xff]  }
   0x9   :  { %962 = vmatpush3.bf16.msra.mxu1 %v1033_v7  ;;  %941 = vmatprep.subr.bf16.mxu0 %v1034_v8  ;;  %v1050_v24 = vld [vmem:[%s1340_s1 + $0x48] sm:$0xff]   ;;  %v1054_v28 = vld [vmem:[%s1340_s1 + $0x40] sm:$0xff]   ;;  %v1058_v40 = vld [vmem:[%s1340_s1 + $0x178] sm:$0xff]  }
   0xa   :  { %963 = vmatprep.subr.bf16.mxu1 %v1035_v9  ;;  %v1051_v25 = vld [vmem:[%s1340_s1 + $0xc8] sm:$0xff]   ;;  %v1055_v29 = vld [vmem:[%s1340_s1 + $0xc0] sm:$0xff]   ;;  %v1059_v41 = vld [vmem:[%s1340_s1 + $0x1f8] sm:$0xff]  }
   0xb   :  { %v1052_v26 = vld [vmem:[%s1340_s1 + $0x8] sm:$0xff]   ;;  %v1056_v30 = vld [vmem:[%s1340_s1] sm:$0xff]   ;;  %v1060_v42 = vld [vmem:[%s1340_s1 + $0x138] sm:$0xff]  }
   0xc   :  { %942 = vmatpush3.bf16.msra.mxu0 %v1036_v10  ;;  %v1053_v27 = vld [vmem:[%s1340_s1 + $0x88] sm:$0xff]   ;;  %v1057_v31 = vld [vmem:[%s1340_s1 + $0x80] sm:$0xff]   ;;  %v1061_v43 = vld [vmem:[%s1340_s1 + $0x1b8] sm:$0xff]  }
   0xd   :  { %964 = vmatpush3.bf16.msra.mxu1 %v1037_v11  ;;  %943 = vmatprep.subr.bf16.mxu0 %v1038_v12  ;;  %v60_v32 = vld [vmem:[%s1341_s0] sm:$0xff]  ;;  %v61_v34 = vld [vmem:[%s1341_s0 + $0x8] sm:$0xff]  ;;  %v1062_v44 = vld [vmem:[%s1340_s1 + $0x170] sm:$0xff]  }
   0xe   :  { %965 = vmatprep.subr.bf16.mxu1 %v1039_v13  ;;  %v64_v33 = vld [vmem:[%s1341_s0 + $0x20] sm:$0xff]  ;;  %v65_v37 = vld [vmem:[%s1341_s0 + $0x28] sm:$0xff]  ;;  %v1063_v45 = vld [vmem:[%s1340_s1 + $0x1f0] sm:$0xff]  }
   0xf   :  { %v856_v35 = vcombine.low %v60_v32, %v64_v33  ;;  %v857_v36 = vcombine.high %v60_v32, %v64_v33  ;;  %v858_v38 = vcombine.low %v61_v34, %v65_v37  ;;  %v859_v39 = vcombine.high %v61_v34, %v65_v37  ;;  %v1064_v46 = vld [vmem:[%s1340_s1 + $0x130] sm:$0xff]   ;;  %v1066_v48 = vld [vmem:[%s1340_s1 + $0x168] sm:$0xff]   ;;  %v1070_v52 = vld [vmem:[%s1340_s1 + $0x160] sm:$0xff]  }
  0x10   :  { %944 = vmatpush3.bf16.msra.mxu0 %v1040_v14  ;;  %v1065_v47 = vld [vmem:[%s1340_s1 + $0x1b0] sm:$0xff]   ;;  %v1067_v49 = vld [vmem:[%s1340_s1 + $0x1e8] sm:$0xff]   ;;  %v1071_v53 = vld [vmem:[%s1340_s1 + $0x1e0] sm:$0xff]  }
  0x11   :  { %966 = vmatpush3.bf16.msra.mxu1 %v1041_v15  ;;  %945 = vmatprep.subr.bf16.mxu0 %v1042_v16  ;;  %v1068_v50 = vld [vmem:[%s1340_s1 + $0x128] sm:$0xff]   ;;  %v1072_v54 = vld [vmem:[%s1340_s1 + $0x120] sm:$0xff]   ;;  %v1074_v56 = vld [vmem:[%s1340_s1 + $0x158] sm:$0xff]  }
  0x12   :  { %967 = vmatprep.subr.bf16.mxu1 %v1043_v17  ;;  %652 = vmatprep.mubr.bf16.mxu0 %v857_v36  ;;  %v1069_v51 = vld [vmem:[%s1340_s1 + $0x1a8] sm:$0xff]   ;;  %v1073_v55 = vld [vmem:[%s1340_s1 + $0x1a0] sm:$0xff]   ;;  %v1075_v57 = vld [vmem:[%s1340_s1 + $0x1d8] sm:$0xff]  }
  0x13   :  { %693 = vmatprep.mubr.bf16.mxu1 %v859_v39  ;;  %v1076_v58 = vld [vmem:[%s1340_s1 + $0x118] sm:$0xff]   ;;  %v1078_v60 = vld [vmem:[%s1340_s1 + $0x150] sm:$0xff]   ;;  %v1082_v0 = vld [vmem:[%s1340_s1 + $0x148] sm:$0xff]  }
  0x14   :  { %946 = vmatpush3.bf16.msra.mxu0 %v1044_v18  ;;  %v1077_v59 = vld [vmem:[%s1340_s1 + $0x198] sm:$0xff]   ;;  %v1079_v61 = vld [vmem:[%s1340_s1 + $0x1d0] sm:$0xff]   ;;  %v1083_v1 = vld [vmem:[%s1340_s1 + $0x1c8] sm:$0xff]  }
  0x15   :  { %968 = vmatpush3.bf16.msra.mxu1 %v1045_v19  ;;  %947 = vmatprep.subr.bf16.mxu0 %v1046_v20  ;;  %v1080_v62 = vld [vmem:[%s1340_s1 + $0x110] sm:$0xff]   ;;  %v1084_v2 = vld [vmem:[%s1340_s1 + $0x108] sm:$0xff]   ;;  %v1086_v4 = vld [vmem:[%s1340_s1 + $0x140] sm:$0xff]  }
  0x16   :  { %969 = vmatprep.subr.bf16.mxu1 %v1047_v21  ;;  %v1081_v63 = vld [vmem:[%s1340_s1 + $0x190] sm:$0xff]   ;;  %v1085_v3 = vld [vmem:[%s1340_s1 + $0x188] sm:$0xff]   ;;  %v1087_v5 = vld [vmem:[%s1340_s1 + $0x1c0] sm:$0xff]  }
  0x17   :  { %v1088_v6 = vld [vmem:[%s1340_s1 + $0x100] sm:$0xff]   ;;  %v62_v8 = vld [vmem:[%s1341_s0 + $0x10] sm:$0xff]  ;;  %v63_v12 = vld [vmem:[%s1341_s0 + $0x18] sm:$0xff] }
  0x18   :  { %948 = vmatpush3.bf16.msra.mxu0 %v1048_v22  ;;  %v1089_v7 = vld [vmem:[%s1340_s1 + $0x180] sm:$0xff]   ;;  %v66_v9 = vld [vmem:[%s1341_s0 + $0x30] sm:$0xff]  ;;  %v67_v13 = vld [vmem:[%s1341_s0 + $0x38] sm:$0xff] }
  0x19   :  { %970 = vmatpush3.bf16.msra.mxu1 %v1049_v23  ;;  %949 = vmatprep.subr.bf16.mxu0 %v1050_v24  ;;  %v860_v10 = vcombine.low %v62_v8, %v66_v9  ;;  %v861_v11 = vcombine.high %v62_v8, %v66_v9  ;;  %v862_v14 = vcombine.low %v63_v12, %v67_v13 }
  0x1a   :  { %971 = vmatprep.subr.bf16.mxu1 %v1051_v25  ;;  %v863_v15 = vcombine.high %v63_v12, %v67_v13 }
  0x1c   :  { %950 = vmatpush3.bf16.msra.mxu0 %v1052_v26 }
  0x1d   :  { %972 = vmatpush3.bf16.msra.mxu1 %v1053_v27  ;;  %951 = vmatprep.subr.bf16.mxu0 %v1054_v28 }
  0x1e   :  { %973 = vmatprep.subr.bf16.mxu1 %v1055_v29 }
  0x20   :  { %952 = vmatpush3.bf16.msra.mxu0 %v1056_v30 }
  0x21   :  { %974 = vmatpush3.bf16.msra.mxu1 %v1057_v31  ;;  %981 = vmatprep.subr.bf16.mxu0 %v1058_v40 }
  0x22   :  { %1003 = vmatprep.subr.bf16.mxu1 %v1059_v41 }
  0x23   :  { %653 = vmatmul.mubr.bf16.vlgmr.msra.gmra.mxu0 %v856_v35 }
  0x24   :  { %694 = vmatmul.mubr.bf16.vlgmr.msra.gmra.mxu1 %v858_v38  ;;  %982 = vmatpush3.bf16.msra.mxu0 %v1060_v42 }
  0x25   :  { %1004 = vmatpush3.bf16.msra.mxu1 %v1061_v43  ;;  %983 = vmatprep.subr.bf16.mxu0 %v1062_v44 }
  0x26   :  { %1005 = vmatprep.subr.bf16.mxu1 %v1063_v45  ;;  %734 = vmatprep.mubr.bf16.mxu0 %v861_v11 }
  0x27   :  { %775 = vmatprep.mubr.bf16.mxu1 %v863_v15 }
  0x28   :  { %984 = vmatpush3.bf16.msra.mxu0 %v1064_v46 }
  0x29   :  { %1006 = vmatpush3.bf16.msra.mxu1 %v1065_v47  ;;  %985 = vmatprep.subr.bf16.mxu0 %v1066_v48 }
  0x2a   :  { %1007 = vmatprep.subr.bf16.mxu1 %v1067_v49 }
  0x2c   :  { %986 = vmatpush3.bf16.msra.mxu0 %v1068_v50 }
  0x2d   :  { %1008 = vmatpush3.bf16.msra.mxu1 %v1069_v51  ;;  %987 = vmatprep.subr.bf16.mxu0 %v1070_v52 }
  0x2e   :  { %1009 = vmatprep.subr.bf16.mxu1 %v1071_v53 }
  0x30   :  { %988 = vmatpush3.bf16.msra.mxu0 %v1072_v54 }
  0x31   :  { %1010 = vmatpush3.bf16.msra.mxu1 %v1073_v55  ;;  %989 = vmatprep.subr.bf16.mxu0 %v1074_v56 }
  0x32   :  { %1011 = vmatprep.subr.bf16.mxu1 %v1075_v57 }
  0x34   :  { %990 = vmatpush3.bf16.msra.mxu0 %v1076_v58 }
  0x35   :  { %1012 = vmatpush3.bf16.msra.mxu1 %v1077_v59  ;;  %991 = vmatprep.subr.bf16.mxu0 %v1078_v60 }
  0x36   :  { %1013 = vmatprep.subr.bf16.mxu1 %v1079_v61 }
  0x38   :  { %992 = vmatpush3.bf16.msra.mxu0 %v1080_v62 }
  0x39   :  { %1014 = vmatpush3.bf16.msra.mxu1 %v1081_v63  ;;  %993 = vmatprep.subr.bf16.mxu0 %v1082_v0 }
  0x3a   :  { %1015 = vmatprep.subr.bf16.mxu1 %v1083_v1 }
  0x3c   :  { %994 = vmatpush3.bf16.msra.mxu0 %v1084_v2 }
  0x3d   :  { %1016 = vmatpush3.bf16.msra.mxu1 %v1085_v3  ;;  %995 = vmatprep.subr.bf16.mxu0 %v1086_v4 }
  0x3e   :  { %1017 = vmatprep.subr.bf16.mxu1 %v1087_v5 }
  0x40   :  { %996 = vmatpush3.bf16.msra.mxu0 %v1088_v6 }
  0x41   :  { %1018 = vmatpush3.bf16.msra.mxu1 %v1089_v7 }
  0x43   :  { %735 = vmatmul.mubr.bf16.vlgmr.msra.gmra.mxu0 %v860_v10 }
  0x44   :  { %776 = vmatmul.mubr.bf16.vlgmr.msra.gmra.mxu1 %v862_v14 }
  0xe3   :  { %v953_v16 = vpop.f32.mrf.mxu0 }
  0xe4   :  { %v975_v17 = vpop.f32.mrf.mxu1 }
  0xe5   :  { %v954_v18 = vpop.f32.mrf.mxu0 }
  0xe6   :  { %v976_v19 = vpop.f32.mrf.mxu1  ;;  %v955_v23 = vadd.f32 %v954_v18, %v953_v16 }
  0xe7   :  { %v956_v20 = vpop.f32.mrf.mxu0  ;;  %v977_v24 = vadd.f32 %v976_v19, %v975_v17 }
  0xe8   :  { %v978_v21 = vpop.f32.mrf.mxu1 }
  0xe9   :  { %v957_v22 = vpop.f32.mrf.mxu0  ;;  %v696_v29 = vadd.f32 %v977_v24, %v955_v23 }
  0xea   :  { %v979_v25 = vpop.f32.mrf.mxu1  ;;  %v958_v30 = vadd.f32 %v957_v22, %v956_v20 }
  0xeb   :  { %v980_v31 = vadd.f32 %v979_v25, %v978_v21 }
  0xed   :  { %v699_v38 = vadd.f32 %v980_v31, %v958_v30 }
 0x103   :  { %v997_v26 = vpop.f32.mrf.mxu0 }
 0x104   :  { %v1019_v27 = vpop.f32.mrf.mxu1 }
 0x105   :  { %v998_v28 = vpop.f32.mrf.mxu0 }
 0x106   :  { %v999_v32 = vadd.f32 %v998_v28, %v997_v26  ;;  %v1020_v33 = vpop.f32.mrf.mxu1 }
 0x107   :  { %v1000_v34 = vpop.f32.mrf.mxu0  ;;  %v1021_v39 = vadd.f32 %v1020_v33, %v1019_v27 }
 0x108   :  { %v737_v35 = vadd.f32 %v999_v32, %v696_v29  ;;  %v1022_v36 = vpop.f32.mrf.mxu1 }
 0x109   :  { %v1001_v37 = vpop.f32.mrf.mxu0 }
 0x10a   :  { %v1002_v40 = vadd.f32 %v1001_v37, %v1000_v34  ;;  %v1023_v41 = vpop.f32.mrf.mxu1  ;;  %v778_v42 = vadd.f32 %v1021_v39, %v737_v35 }
 0x10b   :  { %v1024_v44 = vadd.f32 %v1023_v41, %v1022_v36 }
 0x10c   :  { %v740_v43 = vadd.f32 %v1002_v40, %v699_v38  ;;  %v805_v46 = vmul.f32 %v778_v42, %v778_v42 }
 0x10e   :  { %v781_v45 = vadd.f32 %v1024_v44, %v740_v43 }
 0x110   :  { %v935_v47 = vpack.c.bf16 %v781_v45, %v778_v42  ;;  %v795_v48 = vadd.f32 %v781_v45, %v778_v42  ;;  %v806_v49 = vmul.f32 %v781_v45, %v781_v45 }
 0x112   :  { %936 = vst [vmem:[%s1342_s2] sm:$0xff] %v935_v47   ;;  %v796_v50 = vrot.slane %v795_v48, 4  ;;  %v807_v51 = vadd.f32 %v806_v49, %v805_v46 }
 0x114   :  { %v797_v52 = vadd.f32 %v796_v50, %v795_v48  ;;  %v808_v53 = vrot.slane %v807_v51, 4 }
 0x116   :  { %v798_v54 = vrot.slane %v797_v52, 2  ;;  %v809_v55 = vadd.f32 %v808_v53, %v807_v51 }
 0x118   :  { %v799_v56 = vadd.f32 %v798_v54, %v797_v52  ;;  %v810_v57 = vrot.slane %v809_v55, 2 }
 0x11a   :  { %v800_v58 = vrot.slane %v799_v56, 1  ;;  %v811_v59 = vadd.f32 %v810_v57, %v809_v55 }
 0x11c   :  { %v801_v60 = vadd.f32 %v800_v58, %v799_v56  ;;  %v812_v61 = vrot.slane %v811_v59, 1 }
 0x11e   :  { %v813_v62 = vadd.f32 %v812_v61, %v811_v59  ;;  %803 = vst [vmem:[%s1343_s3] sm:$0xff] %v801_v60 }
 0x120   :  { %815 = vst [vmem:[%s1344_s4] sm:$0xff] %v813_v62 }

// kernel: discriminator_forward.15
= control target key start
LH: loop header
LB: loop body
LE: loop exit
PB: predicated region body
PF: predicated region fallthrough
CT: control target
= control target key end

     0   :  { %v977_v22 = vmov 1966171168   ;;  %v146_v24 = vlaneseq  ;;  %vm749_vm0 = vcmask 1024   ;;  %s1204_s1 = inlined_call_operand.vmem [shape: bf16[1024,1], index: 1, kind: input, shape index: {}]   ;;  %s1205_s0 = inlined_call_operand.vmem [shape: bf16[2,1024], index: 0, kind: input, shape index: {}]   ;;  %s1206_s2 = inlined_call_operand.vmem [shape: f32[2,1], index: 2, kind: output, shape index: {}]  }
   0x1   :  { %v908_v0 = vld [vmem:[%s1204_s1 + $0x78] sm:$0xff]   ;;  %v912_v4 = vld [vmem:[%s1204_s1 + $0x70] sm:$0xff]   ;;  %v916_v8 = vld [vmem:[%s1204_s1 + $0x68] sm:$0xff]   ;;  %v144_v23 = vunpack.c.l.s4 %v977_v22 }
   0x2   :  { %v909_v1 = vld [vmem:[%s1204_s1 + $0xf8] sm:$0xff]   ;;  %819 = vmatprep.subr.bf16.mxu0 %v908_v0  ;;  %v913_v5 = vld [vmem:[%s1204_s1 + $0xf0] sm:$0xff]   ;;  %v917_v9 = vld [vmem:[%s1204_s1 + $0xe8] sm:$0xff]   ;;  %v147_v30 = vshrl.u32 %v146_v24, 7 }
   0x3   :  { %v910_v2 = vld [vmem:[%s1204_s1 + $0x38] sm:$0xff]   ;;  %841 = vmatprep.subr.bf16.mxu1 %v909_v1  ;;  %v914_v6 = vld [vmem:[%s1204_s1 + $0x30] sm:$0xff]   ;;  %v918_v10 = vld [vmem:[%s1204_s1 + $0x28] sm:$0xff]   ;;  %v145_v29 = vunpack.c.0.s8 %v144_v23 }
   0x4   :  { %v911_v3 = vld [vmem:[%s1204_s1 + $0xb8] sm:$0xff]   ;;  %820 = vmatpush3.bf16.msra.mxu0 %v910_v2  ;;  %v915_v7 = vld [vmem:[%s1204_s1 + $0xb0] sm:$0xff]   ;;  %v919_v11 = vld [vmem:[%s1204_s1 + $0xa8] sm:$0xff]  }
   0x5   :  { %842 = vmatpush3.bf16.msra.mxu1 %v911_v3  ;;  %821 = vmatprep.subr.bf16.mxu0 %v912_v4  ;;  %v920_v12 = vld [vmem:[%s1204_s1 + $0x60] sm:$0xff]   ;;  %v924_v16 = vld [vmem:[%s1204_s1 + $0x58] sm:$0xff]   ;;  %v928_v20 = vld [vmem:[%s1204_s1 + $0x50] sm:$0xff]   ;;  %v1083_v35 = vsub.s32 %v145_v29, %v147_v30 }
   0x6   :  { %843 = vmatprep.subr.bf16.mxu1 %v913_v5  ;;  %v921_v13 = vld [vmem:[%s1204_s1 + $0xe0] sm:$0xff]   ;;  %v925_v17 = vld [vmem:[%s1204_s1 + $0xd8] sm:$0xff]   ;;  %v929_v21 = vld [vmem:[%s1204_s1 + $0xd0] sm:$0xff]  }
   0x7   :  { %v922_v14 = vld [vmem:[%s1204_s1 + $0x20] sm:$0xff]   ;;  %v926_v18 = vld [vmem:[%s1204_s1 + $0x18] sm:$0xff]   ;;  %v930_v25 = vld [vmem:[%s1204_s1 + $0x10] sm:$0xff]  }
   0x8   :  { %822 = vmatpush3.bf16.msra.mxu0 %v914_v6  ;;  %v923_v15 = vld [vmem:[%s1204_s1 + $0xa0] sm:$0xff]   ;;  %v927_v19 = vld [vmem:[%s1204_s1 + $0x98] sm:$0xff]   ;;  %v931_v26 = vld [vmem:[%s1204_s1 + $0x90] sm:$0xff]  }
   0x9   :  { %844 = vmatpush3.bf16.msra.mxu1 %v915_v7  ;;  %823 = vmatprep.subr.bf16.mxu0 %v916_v8  ;;  %v932_v27 = vld [vmem:[%s1204_s1 + $0x48] sm:$0xff]   ;;  %v936_v33 = vld [vmem:[%s1204_s1 + $0x40] sm:$0xff]   ;;  %v941_v41 = vld [vmem:[%s1204_s1 + $0x178] sm:$0xff]  }
   0xa   :  { %845 = vmatprep.subr.bf16.mxu1 %v917_v9  ;;  %v933_v28 = vld [vmem:[%s1204_s1 + $0xc8] sm:$0xff]   ;;  %v937_v34 = vld [vmem:[%s1204_s1 + $0xc0] sm:$0xff]   ;;  %v942_v42 = vld [vmem:[%s1204_s1 + $0x1f8] sm:$0xff]  }
   0xb   :  { %v934_v31 = vld [vmem:[%s1204_s1 + $0x8] sm:$0xff]   ;;  %v938_v36 = vld [vmem:[%s1204_s1] sm:$0xff]   ;;  %v943_v47 = vld [vmem:[%s1204_s1 + $0x138] sm:$0xff]  }
   0xc   :  { %824 = vmatpush3.bf16.msra.mxu0 %v918_v10  ;;  %v935_v32 = vld [vmem:[%s1204_s1 + $0x88] sm:$0xff]   ;;  %v939_v37 = vld [vmem:[%s1204_s1 + $0x80] sm:$0xff]   ;;  %v945_v50 = vld [vmem:[%s1204_s1 + $0x170] sm:$0xff]  }
   0xd   :  { %846 = vmatpush3.bf16.msra.mxu1 %v919_v11  ;;  %825 = vmatprep.subr.bf16.mxu0 %v920_v12  ;;  %v12_v38 = vld [vmem:[%s1205_s0] sm:$0xff]  ;;  %v944_v52 = vld [vmem:[%s1204_s1 + $0x1b8] sm:$0xff]   ;;  %v946_v54 = vld [vmem:[%s1204_s1 + $0x1f0] sm:$0xff]  }
   0xe   :  { %847 = vmatprep.subr.bf16.mxu1 %v921_v13  ;;  %v142_v39 = vcombine.high %v12_v38, %v12_v38  ;;  %v149_v40 = vrot.slane %v12_v38, %v1083_v35  ;;  %v947_v55 = vld [vmem:[%s1204_s1 + $0x130] sm:$0xff]   ;;  %v949_v57 = vld [vmem:[%s1204_s1 + $0x168] sm:$0xff]   ;;  %v953_v61 = vld [vmem:[%s1204_s1 + $0x160] sm:$0xff]  }
   0xf   :  { %v948_v58 = vld [vmem:[%s1204_s1 + $0x1b0] sm:$0xff]   ;;  %v950_v59 = vld [vmem:[%s1204_s1 + $0x1e8] sm:$0xff]   ;;  %v954_v63 = vld [vmem:[%s1204_s1 + $0x1e0] sm:$0xff]  }
  0x10   :  { %826 = vmatpush3.bf16.msra.mxu0 %v922_v14  ;;  %v157_v43 = vcombine.high %v149_v40, %v149_v40  ;;  %v165_v44 = vrot.slane %v149_v40, %v1083_v35  ;;  %v1103_v45 = vrot.slane %v142_v39, %v1083_v35  ;;  %v951_v60 = vld [vmem:[%s1204_s1 + $0x128] sm:$0xff]   ;;  %v955_v0 = vld [vmem:[%s1204_s1 + $0x120] sm:$0xff]   ;;  %v957_v1 = vld [vmem:[%s1204_s1 + $0x158] sm:$0xff]  }
  0x11   :  { %848 = vmatpush3.bf16.msra.mxu1 %v923_v15  ;;  %827 = vmatprep.subr.bf16.mxu0 %v924_v16  ;;  %v952_v62 = vld [vmem:[%s1204_s1 + $0x1a8] sm:$0xff]   ;;  %v956_v2 = vld [vmem:[%s1204_s1 + $0x1a0] sm:$0xff]   ;;  %v958_v3 = vld [vmem:[%s1204_s1 + $0x1d8] sm:$0xff]  }
  0x12   :  { %849 = vmatprep.subr.bf16.mxu1 %v925_v17  ;;  %v179_v46 = vrot.slane %v157_v43, %v1083_v35  ;;  %v158_v48 = vcombine.high %v1103_v45, %v1103_v45  ;;  %v187_v49 = vcombine.high %v165_v44, %v165_v44  ;;  %v959_v4 = vld [vmem:[%s1204_s1 + $0x118] sm:$0xff]   ;;  %v961_v5 = vld [vmem:[%s1204_s1 + $0x150] sm:$0xff]   ;;  %v965_v9 = vld [vmem:[%s1204_s1 + $0x148] sm:$0xff]   ;;  %v172_v17 = vrot.slane %v1103_v45, %v1083_v35 }
  0x13   :  { %v960_v6 = vld [vmem:[%s1204_s1 + $0x198] sm:$0xff]   ;;  %v962_v7 = vld [vmem:[%s1204_s1 + $0x1d0] sm:$0xff]   ;;  %v966_v11 = vld [vmem:[%s1204_s1 + $0x1c8] sm:$0xff]  }
  0x14   :  { %828 = vmatpush3.bf16.msra.mxu0 %v926_v18  ;;  %615 = vmatprep.mubr.bf16.mxu0 %v179_v46  ;;  %v189_v51 = vcombine.high %v179_v46, %v179_v46  ;;  %v186_v53 = vrot.slane %v158_v48, %v1083_v35  ;;  %v963_v8 = vld [vmem:[%s1204_s1 + $0x110] sm:$0xff]   ;;  %v967_v12 = vld [vmem:[%s1204_s1 + $0x108] sm:$0xff]   ;;  %v969_v13 = vld [vmem:[%s1204_s1 + $0x140] sm:$0xff]  }
  0x15   :  { %850 = vmatpush3.bf16.msra.mxu1 %v927_v19  ;;  %829 = vmatprep.subr.bf16.mxu0 %v928_v20  ;;  %v964_v10 = vld [vmem:[%s1204_s1 + $0x190] sm:$0xff]   ;;  %v968_v14 = vld [vmem:[%s1204_s1 + $0x188] sm:$0xff]   ;;  %v970_v15 = vld [vmem:[%s1204_s1 + $0x1c0] sm:$0xff]   ;;  %v188_v19 = vcombine.high %v172_v17, %v172_v17 }
  0x16   :  { %851 = vmatprep.subr.bf16.mxu1 %v929_v21  ;;  %655 = vmatprep.mubr.bf16.mxu1 %v189_v51  ;;  %v190_v56 = vcombine.high %v186_v53, %v186_v53  ;;  %v971_v16 = vld [vmem:[%s1204_s1 + $0x100] sm:$0xff]  }
  0x17   :  { %v972_v18 = vld [vmem:[%s1204_s1 + $0x180] sm:$0xff]  }
  0x18   :  { %830 = vmatpush3.bf16.msra.mxu0 %v930_v25 }
  0x19   :  { %852 = vmatpush3.bf16.msra.mxu1 %v931_v26  ;;  %831 = vmatprep.subr.bf16.mxu0 %v932_v27 }
  0x1a   :  { %853 = vmatprep.subr.bf16.mxu1 %v933_v28 }
  0x1c   :  { %832 = vmatpush3.bf16.msra.mxu0 %v934_v31 }
  0x1d   :  { %854 = vmatpush3.bf16.msra.mxu1 %v935_v32  ;;  %833 = vmatprep.subr.bf16.mxu0 %v936_v33 }
  0x1e   :  { %855 = vmatprep.subr.bf16.mxu1 %v937_v34 }
  0x20   :  { %834 = vmatpush3.bf16.msra.mxu0 %v938_v36 }
  0x21   :  { %856 = vmatpush3.bf16.msra.mxu1 %v939_v37  ;;  %863 = vmatprep.subr.bf16.mxu0 %v941_v41 }
  0x22   :  { %885 = vmatprep.subr.bf16.mxu1 %v942_v42 }
  0x23   :  { %616 = vmatmul.mubr.bf16.vlgmr.msra.gmra.mxu0 %v165_v44 }
  0x24   :  { %864 = vmatpush3.bf16.msra.mxu0 %v943_v47  ;;  %656 = vmatmul.mubr.bf16.vlgmr.msra.gmra.mxu1 %v187_v49 }
  0x25   :  { %865 = vmatprep.subr.bf16.mxu0 %v945_v50  ;;  %886 = vmatpush3.bf16.msra.mxu1 %v944_v52 }
  0x26   :  { %695 = vmatprep.mubr.bf16.mxu0 %v186_v53  ;;  %887 = vmatprep.subr.bf16.mxu1 %v946_v54 }
  0x27   :  { %735 = vmatprep.mubr.bf16.mxu1 %v190_v56 }
  0x28   :  { %866 = vmatpush3.bf16.msra.mxu0 %v947_v55 }
  0x29   :  { %867 = vmatprep.subr.bf16.mxu0 %v949_v57  ;;  %888 = vmatpush3.bf16.msra.mxu1 %v948_v58 }
  0x2a   :  { %889 = vmatprep.subr.bf16.mxu1 %v950_v59 }
  0x2c   :  { %868 = vmatpush3.bf16.msra.mxu0 %v951_v60 }
  0x2d   :  { %869 = vmatprep.subr.bf16.mxu0 %v953_v61  ;;  %890 = vmatpush3.bf16.msra.mxu1 %v952_v62 }
  0x2e   :  { %891 = vmatprep.subr.bf16.mxu1 %v954_v63 }
  0x30   :  { %870 = vmatpush3.bf16.msra.mxu0 %v955_v0 }
  0x31   :  { %871 = vmatprep.subr.bf16.mxu0 %v957_v1  ;;  %892 = vmatpush3.bf16.msra.mxu1 %v956_v2 }
  0x32   :  { %893 = vmatprep.subr.bf16.mxu1 %v958_v3 }
  0x34   :  { %872 = vmatpush3.bf16.msra.mxu0 %v959_v4 }
  0x35   :  { %873 = vmatprep.subr.bf16.mxu0 %v961_v5  ;;  %894 = vmatpush3.bf16.msra.mxu1 %v960_v6 }
  0x36   :  { %895 = vmatprep.subr.bf16.mxu1 %v962_v7 }
  0x38   :  { %874 = vmatpush3.bf16.msra.mxu0 %v963_v8 }
  0x39   :  { %875 = vmatprep.subr.bf16.mxu0 %v965_v9  ;;  %896 = vmatpush3.bf16.msra.mxu1 %v964_v10 }
  0x3a   :  { %897 = vmatprep.subr.bf16.mxu1 %v966_v11 }
  0x3c   :  { %876 = vmatpush3.bf16.msra.mxu0 %v967_v12 }
  0x3d   :  { %877 = vmatprep.subr.bf16.mxu0 %v969_v13  ;;  %898 = vmatpush3.bf16.msra.mxu1 %v968_v14 }
  0x3e   :  { %899 = vmatprep.subr.bf16.mxu1 %v970_v15 }
  0x40   :  { %878 = vmatpush3.bf16.msra.mxu0 %v971_v16 }
  0x41   :  { %900 = vmatpush3.bf16.msra.mxu1 %v972_v18 }
  0x43   :  { %696 = vmatmul.mubr.bf16.vlgmr.msra.gmra.mxu0 %v172_v17 }
  0x44   :  { %736 = vmatmul.mubr.bf16.vlgmr.msra.gmra.mxu1 %v188_v19 }
  0xe3   :  { %v835_v20 = vpop.f32.mrf.mxu0 }
  0xe4   :  { %v857_v21 = vpop.f32.mrf.mxu1 }
  0xe5   :  { %v836_v22 = vpop.f32.mrf.mxu0 }
  0xe6   :  { %v858_v23 = vpop.f32.mrf.mxu1  ;;  %v837_v28 = vadd.f32 %v836_v22, %v835_v20 }
  0xe7   :  { %v838_v24 = vpop.f32.mrf.mxu0  ;;  %v859_v29 = vadd.f32 %v858_v23, %v857_v21 }
  0xe8   :  { %v860_v25 = vpop.f32.mrf.mxu1 }
  0xe9   :  { %v839_v26 = vpop.f32.mrf.mxu0  ;;  %v658_v33 = vadd.f32 %v859_v29, %v837_v28 }
  0xea   :  { %v861_v27 = vpop.f32.mrf.mxu1 }
 0x103   :  { %v879_v30 = vpop.f32.mrf.mxu0 }
 0x104   :  { %v901_v31 = vpop.f32.mrf.mxu1 }
 0x105   :  { %v880_v32 = vpop.f32.mrf.mxu0 }
 0x106   :  { %v881_v34 = vadd.f32 %v880_v32, %v879_v30  ;;  %v902_v35 = vpop.f32.mrf.mxu1 }
 0x107   :  { %v882_v36 = vpop.f32.mrf.mxu0  ;;  %v903_v38 = vadd.f32 %v902_v35, %v901_v31 }
 0x108   :  { %v698_v37 = vadd.f32 %v881_v34, %v658_v33  ;;  %v904_v39 = vpop.f32.mrf.mxu1 }
 0x109   :  { %v883_v40 = vpop.f32.mrf.mxu0 }
 0x10a   :  { %v738_v41 = vadd.f32 %v903_v38, %v698_v37  ;;  %v905_v42 = vpop.f32.mrf.mxu1 }
 0x10c   :  { %v743_v43 = vsub.f32 0.0, %v738_v41 }
 0x10e   :  { %v744_v44 = vmul.f32 1.442695, %v743_v43 }
 0x110   :  { %973 = vpow2.f32 %v744_v44 }
 0x11d   :  { %v974_v45 = vpop.eup %973 }
 0x11e   :  { %v746_v46 = vadd.f32 1.0, %v974_v45 }
 0x120   :  { %975 = vrcp.f32 %v746_v46 }
 0x12d   :  { %v976_v47 = vpop.eup %975 }
 0x12e   :  { %750 = vst.msk [vmem:[%s1206_s2] sm:$0x3] %vm749_vm0, %v976_v47 }

</bundles_post_ra>
